<compile_context>
chip_gen: v5e
topology: v5e:2x2
jax: 0.10.0
libtpu: 0.0.40
codegen_flags: <defaults>
</compile_context>

<pallas_src>
import functools

import numpy as np
import jax
import jax.numpy as jnp
from jax.experimental import pallas as pl
from jax.experimental.pallas import tpu as pltpu

_EPS = 1e-5
_LANE = 128
# layer kinds in forward order: g0, g1, g2, g3, g4, g5, g6, g7, g
_KINDS = ("c1", "s2", "s2", "s2", "t2", "t2", "t2", "c1", "out")


def _rup(n, m=_LANE):
    return ((n + m - 1) // m) * m


def _pad_last(a, n):
    return jnp.pad(a, [(0, 0)] * (a.ndim - 1) + [(0, n - a.shape[-1])])


# ----------------------------------------------------------------------------------------
# Host-side compile-time constants (functions of batch_block / width only).
# ----------------------------------------------------------------------------------------
def _s2_gather(batch, w_in):
    """(3*B*Wout, B*Win) 0/1 bf16: row (t*B + b)*Wout + m  <-  input row b*Win + 2m+t.

    Stacks the three k=3 taps of a TF-'same' stride-2 conv along rows so the kernel needs a
    single MXU gather; the out-of-range tap (2m+t == Win, the implicit right pad) stays 0.
    """
    w_out = w_in // 2
    g = np.zeros((3 * batch * w_out, batch * w_in), np.float32)
    for t in range(3):
        for b in range(batch):
            for m in range(w_out):
                src = 2 * m + t
                if src < w_in:
                    g[(t * batch + b) * w_out + m, b * w_in + src] = 1.0
    return jnp.asarray(g, jnp.bfloat16)


def _t2_interleave(batch, w_in):
    """(2*B*Win, 2*B*Win) 0/1 bf16 permutation: rows [y_even; y_odd] -> interleaved y."""
    m = batch * w_in
    p = np.zeros((2 * m, 2 * m), np.float32)
    for b in range(batch):
        for j in range(w_in):
            p[b * 2 * w_in + 2 * j, b * w_in + j] = 1.0          # y[2j]   <- y_even[j]
            p[b * 2 * w_in + 2 * j + 1, m + b * w_in + j] = 1.0  # y[2j+1] <- y_odd[j]
    return jnp.asarray(p, jnp.bfloat16)


def _t2_edge_masks(batch, w_in):
    """(B*Win, 1) f32 masks zeroing the one row per sequence that wraps after pltpu.roll."""
    m_m1 = np.ones((batch * w_in, 1), np.float32)
    m_p1 = np.ones((batch * w_in, 1), np.float32)
    for b in range(batch):
        m_m1[b * w_in, 0] = 0.0                # x[m-1] does not exist at m == 0
        m_p1[b * w_in + w_in - 1, 0] = 0.0     # x[m+1] does not exist at m == Win-1
    return jnp.asarray(m_m1), jnp.asarray(m_p1)


# ----------------------------------------------------------------------------------------
# Parameter construction (random torch-equivalent weights, BN folded, lane-padded).
# ----------------------------------------------------------------------------------------
def _bn_fold(key, c_out, bias):
    kg, kb, km, kv = jax.random.split(key, 4)
    gamma = 1.0 + 0.1 * jax.random.uniform(kg, (c_out,), jnp.float32, -1.0, 1.0)
    beta = 0.05 * jax.random.normal(kb, (c_out,), jnp.float32)
    mean = 0.02 * jax.random.normal(km, (c_out,), jnp.float32)
    var = 1.0 + 0.1 * jax.random.uniform(kv, (c_out,), jnp.float32, 0.0, 1.0)
    scale = gamma * jax.lax.rsqrt(var + _EPS)
    shift = beta - mean * scale + bias * scale
    return scale, shift


def _conv_block_params(key, c_in, c_out, k, kind, bn):
    """One conv block.  Weights are stored bf16 with both channel dims zero-padded to
    multiples of 128 lanes (padded channels have weight/scale/shift == 0, so they remain
    exactly 0 through swish and the skip adds); scale/shift are stored at true width."""
    kw, kb, kbn = jax.random.split(key, 3)
    bound = float(1.0 / (c_in * k) ** 0.5)
    if kind == "t2":
        # torch ConvTranspose2d weight (C_in, C_out, 1, k); y[n] = sum_m x[m] @ w[n+1-2m]
        w_pt = jax.random.uniform(kw, (c_in, c_out, 1, k), jnp.float32, -bound, bound)
        taps = jnp.transpose(w_pt[:, :, 0, :], (2, 0, 1))        # (k, C_in, C_out)
    else:
        # torch Conv2d weight (C_out, C_in, 1, k)
        w_pt = jax.random.uniform(kw, (c_out, c_in, 1, k), jnp.float32, -bound, bound)
        taps = jnp.transpose(w_pt[:, :, 0, :], (2, 1, 0))        # (k, C_in, C_out)
    bias = jax.random.uniform(kb, (c_out,), jnp.float32, -bound, bound)
    if bn:
        scale, shift = _bn_fold(kbn, c_out, bias)
    else:
        scale, shift = jnp.ones((c_out,), jnp.float32), bias

    ci_p, co_p = _rup(c_in), _rup(c_out)
    taps = _pad_last(jnp.pad(taps, ((0, 0), (0, ci_p - c_in), (0, 0))), co_p)

    out = {"scale": scale.reshape(1, -1), "shift": shift.reshape(1, -1)}
    if kind == "s2":
        # im2col weights: K dimension is [tap0 | tap1 | tap2] stacked along input channels.
        out["w_col"] = taps.reshape(3 * ci_p, co_p).astype(jnp.bfloat16)
    elif kind == "t2":
        # polyphase weights: y_even uses taps (1,3), y_odd uses taps (0,2).
        out["w_even"] = jnp.concatenate([taps[1], taps[3]], axis=0).astype(jnp.bfloat16)
        out["w_odd"] = jnp.concatenate([taps[0], taps[2]], axis=0).astype(jnp.bfloat16)
    else:  # "c1" / "out"
        out["w"] = taps[0].astype(jnp.bfloat16)
    return out


def init_decoder_params(key, hop):
    dim = 4 * hop // 2 + 1
    defs = [
        (128, hop * 3, 1, "c1", True),                     # g0
        (hop * 3, hop * 2, 3, "s2", True),                 # g1
        (hop * 2, hop + hop // 2, 3, "s2", True),          # g2
        (hop + hop // 2, hop + hop // 4, 3, "s2", True),   # g3
        (hop + hop // 4, hop + hop // 2, 4, "t2", True),   # g4
        (hop + hop // 2, hop * 2, 4, "t2", True),          # g5
        (hop * 2, hop * 3, 4, "t2", True),                 # g6
        (hop * 3, hop * 5, 1, "c1", True),                 # g7
        (hop * 5, dim * 2, 1, "out", False),               # g (no BN, no activation)
    ]
    keys = jax.random.split(key, len(defs))
    return [_conv_block_params(kk, *d) for kk, d in zip(keys, defs)]


# ----------------------------------------------------------------------------------------
# Fused kernel.
# ----------------------------------------------------------------------------------------
def _decoder_kernel(*refs, batch_block, width):
    """Whole Decoder forward on one block of `batch_block` sequences.

    refs = [x2d_block, <per-layer params in _KINDS order>, out_block].  All channel dims are
    multiples of 128 lanes; activations are f32 and cast to bf16 only as MXU operands."""
    x_ref, out_ref = refs[0], refs[-1]
    it = iter(refs[1:-1])

    def nxt():
        return next(it)[...]

    def swish(h):                                   # h is f32; division on the EUP slot
        return h * pl.reciprocal(1.0 + jnp.exp(-h), approx=True)

    def bf(v):
        return v.astype(jnp.bfloat16)

    def dot(a, b):
        return jnp.dot(a, b, preferred_element_type=jnp.float32)

    def conv1x1(v, act=True):
        w, sc, sh = nxt(), nxt(), nxt()
        h = dot(bf(v), w) * sc + sh
        return swish(h) if act else h

    def down2(v, m_in):
        # k=3 stride-2 TF-'same': z[m] = x[2m]@w0 + x[2m+1]@w1 + x[2m+2]@w2 (x[Win] = 0).
        g, w_col, sc, sh = nxt(), nxt(), nxt(), nxt()
        m_out = m_in // 2
        xg = dot(g, bf(v))                          # (3*m_out, 128): taps stacked along rows
        x_col = jnp.concatenate(                    # lane-aligned im2col -> one K=384 matmul
            [xg[0:m_out], xg[m_out:2 * m_out], xg[2 * m_out:3 * m_out]], axis=-1)
        return swish(dot(bf(x_col), w_col) * sc + sh)

    def up2(v, m_in):
        # k=4 stride-2 transposed (TF-'same' == torch padding=1), polyphase:
        #   y[2m]   = x[m]@w1 + x[m-1]@w3 ;  y[2m+1] = x[m+1]@w0 + x[m]@w2
        w_e, w_o = nxt(), nxt()
        mask_m1, mask_p1 = nxt(), nxt()
        p_ilv = nxt()
        sc, sh = nxt(), nxt()
        v_m1 = pltpu.roll(v, 1, axis=0) * mask_m1           # x[m-1]; 0 at sequence starts
        v_p1 = pltpu.roll(v, m_in - 1, axis=0) * mask_p1    # x[m+1]; 0 at sequence ends
        y_e = swish(dot(bf(jnp.concatenate([v, v_m1], axis=-1)), w_e) * sc + sh)
        y_o = swish(dot(bf(jnp.concatenate([v_p1, v], axis=-1)), w_o) * sc + sh)
        y = jnp.concatenate([y_e, y_o], axis=0)             # phases stacked along rows
        return dot(p_ilv, bf(y))                            # exact even/odd row interleave

    m0 = batch_block * width
    x_g0 = conv1x1(x_ref[...])         # g0: 1x1              (m0,   128)
    x_g1 = down2(x_g0, m0)             # g1: stride 2         (m0/2, 128)
    x_g2 = down2(x_g1, m0 // 2)        # g2: stride 2         (m0/4, 128)
    x3 = down2(x_g2, m0 // 4)          # g3: stride 2         (m0/8, 128)
    x4 = up2(x3, m0 // 8)              # g4: transposed x2    (m0/4, 128)
    x5 = up2(x4 + x_g2, m0 // 4)       # g5: transposed x2    (m0/2, 128)
    x6 = up2(x5 + x_g1, m0 // 2)       # g6: transposed x2    (m0,   128)
    x7 = conv1x1(x6 + x_g0)            # g7: 1x1              (m0,   256)
    w_out, sh_out = nxt(), nxt()
    y = dot(bf(x7), w_out) + sh_out    # g : 1x1 + bias       (m0,   256) lane-dense
    out_ref[...] = jnp.clip(y, -1.0, 1.0)


# ----------------------------------------------------------------------------------------
# Wrapper.
# ----------------------------------------------------------------------------------------
def decoder_forward(params, x_nchw, *, shape, window, batch_block=None):
    batch, c_in, h, width = x_nchw.shape
    assert h == 1 and width % 8 == 0, "Decoder uses (1,k) kernels and 3 stride-2 stages"
    assert c_in == 128

    if batch_block is None:
        batch_block = batch
        for bb in range(1, batch + 1):             # smallest block with >=128 matmul rows
            if batch % bb == 0 and bb * width >= 128:
                batch_block = bb
                break
    assert batch % batch_block == 0
    assert (batch_block * width) % 64 == 0, "need sublane-aligned rows at the deepest stage"
    n_blocks = batch // batch_block
    m_blk = batch_block * width

    # NCHW -> (B*W, C); batch and width fold into the matmul M dimension.
    x2d = jnp.transpose(x_nchw[:, :, 0, :], (0, 2, 1)).reshape(batch * width, c_in)
    x2d = x2d.astype(jnp.bfloat16)

    c_final = params[-1]["shift"].shape[-1]        # true output channels (2 * dim)
    c_pad = _rup(c_final)

    # Flat input list in exactly the order the kernel consumes it.  Gather / interleave /
    # edge-mask constants depend only on (batch_block, width): built once at trace time.
    flat = [x2d]
    w_cur = width
    for p, kind in zip(params, _KINDS):
        co_p = _rup(p["shift"].shape[-1])
        sc = _pad_last(p["scale"], co_p)
        sh = _pad_last(p["shift"], co_p)
        if kind == "c1":
            flat += [p["w"], sc, sh]
        elif kind == "s2":
            flat += [_s2_gather(batch_block, w_cur), p["w_col"], sc, sh]
            w_cur //= 2
        elif kind == "t2":
            m_m1, m_p1 = _t2_edge_masks(batch_block, w_cur)
            flat += [p["w_even"], p["w_odd"], m_m1, m_p1,
                     _t2_interleave(batch_block, w_cur), sc, sh]
            w_cur *= 2
        else:                                      # "out": bias only, no BN / activation
            flat += [p["w"], sh]

    def const_spec(a):                             # weights / constants: resident, never move
        return pl.BlockSpec(a.shape, lambda i: (0, 0))

    in_specs = [pl.BlockSpec((m_blk, c_in), lambda i: (i, 0))]
    in_specs += [const_spec(a) for a in flat[1:]]
    out_specs = pl.BlockSpec((m_blk, c_pad), lambda i: (i, 0))

    y2d = pl.pallas_call(
        functools.partial(_decoder_kernel, batch_block=batch_block, width=width),
        out_shape=jax.ShapeDtypeStruct((batch * width, c_pad), jnp.float32),
        grid=(n_blocks,),
        in_specs=in_specs,
        out_specs=out_specs,
        compiler_params=pltpu.CompilerParams(dimension_semantics=("parallel",)),
    )(*flat)

    # Drop the lane padding, back to NCHW, then the torch split / channel regroup / einops
    # tail (pure data movement) in plain XLA outside the kernel.
    y = y2d[:, :c_final].reshape(batch, width, c_final)
    y = jnp.transpose(y, (0, 2, 1))[:, :, None, :]           # (B, 2*dim, 1, W)
    half = width // 2
    gf, pf = y[..., :half], y[..., half:]
    sw = shape * window

    def regroup(t):
        t = jnp.concatenate(jnp.split(t, sw, axis=1), axis=-2)   # (B, C/sw, sw, W/2)
        t = jnp.transpose(t, (0, 2, 3, 1))                       # b c h w -> b h w c
        return jnp.squeeze(t).astype(jnp.float32)

    return regroup(gf), regroup(pf)


if __name__ == "__main__":
    key = jax.random.PRNGKey(0)
    kp, kx = jax.random.split(key)
    batch, hop, width = 16, 32, 16       # channels: 128 -> 96/64/48/40/48/64/96/160 -> 130
    shape_cfg, window_cfg = 2, 1         # 130 channels regroup into 2 chunks of 65
    params = init_decoder_params(kp, hop)
    x = jax.random.normal(kx, (batch, 128, 1, width), jnp.float32)   # NCHW module input

    fwd = jax.jit(functools.partial(decoder_forward, shape=shape_cfg, window=window_cfg))
    s, p = jax.block_until_ready(fwd(params, x))

    dim = 4 * hop // 2 + 1
    expect = (batch, shape_cfg * window_cfg, width // 2,
              (2 * dim) // (shape_cfg * window_cfg))
    assert s.shape == expect and p.shape == expect, (s.shape, p.shape, expect)
    assert s.dtype == jnp.float32 and p.dtype == jnp.float32
    assert bool(jnp.all(jnp.isfinite(s))) and bool(jnp.all(jnp.isfinite(p)))
    assert float(jnp.max(jnp.abs(s))) <= 1.0 + 1e-3
    assert float(jnp.max(jnp.abs(p))) <= 1.0 + 1e-3
    assert float(jnp.max(jnp.abs(s))) > 0.0 and float(jnp.max(jnp.abs(p))) > 0.0
    print("KERNEL_OK")
</pallas_src>

<mosaic_0001>
module attributes {stable_mosaic.version = 11 : i64} {
  func.func @_decoder_kernel(%arg0: i32, %arg1: memref<128x128xbf16, #tpu.memory_space<vmem>>, %arg2: memref<128x128xbf16, #tpu.memory_space<vmem>>, %arg3: memref<1x128xf32, #tpu.memory_space<vmem>>, %arg4: memref<1x128xf32, #tpu.memory_space<vmem>>, %arg5: memref<192x128xbf16, #tpu.memory_space<vmem>>, %arg6: memref<384x128xbf16, #tpu.memory_space<vmem>>, %arg7: memref<1x128xf32, #tpu.memory_space<vmem>>, %arg8: memref<1x128xf32, #tpu.memory_space<vmem>>, %arg9: memref<96x64xbf16, #tpu.memory_space<vmem>>, %arg10: memref<384x128xbf16, #tpu.memory_space<vmem>>, %arg11: memref<1x128xf32, #tpu.memory_space<vmem>>, %arg12: memref<1x128xf32, #tpu.memory_space<vmem>>, %arg13: memref<48x32xbf16, #tpu.memory_space<vmem>>, %arg14: memref<384x128xbf16, #tpu.memory_space<vmem>>, %arg15: memref<1x128xf32, #tpu.memory_space<vmem>>, %arg16: memref<1x128xf32, #tpu.memory_space<vmem>>, %arg17: memref<256x128xbf16, #tpu.memory_space<vmem>>, %arg18: memref<256x128xbf16, #tpu.memory_space<vmem>>, %arg19: memref<16x1xf32, #tpu.memory_space<vmem>>, %arg20: memref<16x1xf32, #tpu.memory_space<vmem>>, %arg21: memref<32x32xbf16, #tpu.memory_space<vmem>>, %arg22: memref<1x128xf32, #tpu.memory_space<vmem>>, %arg23: memref<1x128xf32, #tpu.memory_space<vmem>>, %arg24: memref<256x128xbf16, #tpu.memory_space<vmem>>, %arg25: memref<256x128xbf16, #tpu.memory_space<vmem>>, %arg26: memref<32x1xf32, #tpu.memory_space<vmem>>, %arg27: memref<32x1xf32, #tpu.memory_space<vmem>>, %arg28: memref<64x64xbf16, #tpu.memory_space<vmem>>, %arg29: memref<1x128xf32, #tpu.memory_space<vmem>>, %arg30: memref<1x128xf32, #tpu.memory_space<vmem>>, %arg31: memref<256x128xbf16, #tpu.memory_space<vmem>>, %arg32: memref<256x128xbf16, #tpu.memory_space<vmem>>, %arg33: memref<64x1xf32, #tpu.memory_space<vmem>>, %arg34: memref<64x1xf32, #tpu.memory_space<vmem>>, %arg35: memref<128x128xbf16, #tpu.memory_space<vmem>>, %arg36: memref<1x128xf32, #tpu.memory_space<vmem>>, %arg37: memref<1x128xf32, #tpu.memory_space<vmem>>, %arg38: memref<128x256xbf16, #tpu.memory_space<vmem>>, %arg39: memref<1x256xf32, #tpu.memory_space<vmem>>, %arg40: memref<1x256xf32, #tpu.memory_space<vmem>>, %arg41: memref<256x256xbf16, #tpu.memory_space<vmem>>, %arg42: memref<1x256xf32, #tpu.memory_space<vmem>>, %arg43: memref<128x256xf32, #tpu.memory_space<vmem>>) attributes {dimension_semantics = [#tpu.dimension_semantics<parallel>], iteration_bounds = array<i64: 2>, scalar_prefetch = 0 : i64, scratch_operands = 0 : i64, tpu.core_type = #tpu.core_type<tc>, window_params = [{transform_indices = @transform_0, window_bounds = array<i64: 128, 128>}, {pipeline_mode = #tpu.pipeline_mode<synchronous>, transform_indices = @transform_1, window_bounds = array<i64: 128, 128>}, {pipeline_mode = #tpu.pipeline_mode<synchronous>, transform_indices = @transform_2, window_bounds = array<i64: 1, 128>}, {pipeline_mode = #tpu.pipeline_mode<synchronous>, transform_indices = @transform_3, window_bounds = array<i64: 1, 128>}, {pipeline_mode = #tpu.pipeline_mode<synchronous>, transform_indices = @transform_4, window_bounds = array<i64: 192, 128>}, {pipeline_mode = #tpu.pipeline_mode<synchronous>, transform_indices = @transform_5, window_bounds = array<i64: 384, 128>}, {pipeline_mode = #tpu.pipeline_mode<synchronous>, transform_indices = @transform_6, window_bounds = array<i64: 1, 128>}, {pipeline_mode = #tpu.pipeline_mode<synchronous>, transform_indices = @transform_7, window_bounds = array<i64: 1, 128>}, {pipeline_mode = #tpu.pipeline_mode<synchronous>, transform_indices = @transform_8, window_bounds = array<i64: 96, 64>}, {pipeline_mode = #tpu.pipeline_mode<synchronous>, transform_indices = @transform_9, window_bounds = array<i64: 384, 128>}, {pipeline_mode = #tpu.pipeline_mode<synchronous>, transform_indices = @transform_10, window_bounds = array<i64: 1, 128>}, {pipeline_mode = #tpu.pipeline_mode<synchronous>, transform_indices = @transform_11, window_bounds = array<i64: 1, 128>}, {pipeline_mode = #tpu.pipeline_mode<synchronous>, transform_indices = @transform_12, window_bounds = array<i64: 48, 32>}, {pipeline_mode = #tpu.pipeline_mode<synchronous>, transform_indices = @transform_13, window_bounds = array<i64: 384, 128>}, {pipeline_mode = #tpu.pipeline_mode<synchronous>, transform_indices = @transform_14, window_bounds = array<i64: 1, 128>}, {pipeline_mode = #tpu.pipeline_mode<synchronous>, transform_indices = @transform_15, window_bounds = array<i64: 1, 128>}, {pipeline_mode = #tpu.pipeline_mode<synchronous>, transform_indices = @transform_16, window_bounds = array<i64: 256, 128>}, {pipeline_mode = #tpu.pipeline_mode<synchronous>, transform_indices = @transform_17, window_bounds = array<i64: 256, 128>}, {pipeline_mode = #tpu.pipeline_mode<synchronous>, transform_indices = @transform_18, window_bounds = array<i64: 16, 1>}, {pipeline_mode = #tpu.pipeline_mode<synchronous>, transform_indices = @transform_19, window_bounds = array<i64: 16, 1>}, {pipeline_mode = #tpu.pipeline_mode<synchronous>, transform_indices = @transform_20, window_bounds = array<i64: 32, 32>}, {pipeline_mode = #tpu.pipeline_mode<synchronous>, transform_indices = @transform_21, window_bounds = array<i64: 1, 128>}, {pipeline_mode = #tpu.pipeline_mode<synchronous>, transform_indices = @transform_22, window_bounds = array<i64: 1, 128>}, {pipeline_mode = #tpu.pipeline_mode<synchronous>, transform_indices = @transform_23, window_bounds = array<i64: 256, 128>}, {pipeline_mode = #tpu.pipeline_mode<synchronous>, transform_indices = @transform_24, window_bounds = array<i64: 256, 128>}, {pipeline_mode = #tpu.pipeline_mode<synchronous>, transform_indices = @transform_25, window_bounds = array<i64: 32, 1>}, {pipeline_mode = #tpu.pipeline_mode<synchronous>, transform_indices = @transform_26, window_bounds = array<i64: 32, 1>}, {pipeline_mode = #tpu.pipeline_mode<synchronous>, transform_indices = @transform_27, window_bounds = array<i64: 64, 64>}, {pipeline_mode = #tpu.pipeline_mode<synchronous>, transform_indices = @transform_28, window_bounds = array<i64: 1, 128>}, {pipeline_mode = #tpu.pipeline_mode<synchronous>, transform_indices = @transform_29, window_bounds = array<i64: 1, 128>}, {pipeline_mode = #tpu.pipeline_mode<synchronous>, transform_indices = @transform_30, window_bounds = array<i64: 256, 128>}, {pipeline_mode = #tpu.pipeline_mode<synchronous>, transform_indices = @transform_31, window_bounds = array<i64: 256, 128>}, {pipeline_mode = #tpu.pipeline_mode<synchronous>, transform_indices = @transform_32, window_bounds = array<i64: 64, 1>}, {pipeline_mode = #tpu.pipeline_mode<synchronous>, transform_indices = @transform_33, window_bounds = array<i64: 64, 1>}, {pipeline_mode = #tpu.pipeline_mode<synchronous>, transform_indices = @transform_34, window_bounds = array<i64: 128, 128>}, {pipeline_mode = #tpu.pipeline_mode<synchronous>, transform_indices = @transform_35, window_bounds = array<i64: 1, 128>}, {pipeline_mode = #tpu.pipeline_mode<synchronous>, transform_indices = @transform_36, window_bounds = array<i64: 1, 128>}, {pipeline_mode = #tpu.pipeline_mode<synchronous>, transform_indices = @transform_37, window_bounds = array<i64: 128, 256>}, {pipeline_mode = #tpu.pipeline_mode<synchronous>, transform_indices = @transform_38, window_bounds = array<i64: 1, 256>}, {pipeline_mode = #tpu.pipeline_mode<synchronous>, transform_indices = @transform_39, window_bounds = array<i64: 1, 256>}, {pipeline_mode = #tpu.pipeline_mode<synchronous>, transform_indices = @transform_40, window_bounds = array<i64: 256, 256>}, {pipeline_mode = #tpu.pipeline_mode<synchronous>, transform_indices = @transform_41, window_bounds = array<i64: 1, 256>}, {transform_indices = @transform_42, window_bounds = array<i64: 128, 256>}]} {
    %c0 = arith.constant 0 : index
    %c0_0 = arith.constant 0 : index
    %0 = vector.load %arg1[%c0, %c0_0] : memref<128x128xbf16, #tpu.memory_space<vmem>>, vector<128x128xbf16>
    %c0_1 = arith.constant 0 : index
    %c0_2 = arith.constant 0 : index
    %1 = vector.load %arg2[%c0_1, %c0_2] : memref<128x128xbf16, #tpu.memory_space<vmem>>, vector<128x128xbf16>
    %c0_3 = arith.constant 0 : index
    %c0_4 = arith.constant 0 : index
    %2 = vector.load %arg3[%c0_3, %c0_4] : memref<1x128xf32, #tpu.memory_space<vmem>>, vector<1x128xf32>
    %c0_5 = arith.constant 0 : index
    %c0_6 = arith.constant 0 : index
    %3 = vector.load %arg4[%c0_5, %c0_6] : memref<1x128xf32, #tpu.memory_space<vmem>>, vector<1x128xf32>
    %cst = arith.constant dense<0.000000e+00> : vector<128x128xf32>
    %4 = tpu.matmul %0, %1, %cst {dimension_numbers = #tpu.dot_dimension_numbers<[1], [0], [0], [1], [0, 0, 1, 1], [], []>} : vector<128x128xbf16>, vector<128x128xbf16>, vector<128x128xf32> -> vector<128x128xf32>
    %5 = vector.broadcast %2 : vector<1x128xf32> to vector<128x128xf32>
    %6 = arith.mulf %4, %5 : vector<128x128xf32>
    %7 = vector.broadcast %3 : vector<1x128xf32> to vector<128x128xf32>
    %8 = arith.addf %6, %7 : vector<128x128xf32>
    %cst_7 = arith.constant 0.000000e+00 : f32
    %9 = vector.broadcast %cst_7 : f32 to vector<128x128xf32>
    %10 = arith.subf %9, %8 : vector<128x128xf32>
    %11 = math.exp %10 : vector<128x128xf32>
    %cst_8 = arith.constant 1.000000e+00 : f32
    %12 = vector.broadcast %cst_8 : f32 to vector<128x128xf32>
    %13 = arith.addf %12, %11 : vector<128x128xf32>
    %14 = tpu.reciprocal %13 {approx = true} : vector<128x128xf32> -> vector<128x128xf32>
    %15 = arith.mulf %8, %14 : vector<128x128xf32>
    %c0_9 = arith.constant 0 : index
    %c0_10 = arith.constant 0 : index
    %16 = vector.load %arg5[%c0_9, %c0_10] : memref<192x128xbf16, #tpu.memory_space<vmem>>, vector<192x128xbf16>
    %c0_11 = arith.constant 0 : index
    %c0_12 = arith.constant 0 : index
    %17 = vector.load %arg6[%c0_11, %c0_12] : memref<384x128xbf16, #tpu.memory_space<vmem>>, vector<384x128xbf16>
    %c0_13 = arith.constant 0 : index
    %c0_14 = arith.constant 0 : index
    %18 = vector.load %arg7[%c0_13, %c0_14] : memref<1x128xf32, #tpu.memory_space<vmem>>, vector<1x128xf32>
    %c0_15 = arith.constant 0 : index
    %c0_16 = arith.constant 0 : index
    %19 = vector.load %arg8[%c0_15, %c0_16] : memref<1x128xf32, #tpu.memory_space<vmem>>, vector<1x128xf32>
    %20 = arith.truncf %15 : vector<128x128xf32> to vector<128x128xbf16>
    %cst_17 = arith.constant dense<0.000000e+00> : vector<192x128xf32>
    %21 = tpu.matmul %16, %20, %cst_17 {dimension_numbers = #tpu.dot_dimension_numbers<[1], [0], [0], [1], [0, 0, 1, 1], [], []>} : vector<192x128xbf16>, vector<128x128xbf16>, vector<192x128xf32> -> vector<192x128xf32>
    %22 = vector.extract_strided_slice %21 {offsets = [0, 0], sizes = [64, 128], strides = [1, 1]} : vector<192x128xf32> to vector<64x128xf32>
    %23 = vector.extract_strided_slice %21 {offsets = [64, 0], sizes = [64, 128], strides = [1, 1]} : vector<192x128xf32> to vector<64x128xf32>
    %24 = vector.extract_strided_slice %21 {offsets = [128, 0], sizes = [64, 128], strides = [1, 1]} : vector<192x128xf32> to vector<64x128xf32>
    %25 = tpu.concatenate %22, %23, %24 in 1 : vector<64x128xf32>, vector<64x128xf32>, vector<64x128xf32> -> vector<64x384xf32>
    %26 = arith.truncf %25 : vector<64x384xf32> to vector<64x384xbf16>
    %cst_18 = arith.constant dense<0.000000e+00> : vector<64x128xf32>
    %27 = tpu.matmul %26, %17, %cst_18 {dimension_numbers = #tpu.dot_dimension_numbers<[1], [0], [0], [1], [0, 0, 1, 1], [], []>} : vector<64x384xbf16>, vector<384x128xbf16>, vector<64x128xf32> -> vector<64x128xf32>
    %28 = vector.broadcast %18 : vector<1x128xf32> to vector<64x128xf32>
    %29 = arith.mulf %27, %28 : vector<64x128xf32>
    %30 = vector.broadcast %19 : vector<1x128xf32> to vector<64x128xf32>
    %31 = arith.addf %29, %30 : vector<64x128xf32>
    %cst_19 = arith.constant 0.000000e+00 : f32
    %32 = vector.broadcast %cst_19 : f32 to vector<64x128xf32>
    %33 = arith.subf %32, %31 : vector<64x128xf32>
    %34 = math.exp %33 : vector<64x128xf32>
    %cst_20 = arith.constant 1.000000e+00 : f32
    %35 = vector.broadcast %cst_20 : f32 to vector<64x128xf32>
    %36 = arith.addf %35, %34 : vector<64x128xf32>
    %37 = tpu.reciprocal %36 {approx = true} : vector<64x128xf32> -> vector<64x128xf32>
    %38 = arith.mulf %31, %37 : vector<64x128xf32>
    %c0_21 = arith.constant 0 : index
    %c0_22 = arith.constant 0 : index
    %39 = vector.load %arg9[%c0_21, %c0_22] : memref<96x64xbf16, #tpu.memory_space<vmem>>, vector<96x64xbf16>
    %c0_23 = arith.constant 0 : index
    %c0_24 = arith.constant 0 : index
    %40 = vector.load %arg10[%c0_23, %c0_24] : memref<384x128xbf16, #tpu.memory_space<vmem>>, vector<384x128xbf16>
    %c0_25 = arith.constant 0 : index
    %c0_26 = arith.constant 0 : index
    %41 = vector.load %arg11[%c0_25, %c0_26] : memref<1x128xf32, #tpu.memory_space<vmem>>, vector<1x128xf32>
    %c0_27 = arith.constant 0 : index
    %c0_28 = arith.constant 0 : index
    %42 = vector.load %arg12[%c0_27, %c0_28] : memref<1x128xf32, #tpu.memory_space<vmem>>, vector<1x128xf32>
    %43 = arith.truncf %38 : vector<64x128xf32> to vector<64x128xbf16>
    %cst_29 = arith.constant dense<0.000000e+00> : vector<96x128xf32>
    %44 = tpu.matmul %39, %43, %cst_29 {dimension_numbers = #tpu.dot_dimension_numbers<[1], [0], [0], [1], [0, 0, 1, 1], [], []>} : vector<96x64xbf16>, vector<64x128xbf16>, vector<96x128xf32> -> vector<96x128xf32>
    %45 = vector.extract_strided_slice %44 {offsets = [0, 0], sizes = [32, 128], strides = [1, 1]} : vector<96x128xf32> to vector<32x128xf32>
    %46 = vector.extract_strided_slice %44 {offsets = [32, 0], sizes = [32, 128], strides = [1, 1]} : vector<96x128xf32> to vector<32x128xf32>
    %47 = vector.extract_strided_slice %44 {offsets = [64, 0], sizes = [32, 128], strides = [1, 1]} : vector<96x128xf32> to vector<32x128xf32>
    %48 = tpu.concatenate %45, %46, %47 in 1 : vector<32x128xf32>, vector<32x128xf32>, vector<32x128xf32> -> vector<32x384xf32>
    %49 = arith.truncf %48 : vector<32x384xf32> to vector<32x384xbf16>
    %cst_30 = arith.constant dense<0.000000e+00> : vector<32x128xf32>
    %50 = tpu.matmul %49, %40, %cst_30 {dimension_numbers = #tpu.dot_dimension_numbers<[1], [0], [0], [1], [0, 0, 1, 1], [], []>} : vector<32x384xbf16>, vector<384x128xbf16>, vector<32x128xf32> -> vector<32x128xf32>
    %51 = vector.broadcast %41 : vector<1x128xf32> to vector<32x128xf32>
    %52 = arith.mulf %50, %51 : vector<32x128xf32>
    %53 = vector.broadcast %42 : vector<1x128xf32> to vector<32x128xf32>
    %54 = arith.addf %52, %53 : vector<32x128xf32>
    %cst_31 = arith.constant 0.000000e+00 : f32
    %55 = vector.broadcast %cst_31 : f32 to vector<32x128xf32>
    %56 = arith.subf %55, %54 : vector<32x128xf32>
    %57 = math.exp %56 : vector<32x128xf32>
    %cst_32 = arith.constant 1.000000e+00 : f32
    %58 = vector.broadcast %cst_32 : f32 to vector<32x128xf32>
    %59 = arith.addf %58, %57 : vector<32x128xf32>
    %60 = tpu.reciprocal %59 {approx = true} : vector<32x128xf32> -> vector<32x128xf32>
    %61 = arith.mulf %54, %60 : vector<32x128xf32>
    %c0_33 = arith.constant 0 : index
    %c0_34 = arith.constant 0 : index
    %62 = vector.load %arg13[%c0_33, %c0_34] : memref<48x32xbf16, #tpu.memory_space<vmem>>, vector<48x32xbf16>
    %c0_35 = arith.constant 0 : index
    %c0_36 = arith.constant 0 : index
    %63 = vector.load %arg14[%c0_35, %c0_36] : memref<384x128xbf16, #tpu.memory_space<vmem>>, vector<384x128xbf16>
    %c0_37 = arith.constant 0 : index
    %c0_38 = arith.constant 0 : index
    %64 = vector.load %arg15[%c0_37, %c0_38] : memref<1x128xf32, #tpu.memory_space<vmem>>, vector<1x128xf32>
    %c0_39 = arith.constant 0 : index
    %c0_40 = arith.constant 0 : index
    %65 = vector.load %arg16[%c0_39, %c0_40] : memref<1x128xf32, #tpu.memory_space<vmem>>, vector<1x128xf32>
    %66 = arith.truncf %61 : vector<32x128xf32> to vector<32x128xbf16>
    %cst_41 = arith.constant dense<0.000000e+00> : vector<48x128xf32>
    %67 = tpu.matmul %62, %66, %cst_41 {dimension_numbers = #tpu.dot_dimension_numbers<[1], [0], [0], [1], [0, 0, 1, 1], [], []>} : vector<48x32xbf16>, vector<32x128xbf16>, vector<48x128xf32> -> vector<48x128xf32>
    %68 = vector.extract_strided_slice %67 {offsets = [0, 0], sizes = [16, 128], strides = [1, 1]} : vector<48x128xf32> to vector<16x128xf32>
    %69 = vector.extract_strided_slice %67 {offsets = [16, 0], sizes = [16, 128], strides = [1, 1]} : vector<48x128xf32> to vector<16x128xf32>
    %70 = vector.extract_strided_slice %67 {offsets = [32, 0], sizes = [16, 128], strides = [1, 1]} : vector<48x128xf32> to vector<16x128xf32>
    %71 = tpu.concatenate %68, %69, %70 in 1 : vector<16x128xf32>, vector<16x128xf32>, vector<16x128xf32> -> vector<16x384xf32>
    %72 = arith.truncf %71 : vector<16x384xf32> to vector<16x384xbf16>
    %cst_42 = arith.constant dense<0.000000e+00> : vector<16x128xf32>
    %73 = tpu.matmul %72, %63, %cst_42 {dimension_numbers = #tpu.dot_dimension_numbers<[1], [0], [0], [1], [0, 0, 1, 1], [], []>} : vector<16x384xbf16>, vector<384x128xbf16>, vector<16x128xf32> -> vector<16x128xf32>
    %74 = vector.broadcast %64 : vector<1x128xf32> to vector<16x128xf32>
    %75 = arith.mulf %73, %74 : vector<16x128xf32>
    %76 = vector.broadcast %65 : vector<1x128xf32> to vector<16x128xf32>
    %77 = arith.addf %75, %76 : vector<16x128xf32>
    %cst_43 = arith.constant 0.000000e+00 : f32
    %78 = vector.broadcast %cst_43 : f32 to vector<16x128xf32>
    %79 = arith.subf %78, %77 : vector<16x128xf32>
    %80 = math.exp %79 : vector<16x128xf32>
    %cst_44 = arith.constant 1.000000e+00 : f32
    %81 = vector.broadcast %cst_44 : f32 to vector<16x128xf32>
    %82 = arith.addf %81, %80 : vector<16x128xf32>
    %83 = tpu.reciprocal %82 {approx = true} : vector<16x128xf32> -> vector<16x128xf32>
    %84 = arith.mulf %77, %83 : vector<16x128xf32>
    %c0_45 = arith.constant 0 : index
    %c0_46 = arith.constant 0 : index
    %85 = vector.load %arg17[%c0_45, %c0_46] : memref<256x128xbf16, #tpu.memory_space<vmem>>, vector<256x128xbf16>
    %c0_47 = arith.constant 0 : index
    %c0_48 = arith.constant 0 : index
    %86 = vector.load %arg18[%c0_47, %c0_48] : memref<256x128xbf16, #tpu.memory_space<vmem>>, vector<256x128xbf16>
    %c0_49 = arith.constant 0 : index
    %c0_50 = arith.constant 0 : index
    %87 = vector.load %arg19[%c0_49, %c0_50] : memref<16x1xf32, #tpu.memory_space<vmem>>, vector<16x1xf32>
    %c0_51 = arith.constant 0 : index
    %c0_52 = arith.constant 0 : index
    %88 = vector.load %arg20[%c0_51, %c0_52] : memref<16x1xf32, #tpu.memory_space<vmem>>, vector<16x1xf32>
    %c0_53 = arith.constant 0 : index
    %c0_54 = arith.constant 0 : index
    %89 = vector.load %arg21[%c0_53, %c0_54] : memref<32x32xbf16, #tpu.memory_space<vmem>>, vector<32x32xbf16>
    %c0_55 = arith.constant 0 : index
    %c0_56 = arith.constant 0 : index
    %90 = vector.load %arg22[%c0_55, %c0_56] : memref<1x128xf32, #tpu.memory_space<vmem>>, vector<1x128xf32>
    %c0_57 = arith.constant 0 : index
    %c0_58 = arith.constant 0 : index
    %91 = vector.load %arg23[%c0_57, %c0_58] : memref<1x128xf32, #tpu.memory_space<vmem>>, vector<1x128xf32>
    %c1_i32 = arith.constant 1 : i32
    %92 = tpu.dynamic_rotate %84 by %c1_i32 dim 0 : vector<16x128xf32>, i32 -> vector<16x128xf32>
    %93 = vector.broadcast %87 : vector<16x1xf32> to vector<16x128xf32>
    %94 = arith.mulf %92, %93 : vector<16x128xf32>
    %c15_i32 = arith.constant 15 : i32
    %95 = tpu.dynamic_rotate %84 by %c15_i32 dim 0 : vector<16x128xf32>, i32 -> vector<16x128xf32>
    %96 = vector.broadcast %88 : vector<16x1xf32> to vector<16x128xf32>
    %97 = arith.mulf %95, %96 : vector<16x128xf32>
    %98 = tpu.concatenate %84, %94 in 1 : vector<16x128xf32>, vector<16x128xf32> -> vector<16x256xf32>
    %99 = arith.truncf %98 : vector<16x256xf32> to vector<16x256xbf16>
    %cst_59 = arith.constant dense<0.000000e+00> : vector<16x128xf32>
    %100 = tpu.matmul %99, %85, %cst_59 {dimension_numbers = #tpu.dot_dimension_numbers<[1], [0], [0], [1], [0, 0, 1, 1], [], []>} : vector<16x256xbf16>, vector<256x128xbf16>, vector<16x128xf32> -> vector<16x128xf32>
    %101 = vector.broadcast %90 : vector<1x128xf32> to vector<16x128xf32>
    %102 = arith.mulf %100, %101 : vector<16x128xf32>
    %103 = vector.broadcast %91 : vector<1x128xf32> to vector<16x128xf32>
    %104 = arith.addf %102, %103 : vector<16x128xf32>
    %cst_60 = arith.constant 0.000000e+00 : f32
    %105 = vector.broadcast %cst_60 : f32 to vector<16x128xf32>
    %106 = arith.subf %105, %104 : vector<16x128xf32>
    %107 = math.exp %106 : vector<16x128xf32>
    %cst_61 = arith.constant 1.000000e+00 : f32
    %108 = vector.broadcast %cst_61 : f32 to vector<16x128xf32>
    %109 = arith.addf %108, %107 : vector<16x128xf32>
    %110 = tpu.reciprocal %109 {approx = true} : vector<16x128xf32> -> vector<16x128xf32>
    %111 = arith.mulf %104, %110 : vector<16x128xf32>
    %112 = tpu.concatenate %97, %84 in 1 : vector<16x128xf32>, vector<16x128xf32> -> vector<16x256xf32>
    %113 = arith.truncf %112 : vector<16x256xf32> to vector<16x256xbf16>
    %cst_62 = arith.constant dense<0.000000e+00> : vector<16x128xf32>
    %114 = tpu.matmul %113, %86, %cst_62 {dimension_numbers = #tpu.dot_dimension_numbers<[1], [0], [0], [1], [0, 0, 1, 1], [], []>} : vector<16x256xbf16>, vector<256x128xbf16>, vector<16x128xf32> -> vector<16x128xf32>
    %115 = vector.broadcast %90 : vector<1x128xf32> to vector<16x128xf32>
    %116 = arith.mulf %114, %115 : vector<16x128xf32>
    %117 = vector.broadcast %91 : vector<1x128xf32> to vector<16x128xf32>
    %118 = arith.addf %116, %117 : vector<16x128xf32>
    %cst_63 = arith.constant 0.000000e+00 : f32
    %119 = vector.broadcast %cst_63 : f32 to vector<16x128xf32>
    %120 = arith.subf %119, %118 : vector<16x128xf32>
    %121 = math.exp %120 : vector<16x128xf32>
    %cst_64 = arith.constant 1.000000e+00 : f32
    %122 = vector.broadcast %cst_64 : f32 to vector<16x128xf32>
    %123 = arith.addf %122, %121 : vector<16x128xf32>
    %124 = tpu.reciprocal %123 {approx = true} : vector<16x128xf32> -> vector<16x128xf32>
    %125 = arith.mulf %118, %124 : vector<16x128xf32>
    %126 = tpu.concatenate %111, %125 in 0 : vector<16x128xf32>, vector<16x128xf32> -> vector<32x128xf32>
    %127 = arith.truncf %126 : vector<32x128xf32> to vector<32x128xbf16>
    %cst_65 = arith.constant dense<0.000000e+00> : vector<32x128xf32>
    %128 = tpu.matmul %89, %127, %cst_65 {dimension_numbers = #tpu.dot_dimension_numbers<[1], [0], [0], [1], [0, 0, 1, 1], [], []>} : vector<32x32xbf16>, vector<32x128xbf16>, vector<32x128xf32> -> vector<32x128xf32>
    %129 = arith.addf %128, %61 : vector<32x128xf32>
    %c0_66 = arith.constant 0 : index
    %c0_67 = arith.constant 0 : index
    %130 = vector.load %arg24[%c0_66, %c0_67] : memref<256x128xbf16, #tpu.memory_space<vmem>>, vector<256x128xbf16>
    %c0_68 = arith.constant 0 : index
    %c0_69 = arith.constant 0 : index
    %131 = vector.load %arg25[%c0_68, %c0_69] : memref<256x128xbf16, #tpu.memory_space<vmem>>, vector<256x128xbf16>
    %c0_70 = arith.constant 0 : index
    %c0_71 = arith.constant 0 : index
    %132 = vector.load %arg26[%c0_70, %c0_71] : memref<32x1xf32, #tpu.memory_space<vmem>>, vector<32x1xf32>
    %c0_72 = arith.constant 0 : index
    %c0_73 = arith.constant 0 : index
    %133 = vector.load %arg27[%c0_72, %c0_73] : memref<32x1xf32, #tpu.memory_space<vmem>>, vector<32x1xf32>
    %c0_74 = arith.constant 0 : index
    %c0_75 = arith.constant 0 : index
    %134 = vector.load %arg28[%c0_74, %c0_75] : memref<64x64xbf16, #tpu.memory_space<vmem>>, vector<64x64xbf16>
    %c0_76 = arith.constant 0 : index
    %c0_77 = arith.constant 0 : index
    %135 = vector.load %arg29[%c0_76, %c0_77] : memref<1x128xf32, #tpu.memory_space<vmem>>, vector<1x128xf32>
    %c0_78 = arith.constant 0 : index
    %c0_79 = arith.constant 0 : index
    %136 = vector.load %arg30[%c0_78, %c0_79] : memref<1x128xf32, #tpu.memory_space<vmem>>, vector<1x128xf32>
    %c1_i32_80 = arith.constant 1 : i32
    %137 = tpu.dynamic_rotate %129 by %c1_i32_80 dim 0 : vector<32x128xf32>, i32 -> vector<32x128xf32>
    %138 = vector.broadcast %132 : vector<32x1xf32> to vector<32x128xf32>
    %139 = arith.mulf %137, %138 : vector<32x128xf32>
    %c31_i32 = arith.constant 31 : i32
    %140 = tpu.dynamic_rotate %129 by %c31_i32 dim 0 : vector<32x128xf32>, i32 -> vector<32x128xf32>
    %141 = vector.broadcast %133 : vector<32x1xf32> to vector<32x128xf32>
    %142 = arith.mulf %140, %141 : vector<32x128xf32>
    %143 = tpu.concatenate %129, %139 in 1 : vector<32x128xf32>, vector<32x128xf32> -> vector<32x256xf32>
    %144 = arith.truncf %143 : vector<32x256xf32> to vector<32x256xbf16>
    %cst_81 = arith.constant dense<0.000000e+00> : vector<32x128xf32>
    %145 = tpu.matmul %144, %130, %cst_81 {dimension_numbers = #tpu.dot_dimension_numbers<[1], [0], [0], [1], [0, 0, 1, 1], [], []>} : vector<32x256xbf16>, vector<256x128xbf16>, vector<32x128xf32> -> vector<32x128xf32>
    %146 = vector.broadcast %135 : vector<1x128xf32> to vector<32x128xf32>
    %147 = arith.mulf %145, %146 : vector<32x128xf32>
    %148 = vector.broadcast %136 : vector<1x128xf32> to vector<32x128xf32>
    %149 = arith.addf %147, %148 : vector<32x128xf32>
    %cst_82 = arith.constant 0.000000e+00 : f32
    %150 = vector.broadcast %cst_82 : f32 to vector<32x128xf32>
    %151 = arith.subf %150, %149 : vector<32x128xf32>
    %152 = math.exp %151 : vector<32x128xf32>
    %cst_83 = arith.constant 1.000000e+00 : f32
    %153 = vector.broadcast %cst_83 : f32 to vector<32x128xf32>
    %154 = arith.addf %153, %152 : vector<32x128xf32>
    %155 = tpu.reciprocal %154 {approx = true} : vector<32x128xf32> -> vector<32x128xf32>
    %156 = arith.mulf %149, %155 : vector<32x128xf32>
    %157 = tpu.concatenate %142, %129 in 1 : vector<32x128xf32>, vector<32x128xf32> -> vector<32x256xf32>
    %158 = arith.truncf %157 : vector<32x256xf32> to vector<32x256xbf16>
    %cst_84 = arith.constant dense<0.000000e+00> : vector<32x128xf32>
    %159 = tpu.matmul %158, %131, %cst_84 {dimension_numbers = #tpu.dot_dimension_numbers<[1], [0], [0], [1], [0, 0, 1, 1], [], []>} : vector<32x256xbf16>, vector<256x128xbf16>, vector<32x128xf32> -> vector<32x128xf32>
    %160 = vector.broadcast %135 : vector<1x128xf32> to vector<32x128xf32>
    %161 = arith.mulf %159, %160 : vector<32x128xf32>
    %162 = vector.broadcast %136 : vector<1x128xf32> to vector<32x128xf32>
    %163 = arith.addf %161, %162 : vector<32x128xf32>
    %cst_85 = arith.constant 0.000000e+00 : f32
    %164 = vector.broadcast %cst_85 : f32 to vector<32x128xf32>
    %165 = arith.subf %164, %163 : vector<32x128xf32>
    %166 = math.exp %165 : vector<32x128xf32>
    %cst_86 = arith.constant 1.000000e+00 : f32
    %167 = vector.broadcast %cst_86 : f32 to vector<32x128xf32>
    %168 = arith.addf %167, %166 : vector<32x128xf32>
    %169 = tpu.reciprocal %168 {approx = true} : vector<32x128xf32> -> vector<32x128xf32>
    %170 = arith.mulf %163, %169 : vector<32x128xf32>
    %171 = tpu.concatenate %156, %170 in 0 : vector<32x128xf32>, vector<32x128xf32> -> vector<64x128xf32>
    %172 = arith.truncf %171 : vector<64x128xf32> to vector<64x128xbf16>
    %cst_87 = arith.constant dense<0.000000e+00> : vector<64x128xf32>
    %173 = tpu.matmul %134, %172, %cst_87 {dimension_numbers = #tpu.dot_dimension_numbers<[1], [0], [0], [1], [0, 0, 1, 1], [], []>} : vector<64x64xbf16>, vector<64x128xbf16>, vector<64x128xf32> -> vector<64x128xf32>
    %174 = arith.addf %173, %38 : vector<64x128xf32>
    %c0_88 = arith.constant 0 : index
    %c0_89 = arith.constant 0 : index
    %175 = vector.load %arg31[%c0_88, %c0_89] : memref<256x128xbf16, #tpu.memory_space<vmem>>, vector<256x128xbf16>
    %c0_90 = arith.constant 0 : index
    %c0_91 = arith.constant 0 : index
    %176 = vector.load %arg32[%c0_90, %c0_91] : memref<256x128xbf16, #tpu.memory_space<vmem>>, vector<256x128xbf16>
    %c0_92 = arith.constant 0 : index
    %c0_93 = arith.constant 0 : index
    %177 = vector.load %arg33[%c0_92, %c0_93] : memref<64x1xf32, #tpu.memory_space<vmem>>, vector<64x1xf32>
    %c0_94 = arith.constant 0 : index
    %c0_95 = arith.constant 0 : index
    %178 = vector.load %arg34[%c0_94, %c0_95] : memref<64x1xf32, #tpu.memory_space<vmem>>, vector<64x1xf32>
    %c0_96 = arith.constant 0 : index
    %c0_97 = arith.constant 0 : index
    %179 = vector.load %arg35[%c0_96, %c0_97] : memref<128x128xbf16, #tpu.memory_space<vmem>>, vector<128x128xbf16>
    %c0_98 = arith.constant 0 : index
    %c0_99 = arith.constant 0 : index
    %180 = vector.load %arg36[%c0_98, %c0_99] : memref<1x128xf32, #tpu.memory_space<vmem>>, vector<1x128xf32>
    %c0_100 = arith.constant 0 : index
    %c0_101 = arith.constant 0 : index
    %181 = vector.load %arg37[%c0_100, %c0_101] : memref<1x128xf32, #tpu.memory_space<vmem>>, vector<1x128xf32>
    %c1_i32_102 = arith.constant 1 : i32
    %182 = tpu.dynamic_rotate %174 by %c1_i32_102 dim 0 : vector<64x128xf32>, i32 -> vector<64x128xf32>
    %183 = vector.broadcast %177 : vector<64x1xf32> to vector<64x128xf32>
    %184 = arith.mulf %182, %183 : vector<64x128xf32>
    %c63_i32 = arith.constant 63 : i32
    %185 = tpu.dynamic_rotate %174 by %c63_i32 dim 0 : vector<64x128xf32>, i32 -> vector<64x128xf32>
    %186 = vector.broadcast %178 : vector<64x1xf32> to vector<64x128xf32>
    %187 = arith.mulf %185, %186 : vector<64x128xf32>
    %188 = tpu.concatenate %174, %184 in 1 : vector<64x128xf32>, vector<64x128xf32> -> vector<64x256xf32>
    %189 = arith.truncf %188 : vector<64x256xf32> to vector<64x256xbf16>
    %cst_103 = arith.constant dense<0.000000e+00> : vector<64x128xf32>
    %190 = tpu.matmul %189, %175, %cst_103 {dimension_numbers = #tpu.dot_dimension_numbers<[1], [0], [0], [1], [0, 0, 1, 1], [], []>} : vector<64x256xbf16>, vector<256x128xbf16>, vector<64x128xf32> -> vector<64x128xf32>
    %191 = vector.broadcast %180 : vector<1x128xf32> to vector<64x128xf32>
    %192 = arith.mulf %190, %191 : vector<64x128xf32>
    %193 = vector.broadcast %181 : vector<1x128xf32> to vector<64x128xf32>
    %194 = arith.addf %192, %193 : vector<64x128xf32>
    %cst_104 = arith.constant 0.000000e+00 : f32
    %195 = vector.broadcast %cst_104 : f32 to vector<64x128xf32>
    %196 = arith.subf %195, %194 : vector<64x128xf32>
    %197 = math.exp %196 : vector<64x128xf32>
    %cst_105 = arith.constant 1.000000e+00 : f32
    %198 = vector.broadcast %cst_105 : f32 to vector<64x128xf32>
    %199 = arith.addf %198, %197 : vector<64x128xf32>
    %200 = tpu.reciprocal %199 {approx = true} : vector<64x128xf32> -> vector<64x128xf32>
    %201 = arith.mulf %194, %200 : vector<64x128xf32>
    %202 = tpu.concatenate %187, %174 in 1 : vector<64x128xf32>, vector<64x128xf32> -> vector<64x256xf32>
    %203 = arith.truncf %202 : vector<64x256xf32> to vector<64x256xbf16>
    %cst_106 = arith.constant dense<0.000000e+00> : vector<64x128xf32>
    %204 = tpu.matmul %203, %176, %cst_106 {dimension_numbers = #tpu.dot_dimension_numbers<[1], [0], [0], [1], [0, 0, 1, 1], [], []>} : vector<64x256xbf16>, vector<256x128xbf16>, vector<64x128xf32> -> vector<64x128xf32>
    %205 = vector.broadcast %180 : vector<1x128xf32> to vector<64x128xf32>
    %206 = arith.mulf %204, %205 : vector<64x128xf32>
    %207 = vector.broadcast %181 : vector<1x128xf32> to vector<64x128xf32>
    %208 = arith.addf %206, %207 : vector<64x128xf32>
    %cst_107 = arith.constant 0.000000e+00 : f32
    %209 = vector.broadcast %cst_107 : f32 to vector<64x128xf32>
    %210 = arith.subf %209, %208 : vector<64x128xf32>
    %211 = math.exp %210 : vector<64x128xf32>
    %cst_108 = arith.constant 1.000000e+00 : f32
    %212 = vector.broadcast %cst_108 : f32 to vector<64x128xf32>
    %213 = arith.addf %212, %211 : vector<64x128xf32>
    %214 = tpu.reciprocal %213 {approx = true} : vector<64x128xf32> -> vector<64x128xf32>
    %215 = arith.mulf %208, %214 : vector<64x128xf32>
    %216 = tpu.concatenate %201, %215 in 0 : vector<64x128xf32>, vector<64x128xf32> -> vector<128x128xf32>
    %217 = arith.truncf %216 : vector<128x128xf32> to vector<128x128xbf16>
    %cst_109 = arith.constant dense<0.000000e+00> : vector<128x128xf32>
    %218 = tpu.matmul %179, %217, %cst_109 {dimension_numbers = #tpu.dot_dimension_numbers<[1], [0], [0], [1], [0, 0, 1, 1], [], []>} : vector<128x128xbf16>, vector<128x128xbf16>, vector<128x128xf32> -> vector<128x128xf32>
    %219 = arith.addf %218, %15 : vector<128x128xf32>
    %c0_110 = arith.constant 0 : index
    %c0_111 = arith.constant 0 : index
    %220 = vector.load %arg38[%c0_110, %c0_111] : memref<128x256xbf16, #tpu.memory_space<vmem>>, vector<128x256xbf16>
    %c0_112 = arith.constant 0 : index
    %c0_113 = arith.constant 0 : index
    %221 = vector.load %arg39[%c0_112, %c0_113] : memref<1x256xf32, #tpu.memory_space<vmem>>, vector<1x256xf32>
    %c0_114 = arith.constant 0 : index
    %c0_115 = arith.constant 0 : index
    %222 = vector.load %arg40[%c0_114, %c0_115] : memref<1x256xf32, #tpu.memory_space<vmem>>, vector<1x256xf32>
    %223 = arith.truncf %219 : vector<128x128xf32> to vector<128x128xbf16>
    %cst_116 = arith.constant dense<0.000000e+00> : vector<128x256xf32>
    %224 = tpu.matmul %223, %220, %cst_116 {dimension_numbers = #tpu.dot_dimension_numbers<[1], [0], [0], [1], [0, 0, 1, 1], [], []>} : vector<128x128xbf16>, vector<128x256xbf16>, vector<128x256xf32> -> vector<128x256xf32>
    %225 = vector.broadcast %221 : vector<1x256xf32> to vector<128x256xf32>
    %226 = arith.mulf %224, %225 : vector<128x256xf32>
    %227 = vector.broadcast %222 : vector<1x256xf32> to vector<128x256xf32>
    %228 = arith.addf %226, %227 : vector<128x256xf32>
    %cst_117 = arith.constant 0.000000e+00 : f32
    %229 = vector.broadcast %cst_117 : f32 to vector<128x256xf32>
    %230 = arith.subf %229, %228 : vector<128x256xf32>
    %231 = math.exp %230 : vector<128x256xf32>
    %cst_118 = arith.constant 1.000000e+00 : f32
    %232 = vector.broadcast %cst_118 : f32 to vector<128x256xf32>
    %233 = arith.addf %232, %231 : vector<128x256xf32>
    %234 = tpu.reciprocal %233 {approx = true} : vector<128x256xf32> -> vector<128x256xf32>
    %235 = arith.mulf %228, %234 : vector<128x256xf32>
    %c0_119 = arith.constant 0 : index
    %c0_120 = arith.constant 0 : index
    %236 = vector.load %arg41[%c0_119, %c0_120] : memref<256x256xbf16, #tpu.memory_space<vmem>>, vector<256x256xbf16>
    %c0_121 = arith.constant 0 : index
    %c0_122 = arith.constant 0 : index
    %237 = vector.load %arg42[%c0_121, %c0_122] : memref<1x256xf32, #tpu.memory_space<vmem>>, vector<1x256xf32>
    %238 = arith.truncf %235 : vector<128x256xf32> to vector<128x256xbf16>
    %cst_123 = arith.constant dense<0.000000e+00> : vector<128x256xf32>
    %239 = tpu.matmul %238, %236, %cst_123 {dimension_numbers = #tpu.dot_dimension_numbers<[1], [0], [0], [1], [0, 0, 1, 1], [], []>} : vector<128x256xbf16>, vector<256x256xbf16>, vector<128x256xf32> -> vector<128x256xf32>
    %240 = vector.broadcast %237 : vector<1x256xf32> to vector<128x256xf32>
    %241 = arith.addf %239, %240 : vector<128x256xf32>
    %cst_124 = arith.constant -1.000000e+00 : f32
    %cst_125 = arith.constant 1.000000e+00 : f32
    %242 = vector.broadcast %cst_124 : f32 to vector<128x256xf32>
    %243 = arith.maximumf %242, %241 : vector<128x256xf32>
    %244 = vector.broadcast %cst_125 : f32 to vector<128x256xf32>
    %245 = arith.minimumf %244, %243 : vector<128x256xf32>
    %c0_126 = arith.constant 0 : index
    %c0_127 = arith.constant 0 : index
    %246 = vector.load %arg43[%c0_126, %c0_127] : memref<128x256xf32, #tpu.memory_space<vmem>>, vector<128x256xf32>
    tpu.vector_store %arg43[%c0_126, %c0_127], %245 {strides = array<i32>} : memref<128x256xf32, #tpu.memory_space<vmem>>, vector<128x256xf32>,
    return
  }
  func.func @transform_0(%arg0: i32) -> (i32, i32) {
    %c0_i32 = arith.constant 0 : i32
    %c0_i32_0 = arith.constant 0 : i32
    return %arg0, %c0_i32 : i32, i32
  }
  func.func @transform_1(%arg0: i32) -> (i32, i32) {
    %c0_i32 = arith.constant 0 : i32
    %c0_i32_0 = arith.constant 0 : i32
    %c0_i32_1 = arith.constant 0 : i32
    return %c0_i32, %c0_i32_0 : i32, i32
  }
  func.func @transform_2(%arg0: i32) -> (i32, i32) {
    %c0_i32 = arith.constant 0 : i32
    %c0_i32_0 = arith.constant 0 : i32
    %c0_i32_1 = arith.constant 0 : i32
    return %c0_i32, %c0_i32_0 : i32, i32
  }
  func.func @transform_3(%arg0: i32) -> (i32, i32) {
    %c0_i32 = arith.constant 0 : i32
    %c0_i32_0 = arith.constant 0 : i32
    %c0_i32_1 = arith.constant 0 : i32
    return %c0_i32, %c0_i32_0 : i32, i32
  }
  func.func @transform_4(%arg0: i32) -> (i32, i32) {
    %c0_i32 = arith.constant 0 : i32
    %c0_i32_0 = arith.constant 0 : i32
    %c0_i32_1 = arith.constant 0 : i32
    return %c0_i32, %c0_i32_0 : i32, i32
  }
  func.func @transform_5(%arg0: i32) -> (i32, i32) {
    %c0_i32 = arith.constant 0 : i32
    %c0_i32_0 = arith.constant 0 : i32
    %c0_i32_1 = arith.constant 0 : i32
    return %c0_i32, %c0_i32_0 : i32, i32
  }
  func.func @transform_6(%arg0: i32) -> (i32, i32) {
    %c0_i32 = arith.constant 0 : i32
    %c0_i32_0 = arith.constant 0 : i32
    %c0_i32_1 = arith.constant 0 : i32
    return %c0_i32, %c0_i32_0 : i32, i32
  }
  func.func @transform_7(%arg0: i32) -> (i32, i32) {
    %c0_i32 = arith.constant 0 : i32
    %c0_i32_0 = arith.constant 0 : i32
    %c0_i32_1 = arith.constant 0 : i32
    return %c0_i32, %c0_i32_0 : i32, i32
  }
  func.func @transform_8(%arg0: i32) -> (i32, i32) {
    %c0_i32 = arith.constant 0 : i32
    %c0_i32_0 = arith.constant 0 : i32
    %c0_i32_1 = arith.constant 0 : i32
    return %c0_i32, %c0_i32_0 : i32, i32
  }
  func.func @transform_9(%arg0: i32) -> (i32, i32) {
    %c0_i32 = arith.constant 0 : i32
    %c0_i32_0 = arith.constant 0 : i32
    %c0_i32_1 = arith.constant 0 : i32
    return %c0_i32, %c0_i32_0 : i32, i32
  }
  func.func @transform_10(%arg0: i32) -> (i32, i32) {
    %c0_i32 = arith.constant 0 : i32
    %c0_i32_0 = arith.constant 0 : i32
    %c0_i32_1 = arith.constant 0 : i32
    return %c0_i32, %c0_i32_0 : i32, i32
  }
  func.func @transform_11(%arg0: i32) -> (i32, i32) {
    %c0_i32 = arith.constant 0 : i32
    %c0_i32_0 = arith.constant 0 : i32
    %c0_i32_1 = arith.constant 0 : i32
    return %c0_i32, %c0_i32_0 : i32, i32
  }
  func.func @transform_12(%arg0: i32) -> (i32, i32) {
    %c0_i32 = arith.constant 0 : i32
    %c0_i32_0 = arith.constant 0 : i32
    %c0_i32_1 = arith.constant 0 : i32
    return %c0_i32, %c0_i32_0 : i32, i32
  }
  func.func @transform_13(%arg0: i32) -> (i32, i32) {
    %c0_i32 = arith.constant 0 : i32
    %c0_i32_0 = arith.constant 0 : i32
    %c0_i32_1 = arith.constant 0 : i32
    return %c0_i32, %c0_i32_0 : i32, i32
  }
  func.func @transform_14(%arg0: i32) -> (i32, i32) {
    %c0_i32 = arith.constant 0 : i32
    %c0_i32_0 = arith.constant 0 : i32
    %c0_i32_1 = arith.constant 0 : i32
    return %c0_i32, %c0_i32_0 : i32, i32
  }
  func.func @transform_15(%arg0: i32) -> (i32, i32) {
    %c0_i32 = arith.constant 0 : i32
    %c0_i32_0 = arith.constant 0 : i32
    %c0_i32_1 = arith.constant 0 : i32
    return %c0_i32, %c0_i32_0 : i32, i32
  }
  func.func @transform_16(%arg0: i32) -> (i32, i32) {
    %c0_i32 = arith.constant 0 : i32
    %c0_i32_0 = arith.constant 0 : i32
    %c0_i32_1 = arith.constant 0 : i32
    return %c0_i32, %c0_i32_0 : i32, i32
  }
  func.func @transform_17(%arg0: i32) -> (i32, i32) {
    %c0_i32 = arith.constant 0 : i32
    %c0_i32_0 = arith.constant 0 : i32
    %c0_i32_1 = arith.constant 0 : i32
    return %c0_i32, %c0_i32_0 : i32, i32
  }
  func.func @transform_18(%arg0: i32) -> (i32, i32) {
    %c0_i32 = arith.constant 0 : i32
    %c0_i32_0 = arith.constant 0 : i32
    %c0_i32_1 = arith.constant 0 : i32
    return %c0_i32, %c0_i32_0 : i32, i32
  }
  func.func @transform_19(%arg0: i32) -> (i32, i32) {
    %c0_i32 = arith.constant 0 : i32
    %c0_i32_0 = arith.constant 0 : i32
    %c0_i32_1 = arith.constant 0 : i32
    return %c0_i32, %c0_i32_0 : i32, i32
  }
  func.func @transform_20(%arg0: i32) -> (i32, i32) {
    %c0_i32 = arith.constant 0 : i32
    %c0_i32_0 = arith.constant 0 : i32
    %c0_i32_1 = arith.constant 0 : i32
    return %c0_i32, %c0_i32_0 : i32, i32
  }
  func.func @transform_21(%arg0: i32) -> (i32, i32) {
    %c0_i32 = arith.constant 0 : i32
    %c0_i32_0 = arith.constant 0 : i32
    %c0_i32_1 = arith.constant 0 : i32
    return %c0_i32, %c0_i32_0 : i32, i32
  }
  func.func @transform_22(%arg0: i32) -> (i32, i32) {
    %c0_i32 = arith.constant 0 : i32
    %c0_i32_0 = arith.constant 0 : i32
    %c0_i32_1 = arith.constant 0 : i32
    return %c0_i32, %c0_i32_0 : i32, i32
  }
  func.func @transform_23(%arg0: i32) -> (i32, i32) {
    %c0_i32 = arith.constant 0 : i32
    %c0_i32_0 = arith.constant 0 : i32
    %c0_i32_1 = arith.constant 0 : i32
    return %c0_i32, %c0_i32_0 : i32, i32
  }
  func.func @transform_24(%arg0: i32) -> (i32, i32) {
    %c0_i32 = arith.constant 0 : i32
    %c0_i32_0 = arith.constant 0 : i32
    %c0_i32_1 = arith.constant 0 : i32
    return %c0_i32, %c0_i32_0 : i32, i32
  }
  func.func @transform_25(%arg0: i32) -> (i32, i32) {
    %c0_i32 = arith.constant 0 : i32
    %c0_i32_0 = arith.constant 0 : i32
    %c0_i32_1 = arith.constant 0 : i32
    return %c0_i32, %c0_i32_0 : i32, i32
  }
  func.func @transform_26(%arg0: i32) -> (i32, i32) {
    %c0_i32 = arith.constant 0 : i32
    %c0_i32_0 = arith.constant 0 : i32
    %c0_i32_1 = arith.constant 0 : i32
    return %c0_i32, %c0_i32_0 : i32, i32
  }
  func.func @transform_27(%arg0: i32) -> (i32, i32) {
    %c0_i32 = arith.constant 0 : i32
    %c0_i32_0 = arith.constant 0 : i32
    %c0_i32_1 = arith.constant 0 : i32
    return %c0_i32, %c0_i32_0 : i32, i32
  }
  func.func @transform_28(%arg0: i32) -> (i32, i32) {
    %c0_i32 = arith.constant 0 : i32
    %c0_i32_0 = arith.constant 0 : i32
    %c0_i32_1 = arith.constant 0 : i32
    return %c0_i32, %c0_i32_0 : i32, i32
  }
  func.func @transform_29(%arg0: i32) -> (i32, i32) {
    %c0_i32 = arith.constant 0 : i32
    %c0_i32_0 = arith.constant 0 : i32
    %c0_i32_1 = arith.constant 0 : i32
    return %c0_i32, %c0_i32_0 : i32, i32
  }
  func.func @transform_30(%arg0: i32) -> (i32, i32) {
    %c0_i32 = arith.constant 0 : i32
    %c0_i32_0 = arith.constant 0 : i32
    %c0_i32_1 = arith.constant 0 : i32
    return %c0_i32, %c0_i32_0 : i32, i32
  }
  func.func @transform_31(%arg0: i32) -> (i32, i32) {
    %c0_i32 = arith.constant 0 : i32
    %c0_i32_0 = arith.constant 0 : i32
    %c0_i32_1 = arith.constant 0 : i32
    return %c0_i32, %c0_i32_0 : i32, i32
  }
  func.func @transform_32(%arg0: i32) -> (i32, i32) {
    %c0_i32 = arith.constant 0 : i32
    %c0_i32_0 = arith.constant 0 : i32
    %c0_i32_1 = arith.constant 0 : i32
    return %c0_i32, %c0_i32_0 : i32, i32
  }
  func.func @transform_33(%arg0: i32) -> (i32, i32) {
    %c0_i32 = arith.constant 0 : i32
    %c0_i32_0 = arith.constant 0 : i32
    %c0_i32_1 = arith.constant 0 : i32
    return %c0_i32, %c0_i32_0 : i32, i32
  }
  func.func @transform_34(%arg0: i32) -> (i32, i32) {
    %c0_i32 = arith.constant 0 : i32
    %c0_i32_0 = arith.constant 0 : i32
    %c0_i32_1 = arith.constant 0 : i32
    return %c0_i32, %c0_i32_0 : i32, i32
  }
  func.func @transform_35(%arg0: i32) -> (i32, i32) {
    %c0_i32 = arith.constant 0 : i32
    %c0_i32_0 = arith.constant 0 : i32
    %c0_i32_1 = arith.constant 0 : i32
    return %c0_i32, %c0_i32_0 : i32, i32
  }
  func.func @transform_36(%arg0: i32) -> (i32, i32) {
    %c0_i32 = arith.constant 0 : i32
    %c0_i32_0 = arith.constant 0 : i32
    %c0_i32_1 = arith.constant 0 : i32
    return %c0_i32, %c0_i32_0 : i32, i32
  }
  func.func @transform_37(%arg0: i32) -> (i32, i32) {
    %c0_i32 = arith.constant 0 : i32
    %c0_i32_0 = arith.constant 0 : i32
    %c0_i32_1 = arith.constant 0 : i32
    return %c0_i32, %c0_i32_0 : i32, i32
  }
  func.func @transform_38(%arg0: i32) -> (i32, i32) {
    %c0_i32 = arith.constant 0 : i32
    %c0_i32_0 = arith.constant 0 : i32
    %c0_i32_1 = arith.constant 0 : i32
    return %c0_i32, %c0_i32_0 : i32, i32
  }
  func.func @transform_39(%arg0: i32) -> (i32, i32) {
    %c0_i32 = arith.constant 0 : i32
    %c0_i32_0 = arith.constant 0 : i32
    %c0_i32_1 = arith.constant 0 : i32
    return %c0_i32, %c0_i32_0 : i32, i32
  }
  func.func @transform_40(%arg0: i32) -> (i32, i32) {
    %c0_i32 = arith.constant 0 : i32
    %c0_i32_0 = arith.constant 0 : i32
    %c0_i32_1 = arith.constant 0 : i32
    return %c0_i32, %c0_i32_0 : i32, i32
  }
  func.func @transform_41(%arg0: i32) -> (i32, i32) {
    %c0_i32 = arith.constant 0 : i32
    %c0_i32_0 = arith.constant 0 : i32
    %c0_i32_1 = arith.constant 0 : i32
    return %c0_i32, %c0_i32_0 : i32, i32
  }
  func.func @transform_42(%arg0: i32) -> (i32, i32) {
    %c0_i32 = arith.constant 0 : i32
    %c0_i32_0 = arith.constant 0 : i32
    return %arg0, %c0_i32 : i32, i32
  }
}

</mosaic_0001>

<bundles_post_ra>
// kernel: decoder_forward.1
= control target key start
LH: loop header
LB: loop body
LE: loop exit
PB: predicated region body
PF: predicated region fallthrough
CT: control target
= control target key end

     0   :  { %s9002_s6 = smov 1   ;;  %s9003_s10 = smov 2   ;;  %s10517_s0 = inlined_call_operand.smem [shape: u32[43], index: -1, kind: input, shape index: {}] }
   0x1   :  { %s9078_s5 = sld [smem:[%s10517_s0]]   ;;  %s9004_s14 = smov 3  }
   0x2   :  { %s9083_s9 = sld [smem:[%s10517_s0 + %s9002_s6]]   ;;  %s9005_s18 = smov 4  }
   0x3   :  { %s9088_s13 = sld [smem:[%s10517_s0 + %s9003_s10]]   ;;  %s9006_s22 = smov 5  }
   0x4   :  { %s9093_s17 = sld [smem:[%s10517_s0 + %s9004_s14]]   ;;  %s9007_s26 = smov 6  }
   0x5   :  { %s9098_s21 = sld [smem:[%s10517_s0 + %s9005_s18]]   ;;  %s9008_s30 = smov 7  }
   0x6   :  { %s9103_s25 = sld [smem:[%s10517_s0 + %s9006_s22]]   ;;  %s9009_s4 = smov 8  }
   0x7   :  { %10548 = sst [smem:[#allocation45_spill]] %s9078_s5  ;;  %s9010_s10 = smov 9  }
   0x8   :  { %10549 = sst [smem:[#allocation46_spill]] %s9083_s9  ;;  %s9011_s15 = smov 10  }
   0x9   :  { %10550 = sst [smem:[#allocation47_spill]] %s9088_s13  ;;  %s9012_s20 = smov 11  }
   0xa   :  { %10551 = sst [smem:[#allocation48_spill]] %s9093_s17  ;;  %s9014_s1 = smov 13  }
   0xb   :  { %10552 = sst [smem:[#allocation49_spill]] %s9098_s21  ;;  %s9015_s7 = smov 14  }
   0xc   :  { %s9108_s29 = sld [smem:[%s10517_s0 + %s9007_s26]]   ;;  %s9013_s26 = smov 12  }
   0xd   :  { %s9113_s3 = sld [smem:[%s10517_s0 + %s9008_s30]]   ;;  %s9017_s22 = smov 16  }
   0xe   :  { %s9118_s8 = sld [smem:[%s10517_s0 + %s9009_s4]]   ;;  %s9018_s28 = smov 17  }
   0xf   :  { %s9123_s14 = sld [smem:[%s10517_s0 + %s9010_s10]]  }
  0x10   :  { %s9128_s19 = sld [smem:[%s10517_s0 + %s9011_s15]]   ;;  %s9016_s15 = smov 15  }
  0x11   :  { %s9133_s24 = sld [smem:[%s10517_s0 + %s9012_s20]]  }
  0x12   :  { %10553 = sst [smem:[#allocation50_spill]] %s9108_s29 }
  0x13   :  { %10554 = sst [smem:[#allocation51_spill]] %s9113_s3 }
  0x14   :  { %10555 = sst [smem:[#allocation52_spill]] %s9118_s8 }
  0x15   :  { %10556 = sst [smem:[#allocation53_spill]] %s9123_s14 }
  0x16   :  { %10557 = sst [smem:[#allocation54_spill]] %s9128_s19 }
  0x17   :  { %10558 = sst [smem:[#allocation55_spill]] %s9133_s24 }
  0x18   :  { %s9138_s30 = sld [smem:[%s10517_s0 + %s9013_s26]]  }
  0x19   :  { %s9143_s6 = sld [smem:[%s10517_s0 + %s9014_s1]]  }
  0x1a   :  { %s9148_s12 = sld [smem:[%s10517_s0 + %s9015_s7]]   ;;  %s9019_s7 = smov 18  }
  0x1b   :  { %s9153_s20 = sld [smem:[%s10517_s0 + %s9016_s15]]   ;;  %s9020_s15 = smov 19  }
  0x1c   :  { %s9158_s27 = sld [smem:[%s10517_s0 + %s9017_s22]]   ;;  %s9021_s22 = smov 20  }
  0x1d   :  { %s9163_s4 = sld [smem:[%s10517_s0 + %s9018_s28]]   ;;  %s9022_s28 = smov 21  }
  0x1e   :  { %s9183_s24 = sld [smem:[%s10517_s0 + %s9022_s28]]   ;;  %s9026_s28 = smov 25  }
  0x1f   :  { %10559 = sst [smem:[#allocation56_spill]] %s9143_s6 }
  0x20   :  { %10560 = sst [smem:[#allocation57_spill]] %s9148_s12 }
  0x21   :  { %10561 = sst [smem:[#allocation58_spill]] %s9153_s20 }
  0x22   :  { %10562 = sst [smem:[#allocation59_spill]] %s9158_s27 }
  0x23   :  { %10563 = sst [smem:[#allocation60_spill]] %s9163_s4 }
  0x24   :  { %s9168_s12 = sld [smem:[%s10517_s0 + %s9019_s7]]   ;;  %s9023_s7 = smov 22  }
  0x25   :  { %s9173_s20 = sld [smem:[%s10517_s0 + %s9020_s15]]   ;;  %s9024_s15 = smov 23  }
  0x26   :  { %s9178_s27 = sld [smem:[%s10517_s0 + %s9021_s22]]   ;;  %s9025_s22 = smov 24  }
  0x27   :  { %10566 = sst [smem:[#allocation63_spill]] %s9183_s24 }
  0x28   :  { %s9188_s19 = sld [smem:[%s10517_s0 + %s9023_s7]]   ;;  %s9027_s7 = smov 26  }
  0x29   :  { %s9193_s3 = sld [smem:[%s10517_s0 + %s9024_s15]]   ;;  %s9028_s15 = smov 27  }
  0x2a   :  { %10564 = sst [smem:[#allocation61_spill]] %s9168_s12 }
  0x2b   :  { %s9198_s29 = sld [smem:[%s10517_s0 + %s9025_s22]]   ;;  %s9029_s22 = smov 28  }
  0x2c   :  { %10565 = sst [smem:[#allocation62_spill]] %s9178_s27 }
  0x2d   :  { %s9203_s24 = sld [smem:[%s10517_s0 + %s9026_s28]]   ;;  %s9030_s28 = smov 29  }
  0x2e   :  { %10567 = sst [smem:[#allocation64_spill]] %s9188_s19 }
  0x2f   :  { %10568 = sst [smem:[#allocation65_spill]] %s9193_s3 }
  0x30   :  { %s9208_s19 = sld [smem:[%s10517_s0 + %s9027_s7]]   ;;  %s9031_s7 = smov 30  }
  0x31   :  { %10569 = sst [smem:[#allocation66_spill]] %s9198_s29 }
  0x32   :  { %s9213_s17 = sld [smem:[%s10517_s0 + %s9028_s15]]   ;;  %s9032_s15 = smov 31  }
  0x33   :  { %s9218_s13 = sld [smem:[%s10517_s0 + %s9029_s22]]   ;;  %s9033_s22 = smov 32  }
  0x34   :  { %s9223_s5 = sld [smem:[%s10517_s0 + %s9030_s28]]   ;;  %s9034_s28 = smov 33  }
  0x36   :  { %10570 = sst [smem:[#allocation67_spill]] %s9208_s19 }
  0x37   :  { %s9228_s19 = sld [smem:[%s10517_s0 + %s9031_s7]]   ;;  %s9035_s7 = smov 34  }
  0x38   :  { %10571 = sst [smem:[#allocation68_spill]] %s9213_s17 }
  0x39   :  { %10572 = sst [smem:[#allocation69_spill]] %s9218_s13 }
  0x3a   :  { %10573 = sst [smem:[#allocation70_spill]] %s9223_s5 }
  0x3b   :  { %s9233_s17 = sld [smem:[%s10517_s0 + %s9032_s15]]   ;;  %s9036_s15 = smov 35  }
  0x3c   :  { %s9238_s13 = sld [smem:[%s10517_s0 + %s9033_s22]]   ;;  %s9037_s22 = smov 36  }
  0x3d   :  { %s9243_s5 = sld [smem:[%s10517_s0 + %s9034_s28]]   ;;  %s9038_s28 = smov 37  }
  0x3e   :  { %s9248_s29 = sld [smem:[%s10517_s0 + %s9035_s7]]   ;;  %s9039_s7 = smov 38  }
  0x3f   :  { %s9258_s27 = sld [smem:[%s10517_s0 + %s9037_s22]]   ;;  %s9041_s22 = smov 40  }
  0x40   :  { %s9268_s12 = sld [smem:[%s10517_s0 + %s9039_s7]]   ;;  %s9043_s7 = smov 42  }
  0x41   :  { %10574 = sst [smem:[#allocation71_spill]] %s9233_s17 }
  0x42   :  { %10575 = sst [smem:[#allocation72_spill]] %s9238_s13 }
  0x43   :  { %10576 = sst [smem:[#allocation73_spill]] %s9243_s5 }
  0x44   :  { %s9253_s17 = sld [smem:[%s10517_s0 + %s9036_s15]]   ;;  %s9040_s15 = smov 39  }
  0x45   :  { %10578 = sst [smem:[#allocation75_spill]] %s9258_s27 }
  0x46   :  { %s9263_s5 = sld [smem:[%s10517_s0 + %s9038_s28]]   ;;  %s9042_s28 = smov 41  }
  0x47   :  { %10580 = sst [smem:[#allocation77_spill]] %s9268_s12 }
  0x48   :  { %s9278_s27 = sld [smem:[%s10517_s0 + %s9041_s22]]  }
  0x49   :  { %s9288_s12 = sld [smem:[%s10517_s0 + %s9043_s7]]  }
  0x4a   :  { %10577 = sst [smem:[#allocation74_spill]] %s9253_s17 }
  0x4b   :  { %s9273_s17 = sld [smem:[%s10517_s0 + %s9040_s15]]  }
  0x4c   :  { %10579 = sst [smem:[#allocation76_spill]] %s9263_s5 }
  0x4d   :  { %s9283_s5 = sld [smem:[%s10517_s0 + %s9042_s28]]  }
  0x4f   :  { %10581 = sst [smem:[#allocation78_spill]] %s9288_s12 }
  0x50   :  { %90 = vsyncpa [#allocation3], 0 }
  0x51   :  { %91 = vsyncpa [#allocation5], 0 }
  0x52   :  { %92 = vsyncpa [#allocation8], 0 }
  0x53   :  { %93 = vsyncpa [#allocation11], 0 }
  0x54   :  { %94 = vsyncpa [#allocation14], 0 }
  0x55   :  { %95 = vsyncpa [#allocation17], 0 }
  0x56   :  { %96 = vsyncpa [#allocation20], 0 }
  0x57   :  { %97 = vsyncpa [#allocation23], 0 }
  0x58   :  { %98 = vsyncpa [#allocation26], 0 }
  0x59   :  { %99 = vsyncpa [#allocation29], 0 }
  0x5a   :  { %100 = vsyncpa [#allocation32], 0  ;;  %s9290_s15 = smov 0  }
  0x5b LB: > { %s10582_s14 = sld [smem:[#allocation53_spill]]  ;;  %s10527_s0 = sadd.s32 4294967295, %s9000_s15   ;;  %s9000_s15 = sphi %s9290_s15, %s106_s15  }
  0x5c   : > { %s10583_s6 = sld [smem:[#allocation56_spill]]  ;;  %p6242_p0 = scmp.ge.s32.totalorder %s9000_s15, 1 }
  0x5d   : > { %s10584_s13 = sld [smem:[#allocation72_spill]]  ;;  %p1024_p1 = scmp.lt.s32.totalorder %s9000_s15, 3 }
  0x5e   : > { %s10585_s9 = sld [smem:[#allocation46_spill]]  ;;  %p9300_p2 = scmp.eq.s32.totalorder %s10527_s0, 0 }
  0x5f   : > { %s10586_s4 = sld [smem:[#allocation60_spill]]  ;;  %p9305_p3 = pnand %p6242_p0, %p1024_p1 }
  0x60   : > { %s10587_s3 = sld [smem:[#allocation65_spill]]  ;;  %s9044_s26 = smov [#allocation4]  }
  0x61   : > { %s10588_s21 = sld [smem:[#allocation49_spill]]  ;;  %p7761_p4 = pneg %p9305_p3 }
  0x62   : > { %s10589_s8 = sld [smem:[#allocation52_spill]]  ;;  %s1057_s28 = sshll.u32 %s9044_s26, 4  ;;  %s1058_s28 = int_to_ptr.vmem [resolvable:$true] %s1057_s28 }
  0x63   : > { %p9318_p5 = pnand %p9300_p2, %p7761_p4  ;;  %s9045_s2 = smov [#allocation7]  }
  0x64   : > { %s9322_s7 = sshll.u32 %s9045_s2, 4 }
  0x65   : > { %10593 = sst [smem:[#allocation79_spill]] %s9322_s7  ;;  %p9329_p7 = pneg %p9318_p5 }
  0x67   : > { %s1055_s18 = sshll.u32 %s10588_s21, 4  ;;  %s8327_s12 = scalar_lea.hbm %s10588_s21, 96  ;;  %s9309_s18 = int_to_ptr.hbm [resolvable:$true] %s1055_s18 }
  0x68   : > { %s1089_s23 = sshll.u32 %s10589_s8, 4  ;;  %s8320_s11 = sshra.s32 %s9309_s18, 4  ;;  %s9314_s23 = int_to_ptr.hbm [resolvable:$true] %s1089_s23  ;;  %s8321_s11 = int_to_ptr.hbm [resolvable:$true] %s8320_s11 }
  0x69   : > { %s8322_s0 = scalar_lea.hbm %s8321_s11, 96  ;;  %p8328_p10 = scmp.lt.s32.totalorder %s8321_s11, %s10588_s21 }
  0x6a   : > { %p8323_p6 = scmp.ne.s32.totalorder %s8321_s11, %s8322_s0  ;;  %p8329_p11 = scmp.lt.s32.totalorder %s8327_s12, %s8322_s0 }
  0x6c   : > { %p8325_p8 = pnand %p9329_p7, %p8323_p6  ;;  %p8330_p12 = por %p8329_p11, %p8328_p10 }
  0x6e   : > { %p8326_p9 = pneg %p8325_p8 }
  0x70   : > { %p8331_p13 = pnand %p8330_p12, %p8326_p9 }
  0x72   : > { %8334 = shalt.err (!%p8331_p13)
}
  0x73   : > { %s10531_s2 = smov 64   ;;  %s10533_s10 = smov 4  }
  0x74   : > { %7767 = dma.hbm_to_vmem [thread:$0]  (!%p9318_p5), %s9309_s18, 1536, %s1058_s28, [#allocation5], %s10531_s2, %s10531_s2, %s10533_s10  }
  0x75   : > { %s8350_s7 = sshra.s32 %s9314_s23, 4  ;;  %s8357_s12 = scalar_lea.hbm %s10589_s8, 48  ;;  %s8351_s7 = int_to_ptr.hbm [resolvable:$true] %s8350_s7 }
  0x76   : > { %s8352_s11 = scalar_lea.hbm %s8351_s7, 48  ;;  %p8358_p6 = scmp.lt.s32.totalorder %s8351_s7, %s10589_s8 }
  0x77   : > { %p8353_p0 = scmp.ne.s32.totalorder %s8351_s7, %s8352_s11  ;;  %p8359_p8 = scmp.lt.s32.totalorder %s8357_s12, %s8352_s11 }
  0x79   : > { %p8355_p1 = pnand %p8353_p0, %p9329_p7  ;;  %p8360_p9 = por %p8359_p8, %p8358_p6 }
  0x7b   : > { %p8356_p4 = pneg %p8355_p1 }
  0x7d   : > { %p8361_p10 = pnand %p8360_p9, %p8356_p4 }
  0x7f   : > { %8364 = shalt.err (!%p8361_p10)
}
  0x80   : > { %s10595_s0 = sld [smem:[#allocation79_spill]]  ;;  %s10597_s28 = sshll.u32 %s9138_s30, 4  ;;  %s1124_s28 = int_to_ptr.hbm [resolvable:$true] %s10597_s28 }
  0x81   : > { %s9048_s7 = smov [#allocation10]   ;;  %s1160_s12 = sshll.u32 %s10586_s4, 4  ;;  %s9359_s12 = int_to_ptr.hbm [resolvable:$true] %s1160_s12 }
  0x82   : > { %s1125_s11 = sshll.u32 %s9048_s7, 4  ;;  %s8380_s8 = sshra.s32 %s1124_s28, 4  ;;  %s1126_s11 = int_to_ptr.vmem [resolvable:$true] %s1125_s11  ;;  %s8381_s8 = int_to_ptr.hbm [resolvable:$true] %s8380_s8 }
  0x83   : > { %s8382_s21 = scalar_lea.hbm %s8381_s8, 24  ;;  %p8388_p0 = scmp.lt.s32.totalorder %s8381_s8, %s9138_s30 }
  0x84   : > { %p8383_p11 = scmp.ne.s32.totalorder %s8381_s8, %s8382_s21 }
  0x86   : > { %s10596_s18 = int_to_ptr.vmem [resolvable:$true] %s10595_s0  ;;  %p8385_p12 = pnand %p8383_p11, %p9329_p7 }
  0x87   : > { %7773 = dma.hbm_to_vmem [thread:$0]  (!%p9318_p5), %s9314_s23, 768, %s10596_s18, [#allocation8], %s10531_s2, %s10531_s2, %s10533_s10  }
  0x88   : > { %p8386_p13 = pneg %p8385_p12  ;;  %s8387_s0 = scalar_lea.hbm %s9138_s30, 24 }
  0x89   : > { %p8389_p1 = scmp.lt.s32.totalorder %s8387_s0, %s8382_s21 }
  0x8b   : > { %p8390_p4 = por %p8389_p1, %p8388_p0 }
  0x8d   : > { %p8391_p6 = pnand %p8390_p4, %p8386_p13 }
  0x8f   : > { %8394 = shalt.err (!%p8391_p6)
}
  0x90   : > { %7779 = dma.hbm_to_vmem [thread:$0]  (!%p9318_p5), %s1124_s28, 384, %s1126_s11, [#allocation11], %s10531_s2, %s10531_s2, %s10533_s10  }
  0x91   : > { %s9049_s23 = smov [#allocation13]   ;;  %s1188_s7 = sshll.u32 %s9173_s20, 4  ;;  %s1189_s7 = int_to_ptr.hbm [resolvable:$true] %s1188_s7 }
  0x92   : > { %s1162_s18 = sshll.u32 %s9049_s23, 4  ;;  %s8410_s8 = sshra.s32 %s9359_s12, 4  ;;  %s1163_s18 = int_to_ptr.vmem [resolvable:$true] %s1162_s18  ;;  %s8411_s8 = int_to_ptr.hbm [resolvable:$true] %s8410_s8 }
  0x93   : > { %s8412_s21 = scalar_lea.hbm %s8411_s8, 128  ;;  %s8417_s0 = scalar_lea.hbm %s10586_s4, 128 }
  0x94   : > { %p8413_p8 = scmp.ne.s32.totalorder %s8411_s8, %s8412_s21  ;;  %p8418_p11 = scmp.lt.s32.totalorder %s8411_s8, %s10586_s4 }
  0x95   : > { %p8419_p12 = scmp.lt.s32.totalorder %s8417_s0, %s8412_s21 }
  0x96   : > { %p8415_p9 = pnand %p8413_p8, %p9329_p7 }
  0x97   : > { %p8420_p13 = por %p8419_p12, %p8418_p11 }
  0x98   : > { %p8416_p10 = pneg %p8415_p9 }
  0x9a   : > { %p8421_p0 = pnand %p8420_p13, %p8416_p10 }
  0x9c   : > { %8424 = shalt.err (!%p8421_p0)
}
  0x9d   : > { %7785 = dma.hbm_to_vmem [thread:$0]  (!%p9318_p5), %s9359_s12, 2048, %s1163_s18, [#allocation14], %s10531_s2, %s10531_s2, %s10533_s10  }
  0x9e   : > { %s9050_s28 = smov [#allocation16]   ;;  %s1222_s23 = sshll.u32 %s10587_s3, 4  ;;  %s9383_s23 = int_to_ptr.hbm [resolvable:$true] %s1222_s23 }
  0x9f   : > { %s1190_s11 = sshll.u32 %s9050_s28, 4  ;;  %s8440_s8 = sshra.s32 %s1189_s7, 4  ;;  %s1191_s11 = int_to_ptr.vmem [resolvable:$true] %s1190_s11  ;;  %s8441_s8 = int_to_ptr.hbm [resolvable:$true] %s8440_s8 }
  0xa0   : > { %s8442_s21 = scalar_lea.hbm %s8441_s8, 16  ;;  %s8447_s0 = scalar_lea.hbm %s9173_s20, 16 }
  0xa1   : > { %p8443_p1 = scmp.ne.s32.totalorder %s8441_s8, %s8442_s21  ;;  %p8448_p8 = scmp.lt.s32.totalorder %s8441_s8, %s9173_s20 }
  0xa2   : > { %p8449_p9 = scmp.lt.s32.totalorder %s8447_s0, %s8442_s21 }
  0xa3   : > { %p8445_p4 = pnand %p8443_p1, %p9329_p7 }
  0xa4   : > { %p8450_p10 = por %p8449_p9, %p8448_p8 }
  0xa5   : > { %p8446_p6 = pneg %p8445_p4 }
  0xa7   : > { %p8451_p11 = pnand %p8450_p10, %p8446_p6 }
  0xa9   : > { %8454 = shalt.err (!%p8451_p11)
}
  0xaa   : > { %s10535_s12 = smov 128   ;;  %s10537_s18 = smov 8  }
  0xab   : > { %7791 = dma.hbm_to_vmem [thread:$0]  (!%p9318_p5), %s1189_s7, 256, %s1191_s11, [#allocation17], %s10535_s12, %s10535_s12, %s10537_s18  }
  0xac   : > { %s1250_s28 = sshll.u32 %s9203_s24, 4  ;;  %s9053_s2 = smov [#allocation19]   ;;  %s9395_s28 = int_to_ptr.hbm [resolvable:$true] %s1250_s28 }
  0xad   : > { %s1224_s8 = sshll.u32 %s9053_s2, 4  ;;  %s8470_s21 = sshra.s32 %s9383_s23, 4  ;;  %s1225_s8 = int_to_ptr.vmem [resolvable:$true] %s1224_s8  ;;  %s8471_s21 = int_to_ptr.hbm [resolvable:$true] %s8470_s21 }
  0xae   : > { %s8472_s0 = scalar_lea.hbm %s8471_s21, 128  ;;  %s8477_s10 = scalar_lea.hbm %s10587_s3, 128 }
  0xaf   : > { %p8473_p12 = scmp.ne.s32.totalorder %s8471_s21, %s8472_s0  ;;  %p8478_p1 = scmp.lt.s32.totalorder %s8471_s21, %s10587_s3 }
  0xb0   : > { %p8479_p4 = scmp.lt.s32.totalorder %s8477_s10, %s8472_s0 }
  0xb1   : > { %p8475_p13 = pnand %p8473_p12, %p9329_p7 }
  0xb2   : > { %p8480_p6 = por %p8479_p4, %p8478_p1 }
  0xb3   : > { %p8476_p0 = pneg %p8475_p13 }
  0xb5   : > { %p8481_p8 = pnand %p8480_p6, %p8476_p0 }
  0xb7   : > { %8484 = shalt.err (!%p8481_p8)
}
  0xb8   : > { %s10598_s7 = smov 4   ;;  %s10599_s2 = smov 64  }
  0xb9   : > { %7797 = dma.hbm_to_vmem [thread:$0]  (!%p9318_p5), %s9383_s23, 2048, %s1225_s8, [#allocation20], %s10599_s2, %s10599_s2, %s10598_s7  }
  0xba   : > { %s9054_s11 = smov [#allocation22]   ;;  %s1287_s18 = sshll.u32 %s9228_s19, 4  ;;  %s9409_s18 = int_to_ptr.hbm [resolvable:$true] %s1287_s18 }
  0xbb   : > { %s1252_s12 = sshll.u32 %s9054_s11, 4  ;;  %s8500_s10 = sshra.s32 %s9395_s28, 4  ;;  %s1253_s12 = int_to_ptr.vmem [resolvable:$true] %s1252_s12  ;;  %s8501_s10 = int_to_ptr.hbm [resolvable:$true] %s8500_s10 }
  0xbc   : > { %s8502_s21 = scalar_lea.hbm %s8501_s10, 32  ;;  %s8507_s0 = scalar_lea.hbm %s9203_s24, 32 }
  0xbd   : > { %p8503_p9 = scmp.ne.s32.totalorder %s8501_s10, %s8502_s21  ;;  %p8508_p12 = scmp.lt.s32.totalorder %s8501_s10, %s9203_s24 }
  0xbe   : > { %p8509_p13 = scmp.lt.s32.totalorder %s8507_s0, %s8502_s21 }
  0xbf   : > { %p8505_p10 = pnand %p8503_p9, %p9329_p7 }
  0xc0   : > { %p8510_p0 = por %p8509_p13, %p8508_p12 }
  0xc1   : > { %p8506_p11 = pneg %p8505_p10 }
  0xc3   : > { %p8511_p1 = pnand %p8510_p0, %p8506_p11 }
  0xc5   : > { %8514 = shalt.err (!%p8511_p1)
}
  0xc6   : > { %s10600_s23 = smov 8   ;;  %s10601_s8 = smov 128  }
  0xc7   : > { %7803 = dma.hbm_to_vmem [thread:$0]  (!%p9318_p5), %s9395_s28, 512, %s1253_s12, [#allocation23], %s10601_s8, %s10601_s8, %s10600_s23  }
  0xc8   : > { %s1315_s11 = sshll.u32 %s10584_s13, 4  ;;  %s9055_s3 = smov [#allocation25]   ;;  %s9423_s11 = int_to_ptr.hbm [resolvable:$true] %s1315_s11 }
  0xc9   : > { %s1289_s4 = sshll.u32 %s9055_s3, 4  ;;  %s8530_s10 = sshra.s32 %s9409_s18, 4  ;;  %s1290_s4 = int_to_ptr.vmem [resolvable:$true] %s1289_s4  ;;  %s8531_s10 = int_to_ptr.hbm [resolvable:$true] %s8530_s10 }
  0xca   : > { %s8532_s21 = scalar_lea.hbm %s8531_s10, 128  ;;  %s8537_s0 = scalar_lea.hbm %s9228_s19, 128 }
  0xcb   : > { %p8533_p4 = scmp.ne.s32.totalorder %s8531_s10, %s8532_s21  ;;  %p8538_p9 = scmp.lt.s32.totalorder %s8531_s10, %s9228_s19 }
  0xcc   : > { %p8539_p10 = scmp.lt.s32.totalorder %s8537_s0, %s8532_s21 }
  0xcd   : > { %p8535_p6 = pnand %p8533_p4, %p9329_p7 }
  0xce   : > { %p8540_p11 = por %p8539_p10, %p8538_p9 }
  0xcf   : > { %p8536_p8 = pneg %p8535_p6 }
  0xd1   : > { %p8541_p12 = pnand %p8540_p11, %p8536_p8 }
  0xd3   : > { %8544 = shalt.err (!%p8541_p12)
}
  0xd4   : > { %7809 = dma.hbm_to_vmem [thread:$0]  (!%p9318_p5), %s9409_s18, 2048, %s1290_s4, [#allocation26], %s10599_s2, %s10599_s2, %s10598_s7  }
  0xd5   : > { %s9056_s3 = smov [#allocation28]   ;;  %s1343_s28 = sshll.u32 %s9248_s29, 4  ;;  %s9437_s28 = int_to_ptr.hbm [resolvable:$true] %s1343_s28 }
  0xd6   : > { %s1317_s12 = sshll.u32 %s9056_s3, 4  ;;  %s8560_s10 = sshra.s32 %s9423_s11, 4  ;;  %s1318_s12 = int_to_ptr.vmem [resolvable:$true] %s1317_s12  ;;  %s8561_s10 = int_to_ptr.hbm [resolvable:$true] %s8560_s10 }
  0xd7   : > { %s8562_s21 = scalar_lea.hbm %s8561_s10, 64  ;;  %s8567_s0 = scalar_lea.hbm %s10584_s13, 64 }
  0xd8   : > { %p8563_p13 = scmp.ne.s32.totalorder %s8561_s10, %s8562_s21  ;;  %p8568_p4 = scmp.lt.s32.totalorder %s8561_s10, %s10584_s13 }
  0xd9   : > { %p8569_p6 = scmp.lt.s32.totalorder %s8567_s0, %s8562_s21 }
  0xda   : > { %p8565_p0 = pnand %p8563_p13, %p9329_p7 }
  0xdb   : > { %p8570_p8 = por %p8569_p6, %p8568_p4 }
  0xdc   : > { %p8566_p1 = pneg %p8565_p0 }
  0xde   : > { %p8571_p9 = pnand %p8570_p8, %p8566_p1 }
  0xe0   : > { %8574 = shalt.err (!%p8571_p9)
}
  0xe1   : > { %7815 = dma.hbm_to_vmem [thread:$0]  (!%p9318_p5), %s9423_s11, 1024, %s1318_s12, [#allocation29], %s10601_s8, %s10601_s8, %s10600_s23  }
  0xe2   : > { %s1035_s4 = sshll.u32 %s10585_s9, 4  ;;  %s9057_s18 = smov [#allocation31]   ;;  %s9451_s4 = int_to_ptr.hbm [resolvable:$true] %s1035_s4 }
  0xe3   : > { %s1345_s3 = sshll.u32 %s9057_s18, 4  ;;  %s8590_s10 = sshra.s32 %s9437_s28, 4  ;;  %s1346_s3 = int_to_ptr.vmem [resolvable:$true] %s1345_s3  ;;  %s8591_s10 = int_to_ptr.hbm [resolvable:$true] %s8590_s10 }
  0xe4   : > { %s8592_s21 = scalar_lea.hbm %s8591_s10, 64  ;;  %s8597_s0 = scalar_lea.hbm %s9248_s29, 64 }
  0xe5   : > { %p8593_p10 = scmp.ne.s32.totalorder %s8591_s10, %s8592_s21  ;;  %p8598_p13 = scmp.lt.s32.totalorder %s8591_s10, %s9248_s29 }
  0xe6   : > { %p8599_p0 = scmp.lt.s32.totalorder %s8597_s0, %s8592_s21 }
  0xe7   : > { %p8595_p11 = pnand %p8593_p10, %p9329_p7 }
  0xe8   : > { %p8600_p1 = por %p8599_p0, %p8598_p13 }
  0xe9   : > { %p8596_p12 = pneg %p8595_p11 }
  0xeb   : > { %p8601_p4 = pnand %p8600_p1, %p8596_p12 }
  0xed   : > { %8604 = shalt.err (!%p8601_p4)
}
  0xee   : > { %7821 = dma.hbm_to_vmem [thread:$0]  (!%p9318_p5), %s9437_s28, 1024, %s1346_s3, [#allocation32], %s10599_s2, %s10599_s2, %s10598_s7  }
  0xef   : > { %s9058_s11 = smov [#allocation2]   ;;  %s1069_s18 = sshll.u32 %s9103_s25, 4  ;;  %s9465_s18 = int_to_ptr.hbm [resolvable:$true] %s1069_s18 }
  0xf0   : > { %s1037_s12 = sshll.u32 %s9058_s11, 4  ;;  %s8620_s10 = sshra.s32 %s9451_s4, 4  ;;  %s1038_s12 = int_to_ptr.vmem [resolvable:$true] %s1037_s12  ;;  %s8621_s10 = int_to_ptr.hbm [resolvable:$true] %s8620_s10 }
  0xf1   : > { %s8622_s21 = scalar_lea.hbm %s8621_s10, 64  ;;  %s8627_s0 = scalar_lea.hbm %s10585_s9, 64 }
  0xf2   : > { %p8623_p6 = scmp.ne.s32.totalorder %s8621_s10, %s8622_s21  ;;  %p8628_p10 = scmp.lt.s32.totalorder %s8621_s10, %s10585_s9 }
  0xf3   : > { %p8629_p11 = scmp.lt.s32.totalorder %s8627_s0, %s8622_s21 }
  0xf4   : > { %p8625_p8 = pnand %p8623_p6, %p9329_p7 }
  0xf5   : > { %p8630_p12 = por %p8629_p11, %p8628_p10 }
  0xf6   : > { %p8626_p9 = pneg %p8625_p8 }
  0xf8   : > { %p8631_p13 = pnand %p8630_p12, %p8626_p9 }
  0xfa   : > { %8634 = shalt.err (!%p8631_p13)
}
  0xfb   : > { %7764 = dma.hbm_to_vmem [thread:$0]  (!%p9318_p5), %s9451_s4, 1024, %s1038_s12, [#allocation3], %s10599_s2, %s10599_s2, %s10598_s7  }
  0xfc   : > { %s1103_s28 = sshll.u32 %s10582_s14, 4  ;;  %s9059_s3 = smov [#allocation6]   ;;  %s9479_s28 = int_to_ptr.hbm [resolvable:$true] %s1103_s28 }
  0xfd   : > { %s1071_s11 = sshll.u32 %s9059_s3, 4  ;;  %s8650_s10 = sshra.s32 %s9465_s18, 4  ;;  %s1072_s11 = int_to_ptr.vmem [resolvable:$true] %s1071_s11  ;;  %s8651_s10 = int_to_ptr.hbm [resolvable:$true] %s8650_s10 }
  0xfe   : > { %s8652_s21 = scalar_lea.hbm %s8651_s10, 192  ;;  %s8657_s0 = scalar_lea.hbm %s9103_s25, 192 }
  0xff   : > { %p8653_p0 = scmp.ne.s32.totalorder %s8651_s10, %s8652_s21  ;;  %p8658_p6 = scmp.lt.s32.totalorder %s8651_s10, %s9103_s25 }
 0x100   : > { %p8659_p8 = scmp.lt.s32.totalorder %s8657_s0, %s8652_s21 }
 0x101   : > { %p8655_p1 = pnand %p8653_p0, %p9329_p7 }
 0x102   : > { %p8660_p9 = por %p8659_p8, %p8658_p6 }
 0x103   : > { %p8656_p4 = pneg %p8655_p1 }
 0x105   : > { %p8661_p10 = pnand %p8660_p9, %p8656_p4 }
 0x107   : > { %8664 = shalt.err (!%p8661_p10)
}
 0x108   : > { %7770 = dma.hbm_to_vmem [thread:$0]  (!%p9318_p5), %s9465_s18, 3072, %s1072_s11, [#allocation5], %s10599_s2, %s10599_s2, %s10598_s7  }
 0x109   : > { %s9060_s4 = smov [#allocation9]   ;;  %s1137_s3 = sshll.u32 %s10583_s6, 4  ;;  %s9493_s3 = int_to_ptr.hbm [resolvable:$true] %s1137_s3 }
 0x10a   : > { %s1105_s12 = sshll.u32 %s9060_s4, 4  ;;  %s8680_s10 = sshra.s32 %s9479_s28, 4  ;;  %s1106_s12 = int_to_ptr.vmem [resolvable:$true] %s1105_s12  ;;  %s8681_s10 = int_to_ptr.hbm [resolvable:$true] %s8680_s10 }
 0x10b   : > { %s8682_s21 = scalar_lea.hbm %s8681_s10, 192  ;;  %s8687_s0 = scalar_lea.hbm %s10582_s14, 192 }
 0x10c   : > { %p8683_p11 = scmp.ne.s32.totalorder %s8681_s10, %s8682_s21  ;;  %p8688_p0 = scmp.lt.s32.totalorder %s8681_s10, %s10582_s14 }
 0x10d   : > { %p8689_p1 = scmp.lt.s32.totalorder %s8687_s0, %s8682_s21 }
 0x10e   : > { %p8685_p12 = pnand %p8683_p11, %p9329_p7 }
 0x10f   : > { %p8690_p4 = por %p8689_p1, %p8688_p0 }
 0x110   : > { %p8686_p13 = pneg %p8685_p12 }
 0x112   : > { %p8691_p6 = pnand %p8690_p4, %p8686_p13 }
 0x114   : > { %8694 = shalt.err (!%p8691_p6)
}
 0x115   : > { %s10602_s18 = sld [smem:[#allocation61_spill]]  ;;  %s9061_s4 = smov [#allocation12]  }
 0x116   : > { %7776 = dma.hbm_to_vmem [thread:$0]  (!%p9318_p5), %s9479_s28, 3072, %s1106_s12, [#allocation8], %s10599_s2, %s10599_s2, %s10598_s7  }
 0x117   : > { %s1139_s9 = sshll.u32 %s9061_s4, 4  ;;  %s8710_s10 = sshra.s32 %s9493_s3, 4  ;;  %s1140_s9 = int_to_ptr.vmem [resolvable:$true] %s1139_s9  ;;  %s8711_s10 = int_to_ptr.hbm [resolvable:$true] %s8710_s10 }
 0x118   : > { %s8712_s21 = scalar_lea.hbm %s8711_s10, 192  ;;  %s8717_s0 = scalar_lea.hbm %s10583_s6, 192 }
 0x119   : > { %p8713_p8 = scmp.ne.s32.totalorder %s8711_s10, %s8712_s21  ;;  %p8718_p11 = scmp.lt.s32.totalorder %s8711_s10, %s10583_s6 }
 0x11a   : > { %p8719_p12 = scmp.lt.s32.totalorder %s8717_s0, %s8712_s21 }
 0x11b   : > { %s1174_s11 = sshll.u32 %s10602_s18, 4  ;;  %p8715_p9 = pnand %p8713_p8, %p9329_p7  ;;  %s9507_s11 = int_to_ptr.hbm [resolvable:$true] %s1174_s11 }
 0x11c   : > { %p8720_p13 = por %p8719_p12, %p8718_p11 }
 0x11d   : > { %p8716_p10 = pneg %p8715_p9 }
 0x11f   : > { %p8721_p0 = pnand %p8720_p13, %p8716_p10 }
 0x121   : > { %8724 = shalt.err (!%p8721_p0)
}
 0x122   : > { %s10603_s28 = sld [smem:[#allocation62_spill]]  ;;  %s9062_s12 = smov [#allocation15]  }
 0x123   : > { %7782 = dma.hbm_to_vmem [thread:$0]  (!%p9318_p5), %s9493_s3, 3072, %s1140_s9, [#allocation11], %s10599_s2, %s10599_s2, %s10598_s7  }
 0x124   : > { %s1176_s4 = sshll.u32 %s9062_s12, 4  ;;  %s8740_s10 = sshra.s32 %s9507_s11, 4  ;;  %s1177_s4 = int_to_ptr.vmem [resolvable:$true] %s1176_s4  ;;  %s8741_s10 = int_to_ptr.hbm [resolvable:$true] %s8740_s10 }
 0x125   : > { %s8742_s21 = scalar_lea.hbm %s8741_s10, 16  ;;  %s8747_s0 = scalar_lea.hbm %s10602_s18, 16 }
 0x126   : > { %p8743_p1 = scmp.ne.s32.totalorder %s8741_s10, %s8742_s21  ;;  %p8748_p8 = scmp.lt.s32.totalorder %s8741_s10, %s10602_s18 }
 0x127   : > { %p8749_p9 = scmp.lt.s32.totalorder %s8747_s0, %s8742_s21 }
 0x128   : > { %s1202_s13 = sshll.u32 %s10603_s28, 4  ;;  %p8745_p4 = pnand %p8743_p1, %p9329_p7  ;;  %s9521_s13 = int_to_ptr.hbm [resolvable:$true] %s1202_s13 }
 0x129   : > { %p8750_p10 = por %p8749_p9, %p8748_p8 }
 0x12a   : > { %p8746_p6 = pneg %p8745_p4 }
 0x12c   : > { %p8751_p11 = pnand %p8750_p10, %p8746_p6 }
 0x12e   : > { %8754 = shalt.err (!%p8751_p11)
}
 0x12f   : > { %s10604_s9 = sld [smem:[#allocation66_spill]]  ;;  %s9063_s12 = smov [#allocation18]  }
 0x130   : > { %7788 = dma.hbm_to_vmem [thread:$0]  (!%p9318_p5), %s9507_s11, 256, %s1177_s4, [#allocation14], %s10601_s8, %s10601_s8, %s10600_s23  }
 0x131   : > { %s1204_s6 = sshll.u32 %s9063_s12, 4  ;;  %s8770_s10 = sshra.s32 %s9521_s13, 4  ;;  %s1205_s6 = int_to_ptr.vmem [resolvable:$true] %s1204_s6  ;;  %s8771_s10 = int_to_ptr.hbm [resolvable:$true] %s8770_s10 }
 0x132   : > { %s8772_s21 = scalar_lea.hbm %s8771_s10, 16  ;;  %s8777_s0 = scalar_lea.hbm %s10603_s28, 16 }
 0x133   : > { %p8773_p12 = scmp.ne.s32.totalorder %s8771_s10, %s8772_s21  ;;  %p8778_p1 = scmp.lt.s32.totalorder %s8771_s10, %s10603_s28 }
 0x134   : > { %p8779_p4 = scmp.lt.s32.totalorder %s8777_s0, %s8772_s21 }
 0x135   : > { %s1236_s3 = sshll.u32 %s10604_s9, 4  ;;  %p8775_p13 = pnand %p8773_p12, %p9329_p7  ;;  %s9535_s3 = int_to_ptr.hbm [resolvable:$true] %s1236_s3 }
 0x136   : > { %p8780_p6 = por %p8779_p4, %p8778_p1 }
 0x137   : > { %p8776_p0 = pneg %p8775_p13 }
 0x139   : > { %p8781_p8 = pnand %p8780_p6, %p8776_p0 }
 0x13b   : > { %8784 = shalt.err (!%p8781_p8)
}
 0x13c   : > { %s10605_s11 = sld [smem:[#allocation67_spill]]  ;;  %s9064_s4 = smov [#allocation21]  }
 0x13d   : > { %7794 = dma.hbm_to_vmem [thread:$0]  (!%p9318_p5), %s9521_s13, 256, %s1205_s6, [#allocation17], %s10599_s2, %s10599_s2, %s10598_s7  }
 0x13e   : > { %s1238_s12 = sshll.u32 %s9064_s4, 4  ;;  %s8800_s10 = sshra.s32 %s9535_s3, 4  ;;  %s1239_s12 = int_to_ptr.vmem [resolvable:$true] %s1238_s12  ;;  %s8801_s10 = int_to_ptr.hbm [resolvable:$true] %s8800_s10 }
 0x13f   : > { %s8802_s21 = scalar_lea.hbm %s8801_s10, 128  ;;  %s8807_s0 = scalar_lea.hbm %s10604_s9, 128 }
 0x140   : > { %p8803_p9 = scmp.ne.s32.totalorder %s8801_s10, %s8802_s21  ;;  %p8808_p12 = scmp.lt.s32.totalorder %s8801_s10, %s10604_s9 }
 0x141   : > { %p8809_p13 = scmp.lt.s32.totalorder %s8807_s0, %s8802_s21 }
 0x142   : > { %s1264_s14 = sshll.u32 %s10605_s11, 4  ;;  %p8805_p10 = pnand %p8803_p9, %p9329_p7  ;;  %s9549_s14 = int_to_ptr.hbm [resolvable:$true] %s1264_s14 }
 0x143   : > { %p8810_p0 = por %p8809_p13, %p8808_p12 }
 0x144   : > { %p8806_p11 = pneg %p8805_p10 }
 0x146   : > { %p8811_p1 = pnand %p8810_p0, %p8806_p11 }
 0x148   : > { %8814 = shalt.err (!%p8811_p1)
}
 0x149   : > { %s10606_s13 = sld [smem:[#allocation71_spill]]  ;;  %s9065_s4 = smov [#allocation24]  }
 0x14a   : > { %7800 = dma.hbm_to_vmem [thread:$0]  (!%p9318_p5), %s9535_s3, 2048, %s1239_s12, [#allocation20], %s10599_s2, %s10599_s2, %s10598_s7  }
 0x14b   : > { %s1266_s18 = sshll.u32 %s9065_s4, 4  ;;  %s8830_s10 = sshra.s32 %s9549_s14, 4  ;;  %s1267_s18 = int_to_ptr.vmem [resolvable:$true] %s1266_s18  ;;  %s8831_s10 = int_to_ptr.hbm [resolvable:$true] %s8830_s10 }
 0x14c   : > { %s8832_s21 = scalar_lea.hbm %s8831_s10, 32  ;;  %s8837_s0 = scalar_lea.hbm %s10605_s11, 32 }
 0x14d   : > { %p8833_p4 = scmp.ne.s32.totalorder %s8831_s10, %s8832_s21  ;;  %p8838_p9 = scmp.lt.s32.totalorder %s8831_s10, %s10605_s11 }
 0x14e   : > { %p8839_p10 = scmp.lt.s32.totalorder %s8837_s0, %s8832_s21 }
 0x14f   : > { %s1301_s6 = sshll.u32 %s10606_s13, 4  ;;  %p8835_p6 = pnand %p8833_p4, %p9329_p7  ;;  %s9563_s6 = int_to_ptr.hbm [resolvable:$true] %s1301_s6 }
 0x150   : > { %p8840_p11 = por %p8839_p10, %p8838_p9 }
 0x151   : > { %p8836_p8 = pneg %p8835_p6 }
 0x153   : > { %p8841_p12 = pnand %p8840_p11, %p8836_p8 }
 0x155   : > { %8844 = shalt.err (!%p8841_p12)
}
 0x156   : > { %s10607_s3 = sld [smem:[#allocation73_spill]]  ;;  %s9066_s12 = smov [#allocation27]  }
 0x157   : > { %7806 = dma.hbm_to_vmem [thread:$0]  (!%p9318_p5), %s9549_s14, 512, %s1267_s18, [#allocation23], %s10601_s8, %s10601_s8, %s10600_s23  }
 0x158   : > { %s1303_s4 = sshll.u32 %s9066_s12, 4  ;;  %s8860_s10 = sshra.s32 %s9563_s6, 4  ;;  %s1304_s4 = int_to_ptr.vmem [resolvable:$true] %s1303_s4  ;;  %s8861_s10 = int_to_ptr.hbm [resolvable:$true] %s8860_s10 }
 0x159   : > { %s8862_s21 = scalar_lea.hbm %s8861_s10, 128  ;;  %s8867_s0 = scalar_lea.hbm %s10606_s13, 128 }
 0x15a   : > { %p8863_p13 = scmp.ne.s32.totalorder %s8861_s10, %s8862_s21  ;;  %p8868_p4 = scmp.lt.s32.totalorder %s8861_s10, %s10606_s13 }
 0x15b   : > { %p8869_p6 = scmp.lt.s32.totalorder %s8867_s0, %s8862_s21 }
 0x15c   : > { %s1329_s9 = sshll.u32 %s10607_s3, 4  ;;  %p8865_p0 = pnand %p8863_p13, %p9329_p7  ;;  %s9577_s9 = int_to_ptr.hbm [resolvable:$true] %s1329_s9 }
 0x15d   : > { %p8870_p8 = por %p8869_p6, %p8868_p4 }
 0x15e   : > { %p8866_p1 = pneg %p8865_p0 }
 0x160   : > { %p8871_p9 = pnand %p8870_p8, %p8866_p1 }
 0x162   : > { %8874 = shalt.err (!%p8871_p9)
}
 0x163   : > { %s10608_s14 = sld [smem:[#allocation76_spill]]  ;;  %s9067_s12 = smov [#allocation30]  }
 0x164   : > { %7812 = dma.hbm_to_vmem [thread:$0]  (!%p9318_p5), %s9563_s6, 2048, %s1304_s4, [#allocation26], %s10599_s2, %s10599_s2, %s10598_s7  }
 0x165   : > { %s1331_s11 = sshll.u32 %s9067_s12, 4  ;;  %s8890_s10 = sshra.s32 %s9577_s9, 4  ;;  %s1332_s11 = int_to_ptr.vmem [resolvable:$true] %s1331_s11  ;;  %s8891_s10 = int_to_ptr.hbm [resolvable:$true] %s8890_s10 }
 0x166   : > { %s8892_s21 = scalar_lea.hbm %s8891_s10, 64  ;;  %s8897_s0 = scalar_lea.hbm %s10607_s3, 64 }
 0x167   : > { %p8893_p10 = scmp.ne.s32.totalorder %s8891_s10, %s8892_s21  ;;  %p8898_p13 = scmp.lt.s32.totalorder %s8891_s10, %s10607_s3 }
 0x168   : > { %p8899_p0 = scmp.lt.s32.totalorder %s8897_s0, %s8892_s21 }
 0x169   : > { %s1363_s18 = sshll.u32 %s10608_s14, 4  ;;  %p8895_p11 = pnand %p8893_p10, %p9329_p7  ;;  %s9591_s18 = int_to_ptr.hbm [resolvable:$true] %s1363_s18 }
 0x16a   : > { %p8900_p1 = por %p8899_p0, %p8898_p13 }
 0x16b   : > { %p8896_p12 = pneg %p8895_p11 }
 0x16d   : > { %p8901_p4 = pnand %p8900_p1, %p8896_p12 }
 0x16f   : > { %8904 = shalt.err (!%p8901_p4)
}
 0x170   : > { %7818 = dma.hbm_to_vmem [thread:$0]  (!%p9318_p5), %s9577_s9, 1024, %s1332_s11, [#allocation29], %s10601_s8, %s10601_s8, %s10600_s23  }
 0x171   : > { %s9068_s7 = smov [#allocation33]   ;;  %s8920_s6 = sshra.s32 %s9591_s18, 4  ;;  %s8921_s6 = int_to_ptr.hbm [resolvable:$true] %s8920_s6 }
 0x172   : > { %s1365_s2 = sshll.u32 %s9068_s7, 4  ;;  %s8922_s4 = scalar_lea.hbm %s8921_s6, 128  ;;  %s1366_s2 = int_to_ptr.vmem [resolvable:$true] %s1365_s2 }
 0x173   : > { %p8923_p6 = scmp.ne.s32.totalorder %s8921_s6, %s8922_s4  ;;  %s8927_s12 = scalar_lea.hbm %s10608_s14, 128 }
 0x174   : > { %p8928_p10 = scmp.lt.s32.totalorder %s8921_s6, %s10608_s14  ;;  %p8929_p11 = scmp.lt.s32.totalorder %s8927_s12, %s8922_s4 }
 0x175   : > { %p8925_p8 = pnand %p8923_p6, %p9329_p7 }
 0x176   : > { %p8930_p12 = por %p8929_p11, %p8928_p10 }
 0x177   : > { %p8926_p9 = pneg %p8925_p8 }
 0x179   : > { %p8931_p13 = pnand %p8930_p12, %p8926_p9 }
 0x17b   : > { %8934 = shalt.err (!%p8931_p13)
}
 0x17c   : > { %7824 = dma.hbm_to_vmem [thread:$0]  (!%p9318_p5), %s9591_s18, 2048, %s1366_s2, [#allocation32], %s10601_s8, %s10601_s8, %s10600_s23  }
 0x17d   : > { %1402 = sbr.rel (%p9305_p3) target bundleno = 3504 (0xdb0), region = 188 }
 0x182   : > { %8955 = dma.done.wait (%p9300_p2), [#allocation3], 1024  }
 0x183   : > { %8957 = vsyncadd (%p9300_p2), [#allocation3], 4294966272 }
 0x184   : > { %8959 = dma.done.wait (%p9300_p2), [#allocation5], 4608  }
 0x185   : > { %8961 = vsyncadd (%p9300_p2), [#allocation5], 4294962688 }
 0x186   : > { %8963 = dma.done.wait (%p9300_p2), [#allocation8], 3840  }
 0x187   : > { %8965 = vsyncadd (%p9300_p2), [#allocation8], 4294963456 }
 0x188   : > { %8967 = dma.done.wait (%p9300_p2), [#allocation11], 3456  }
 0x189   : > { %8969 = vsyncadd (%p9300_p2), [#allocation11], 4294963840 }
 0x18a   : > { %8971 = dma.done.wait (%p9300_p2), [#allocation14], 2304  }
 0x18b   : > { %8973 = vsyncadd (%p9300_p2), [#allocation14], 4294964992 }
 0x18c   : > { %8975 = dma.done.wait (%p9300_p2), [#allocation17], 512  }
 0x18d   : > { %8977 = vsyncadd (%p9300_p2), [#allocation17], 4294966784 }
 0x18e   : > { %8979 = dma.done.wait (%p9300_p2), [#allocation20], 4096  }
 0x18f   : > { %8981 = vsyncadd (%p9300_p2), [#allocation20], 4294963200 }
 0x190   : > { %8983 = dma.done.wait (%p9300_p2), [#allocation23], 1024  }
 0x191   : > { %8985 = vsyncadd (%p9300_p2), [#allocation23], 4294966272 }
 0x192   : > { %8987 = dma.done.wait (%p9300_p2), [#allocation26], 4096  }
 0x193   : > { %8989 = vsyncadd (%p9300_p2), [#allocation26], 4294963200 }
 0x194   : > { %8991 = dma.done.wait (%p9300_p2), [#allocation29], 2048  }
 0x195   : > { %8993 = vsyncadd (%p9300_p2), [#allocation29], 4294965248 }
 0x196   : > { %8995 = dma.done.wait (%p9300_p2), [#allocation32], 3072  }
 0x197   : > { %8997 = vsyncadd (%p9300_p2), [#allocation32], 4294964224  ;;  %v7425_v0 = vld [vmem:[#allocation2 + $0x38] sm:$0xff]  ;;  %v7424_v1 = vld [vmem:[#allocation2 + $0x30] sm:$0xff]  ;;  %s10609_s22 = sld [smem:[#allocation45_spill]]  ;;  %s10610_s1 = sadd.s32 4294967295, %s9000_s15  }
 0x198   : > { %1750 = vmatpush.bf16.msra.mxu0 %v7425_v0  ;;  %v7423_v2 = vld [vmem:[#allocation2 + $0x28] sm:$0xff]  ;;  %v7422_v3 = vld [vmem:[#allocation2 + $0x20] sm:$0xff]  ;;  %s6287_s26 = sshll.u32 %s10610_s1, 4  ;;  %v7421_v4 = vld [vmem:[#allocation2 + $0x18] sm:$0xff]  ;;  %s10611_s8 = sld [smem:[#allocation47_spill]]  ;;  %vm2565_vm0 = vcmask 523264  }
 0x199   : > { %p1607_p3 = scmp.lt.s32.totalorder %s6287_s26, 31  ;;  %v7420_v5 = vld [vmem:[#allocation2 + $0x10] sm:$0xff]  ;;  %v7419_v6 = vld [vmem:[#allocation2 + $0x8] sm:$0xff]  ;;  %v7418_v7 = vld [vmem:[#allocation2] sm:$0xff]  ;;  %s10612_s9 = sld [smem:[#allocation48_spill]]  ;;  %vm2941_vm1 = vcmask 261120  }
 0x19a   : > { %s10613_s11 = sld [smem:[#allocation50_spill]] }
 0x19b   : > { %s10630_s26 = smov (!%p1607_p3, %s6287_s26), 31  ;;  %s10614_s18 = sld [smem:[#allocation51_spill]] }
 0x19c   : > { %1751 = vmatpush.bf16.msra.mxu0 %v7424_v1  ;;  %s6288_s16 = sshll.u32 %s10630_s26, 2  ;;  %s10615_s10 = sld [smem:[#allocation54_spill]] }
 0x19d   : > { %s1610_s23 = scalar_lea.vmem %s10609_s22, %s6288_s16  ;;  %s10616_s21 = sld [smem:[#allocation55_spill]] }
 0x19e   : > { %v7410_v8 = vld [vmem:[%s1610_s23] sm:$0xff]  ;;  %v7411_v9 = vld [vmem:[%s1610_s23 + $0x8] sm:$0xff]  ;;  %v7412_v10 = vld [vmem:[%s1610_s23 + $0x10] sm:$0xff]  ;;  %s10617_s0 = sld [smem:[#allocation59_spill]] }
 0x19f   : > { %v7413_v11 = vld [vmem:[%s1610_s23 + $0x18] sm:$0xff]  ;;  %v7414_v12 = vld [vmem:[%s1610_s23 + $0x20] sm:$0xff]  ;;  %v7415_v13 = vld [vmem:[%s1610_s23 + $0x28] sm:$0xff]  ;;  %s10618_s7 = sld [smem:[#allocation57_spill]] }
 0x1a0   : > { %1752 = vmatpush.bf16.msra.mxu0 %v7423_v2  ;;  %v7416_v14 = vld [vmem:[%s1610_s23 + $0x30] sm:$0xff]  ;;  %v7417_v15 = vld [vmem:[%s1610_s23 + $0x38] sm:$0xff]  ;;  %v9674_v30 = vld [vmem:[%s10611_s8] ss:$0 sm:$0xff]  ;;  %s10619_s2 = sld [smem:[#allocation58_spill]] }
 0x1a1   : > { %v9678_v32 = vld [vmem:[%s10612_s9] ss:$0 sm:$0xff]  ;;  %s10620_s6 = sld [smem:[#allocation63_spill]] }
 0x1a2   : > { %s10621_s4 = sld [smem:[#allocation64_spill]] }
 0x1a3   : > { %s10622_s12 = sld [smem:[#allocation69_spill]] }
 0x1a4   : > { %1753 = vmatpush.bf16.msra.mxu0 %v7422_v3  ;;  %s10623_s22 = sld [smem:[#allocation70_spill]] }
 0x1a5   : > { %s10624_s1 = sld [smem:[#allocation68_spill]] }
 0x1a6   : > { %s10625_s16 = sld [smem:[#allocation74_spill]] }
 0x1a7   : > { %s10626_s23 = sld [smem:[#allocation75_spill]] }
 0x1a8   : > { %1754 = vmatpush.bf16.msra.mxu0 %v7421_v4  ;;  %s10627_s8 = sld [smem:[#allocation77_spill]] }
 0x1a9   : > { %s10628_s9 = sld [smem:[#allocation78_spill]] }
 0x1ac   : > { %1755 = vmatpush.bf16.msra.mxu0 %v7420_v5 }
 0x1b0   : > { %1756 = vmatpush.bf16.msra.mxu0 %v7419_v6 }
 0x1b4   : > { %1757 = vmatpush.bf16.msra.mxu0 %v7418_v7 }
 0x1b7   : > { %1758 = vmatmul.bf16.vlgmr.msra.gmra.mxu0 %v7410_v8 }
 0x1c7   : > { %1763 = vmatmul.bf16.gmra.mxu0 %v7411_v9 }
 0x1d7   : > { %1768 = vmatmul.bf16.gmra.mxu0 %v7412_v10 }
 0x1e7   : > { %1773 = vmatmul.bf16.gmra.mxu0 %v7413_v11 }
 0x1f7   : > { %1778 = vmatmul.bf16.gmra.mxu0 %v7414_v12 }
 0x207   : > { %1783 = vmatmul.bf16.gmra.mxu0 %v7415_v13 }
 0x217   : > { %1788 = vmatmul.bf16.gmra.mxu0 %v7416_v14 }
 0x227   : > { %1793 = vmatmul.bf16.gmra.mxu0 %v7417_v15 }
 0x234   : > { %v9667_v16 = vpop.f32.mrf.mxu0 }
 0x23c   : > { %v9669_v17 = vpop.f32.mrf.mxu0 }
 0x244   : > { %v9671_v18 = vpop.f32.mrf.mxu0 }
 0x245   : > { %v1804_v12 = vmul.f32 %v9674_v30, %v9671_v18 }
 0x24c   : > { %v1766_v19 = vpop.f32.mrf.mxu0 }
 0x24d   : > { %v1805_v8 = vmul.f32 %v9674_v30, %v1766_v19  ;;  %v1803_v19 = vmul.f32 %v9674_v30, %v9669_v17 }
 0x254   : > { %v1769_v20 = vpop.f32.mrf.mxu0 }
 0x255   : > { %v1806_v1 = vmul.f32 %v9674_v30, %v1769_v20 }
 0x257   : > { %v9737_v14 = vadd.f32 %v9678_v32, %v1806_v1 }
 0x259   : > { %v1841_v17 = vsub.f32 0.0, %v9737_v14 }
 0x25c   : > { %v1771_v21 = vpop.f32.mrf.mxu0 }
 0x25d   : > { %v1807_v62 = vmul.f32 %v9674_v30, %v1771_v21 }
 0x25f   : > { %v9732_v9 = vadd.f32 %v9678_v32, %v1807_v62 }
 0x264   : > { %v1774_v22 = vpop.f32.mrf.mxu0 }
 0x265   : > { %v1808_v55 = vmul.f32 %v9674_v30, %v1774_v22 }
 0x267   : > { %v9726_v2 = vadd.f32 %v9678_v32, %v1808_v55 }
 0x269   : > { %v1843_v15 = vsub.f32 0.0, %v9726_v2 }
 0x26c   : > { %v1776_v23 = vpop.f32.mrf.mxu0 }
 0x26d   : > { %v1809_v45 = vmul.f32 %v9674_v30, %v1776_v23  ;;  %v9743_v23 = vadd.f32 %v9678_v32, %v1805_v8 }
 0x26f   : > { %v9712_v56 = vadd.f32 %v9678_v32, %v1809_v45 }
 0x271   : > { %v1844_v3 = vsub.f32 0.0, %v9712_v56 }
 0x273   : > { %v1867_v13 = vmul.f32 1.442695, %v1844_v3 }
 0x274   : > { %v1779_v24 = vpop.f32.mrf.mxu0 }
 0x275   : > { %v1810_v46 = vmul.f32 %v9674_v30, %v1779_v24  ;;  %v1842_v24 = vsub.f32 0.0, %v9732_v9 }
 0x277   : > { %v9715_v57 = vadd.f32 %v9678_v32, %v1810_v46 }
 0x279   : > { %v1845_v4 = vsub.f32 0.0, %v9715_v57 }
 0x27b   : > { %v1869_v20 = vmul.f32 1.442695, %v1845_v4 }
 0x27c   : > { %v1781_v25 = vpop.f32.mrf.mxu0 }
 0x27d   : > { %v1811_v43 = vmul.f32 %v9674_v30, %v1781_v25 }
 0x27f   : > { %v9707_v53 = vadd.f32 %v9678_v32, %v1811_v43 }
 0x281   : > { %v1846_v63 = vsub.f32 0.0, %v9707_v53 }
 0x283   : > { %v1871_v10 = vmul.f32 1.442695, %v1846_v63 }
 0x284   : > { %v1784_v26 = vpop.f32.mrf.mxu0 }
 0x285   : > { %v1812_v38 = vmul.f32 %v9674_v30, %v1784_v26  ;;  %v1802_v26 = vmul.f32 %v9674_v30, %v9667_v16 }
 0x287   : > { %v9702_v47 = vadd.f32 %v9678_v32, %v1812_v38  ;;  %v1863_v38 = vmul.f32 1.442695, %v1842_v24 }
 0x289   : > { %v1847_v58 = vsub.f32 0.0, %v9702_v47 }
 0x28b   : > { %v1873_v5 = vmul.f32 1.442695, %v1847_v58 }
 0x28c   : > { %v1786_v27 = vpop.f32.mrf.mxu0 }
 0x28d   : > { %v1813_v34 = vmul.f32 %v9674_v30, %v1786_v27 }
 0x28f   : > { %v9694_v41 = vadd.f32 %v9678_v32, %v1813_v34 }
 0x291   : > { %v1848_v50 = vsub.f32 0.0, %v9694_v41 }
 0x293   : > { %v1875_v61 = vmul.f32 1.442695, %v1848_v50 }
 0x294   : > { %v1789_v28 = vpop.f32.mrf.mxu0 }
 0x295   : > { %v1814_v33 = vmul.f32 %v9674_v30, %v1789_v28  ;;  %v9749_v28 = vadd.f32 %v9678_v32, %v1804_v12 }
 0x297   : > { %v9688_v39 = vadd.f32 %v9678_v32, %v1814_v33  ;;  %v1839_v43 = vsub.f32 0.0, %v9749_v28 }
 0x299   : > { %v1849_v48 = vsub.f32 0.0, %v9688_v39 }
 0x29b   : > { %v1877_v59 = vmul.f32 1.442695, %v1849_v48 }
 0x29c   : > { %v1791_v29 = vpop.f32.mrf.mxu0 }
 0x29d   : > { %v1815_v31 = vmul.f32 %v9674_v30, %v1791_v29  ;;  %v1865_v29 = vmul.f32 1.442695, %v1843_v15 }
 0x29f   : > { %v9683_v35 = vadd.f32 %v9678_v32, %v1815_v31 }
 0x2a1   : > { %v1850_v42 = vsub.f32 0.0, %v9683_v35 }
 0x2a3   : > { %v1879_v51 = vmul.f32 1.442695, %v1850_v42  ;;  %v9757_v42 = vadd.f32 %v9678_v32, %v1802_v26 }
 0x2a4   : > { %v1794_v36 = vpop.f32.mrf.mxu0 }
 0x2a5   : > { %v1816_v37 = vmul.f32 %v9674_v30, %v1794_v36  ;;  %v9753_v36 = vadd.f32 %v9678_v32, %v1803_v19  ;;  %v1837_v55 = vsub.f32 0.0, %v9757_v42 }
 0x2a7   : > { %v9691_v40 = vadd.f32 %v9678_v32, %v1816_v37  ;;  %v1840_v37 = vsub.f32 0.0, %v9743_v23 }
 0x2a9   : > { %v1851_v44 = vsub.f32 0.0, %v9691_v40  ;;  %v1859_v50 = vmul.f32 1.442695, %v1840_v37 }
 0x2ab   : > { %v1881_v49 = vmul.f32 1.442695, %v1851_v44  ;;  %v1861_v44 = vmul.f32 1.442695, %v1841_v17 }
 0x2ac   : > { %v1796_v52 = vpop.f32.mrf.mxu0 }
 0x2ad   : > { %v1817_v54 = vmul.f32 %v9674_v30, %v1796_v52  ;;  %7960 = vpow2.f32 %v1881_v49  ;;  %v1838_v49 = vsub.f32 0.0, %v9753_v36 }
 0x2ae   : > { %7962 = vpow2.f32 %v1879_v51 }
 0x2af   : > { %v9719_v60 = vadd.f32 %v9678_v32, %v1817_v54  ;;  %7964 = vpow2.f32 %v1877_v59  ;;  %v1857_v32 = vmul.f32 1.442695, %v1839_v43  ;;  %v1855_v62 = vmul.f32 1.442695, %v1838_v49 }
 0x2b0   : > { %7966 = vpow2.f32 %v1875_v61 }
 0x2b1   : > { %v1852_v0 = vsub.f32 0.0, %v9719_v60 }
 0x2b3   : > { %v1883_v6 = vmul.f32 1.442695, %v1852_v0  ;;  %v7961_v7 = vpop.eup %7960 }
 0x2b4   : > { %v7963_v11 = vpop.eup %7962  ;;  %v1899_v21 = vadd.f32 1.0, %v7961_v7 }
 0x2b5   : > { %7968 = vpow2.f32 %v1883_v6  ;;  %v7965_v22 = vpop.eup %7964  ;;  %v1898_v18 = vadd.f32 1.0, %v7963_v11 }
 0x2b6   : > { %7970 = vpow2.f32 %v1873_v5  ;;  %v7967_v25 = vpop.eup %7966  ;;  %v1897_v31 = vadd.f32 1.0, %v7965_v22  ;;  %v1853_v5 = vmul.f32 1.442695, %v1837_v55  ;;  %v7430_v55 = vld [vmem:[#allocation4 + $0x20] sm:$0xff] }
 0x2b7   : > { %7972 = vpow2.f32 %v1871_v10  ;;  %v1896_v16 = vadd.f32 1.0, %v7967_v25 }
 0x2b8   : > { %7974 = vpow2.f32 %v1867_v13 }
 0x2b9   : > { %7976 = vpow2.f32 %v1869_v20 }
 0x2ba   : > { %7978 = vrcp.f32 %v1899_v21 }
 0x2bb   : > { %v7969_v27 = vpop.eup %7968  ;;  %7980 = vrcp.f32 %v1898_v18 }
 0x2bc   : > { %v1900_v33 = vadd.f32 1.0, %v7969_v27  ;;  %v7971_v34 = vpop.eup %7970 }
 0x2bd   : > { %v7973_v30 = vpop.eup %7972  ;;  %v1895_v46 = vadd.f32 1.0, %v7971_v34 }
 0x2be   : > { %7982 = vrcp.f32 %v1900_v33  ;;  %v7975_v45 = vpop.eup %7974  ;;  %v1894_v52 = vadd.f32 1.0, %v7973_v30 }
 0x2bf   : > { %7984 = vpow2.f32 %v1865_v29  ;;  %v7977_v48 = vpop.eup %7976  ;;  %v1892_v3 = vadd.f32 1.0, %v7975_v45 }
 0x2c0   : > { %7986 = vrcp.f32 %v1897_v31  ;;  %v7979_v51 = vpop.eup %7978  ;;  %v1893_v59 = vadd.f32 1.0, %v7977_v48 }
 0x2c1   : > { %7988 = vpow2.f32 %v1863_v38  ;;  %v7981_v54 = vpop.eup %7980  ;;  %v9763_v63 = vmul.f32 %v7979_v51, %v9691_v40  ;;  %v7426_v51 = vld [vmem:[#allocation4] sm:$0xff] }
 0x2c2   : > { %7990 = vrcp.f32 %v1896_v16  ;;  %v9771_v7 = vmul.f32 %v7981_v54, %v9683_v35  ;;  %v7429_v54 = vld [vmem:[#allocation4 + $0x18] sm:$0xff] }
 0x2c3   : > { %7992 = vpow2.f32 %v1861_v44 }
 0x2c4   : > { %v7983_v58 = vpop.eup %7982  ;;  %7994 = vrcp.f32 %v1895_v46 }
 0x2c5   : > { %v7985_v61 = vpop.eup %7984  ;;  %7996 = vpow2.f32 %v1859_v50  ;;  %v9766_v0 = vmul.f32 %v7983_v58, %v9719_v60  ;;  %v7443_v58 = vld [vmem:[#allocation6 + $0x28] sm:$0xff] }
 0x2c6   : > { %v7987_v1 = vpop.eup %7986  ;;  %7998 = vrcp.f32 %v1894_v52  ;;  %v1891_v10 = vadd.f32 1.0, %v7985_v61  ;;  %v7427_v52 = vld [vmem:[#allocation4 + $0x8] sm:$0xff]  ;;  %v7441_v61 = vld [vmem:[#allocation6 + $0x18] sm:$0xff] }
 0x2c7   : > { %v7989_v4 = vpop.eup %7988  ;;  %8000 = vpow2.f32 %v1857_v32  ;;  %v2014_v6 = vpack.c.bf16 %v9766_v0, %v9763_v63  ;;  %v9774_v60 = vmul.f32 %v7987_v1, %v9688_v39  ;;  %v7444_v32 = vld [vmem:[#allocation6 + $0x30] sm:$0xff] }
 0x2c8   : > { %v7991_v8 = vpop.eup %7990  ;;  %8002 = vrcp.f32 %v1893_v59  ;;  %v1890_v12 = vadd.f32 1.0, %v7989_v4  ;;  %v7442_v59 = vld [vmem:[#allocation6 + $0x20] sm:$0xff]  ;;  %v7432_v1 = vld [vmem:[#allocation4 + $0x30] sm:$0xff] }
 0x2c9   : > { %v7993_v40 = vpop.eup %7992  ;;  %8004 = vpow2.f32 %v1855_v62  ;;  %2087 = vmatpush.bf16.msra.mxu1 %v2014_v6  ;;  %v2013_v15 = vpack.c.bf16 %v9771_v7, %v9774_v60  ;;  %v9779_v35 = vmul.f32 %v7991_v8, %v9694_v41  ;;  %v7440_v62 = vld [vmem:[#allocation6 + $0x10] sm:$0xff]  ;;  %v7438_v4 = vld [vmem:[#allocation6] sm:$0xff] }
 0x2ca   : > { %v7995_v11 = vpop.eup %7994  ;;  %8006 = vrcp.f32 %v1892_v3  ;;  %v1889_v19 = vadd.f32 1.0, %v7993_v40  ;;  %v7439_v3 = vld [vmem:[#allocation6 + $0x8] sm:$0xff]  ;;  %v7434_v6 = vld [vmem:[#allocation4 + $0x40] sm:$0xff] }
 0x2cb   : > { %v7997_v13 = vpop.eup %7996  ;;  %8008 = vpow2.f32 %v1853_v5  ;;  %v9782_v22 = vmul.f32 %v7995_v11, %v9702_v47  ;;  %v7433_v5 = vld [vmem:[#allocation4 + $0x38] sm:$0xff] }
 0x2cc   : > { %v7999_v20 = vpop.eup %7998  ;;  %8010 = vrcp.f32 %v1891_v10  ;;  %v1888_v24 = vadd.f32 1.0, %v7997_v13  ;;  %v7453_v11 = vld [vmem:[#allocation6 + $0x78] sm:$0xff]  ;;  %v7435_v13 = vld [vmem:[#allocation4 + $0x48] sm:$0xff] }
 0x2cd   : > { %v8001_v21 = vpop.eup %8000  ;;  %2088 = vmatpush.bf16.msra.mxu1 %v2013_v15  ;;  %8012 = vrcp.f32 %v1890_v12  ;;  %v2012_v25 = vpack.c.bf16 %v9779_v35, %v9782_v22  ;;  %v9787_v26 = vmul.f32 %v7999_v20, %v9707_v53  ;;  %2341 = vmatpush.bf16.msra.mxu3 %v7453_v11  ;;  %v7452_v12 = vld [vmem:[#allocation6 + $0x70] sm:$0xff]  ;;  %v7451_v20 = vld [vmem:[#allocation6 + $0x68] sm:$0xff] }
 0x2ce   : > { %v8003_v39 = vpop.eup %8002  ;;  %v1887_v27 = vadd.f32 1.0, %v8001_v21  ;;  %8014 = vrcp.f32 %v1889_v19  ;;  %v7450_v19 = vld [vmem:[#allocation6 + $0x60] sm:$0xff] }
 0x2cf   : > { %v8005_v18 = vpop.eup %8004  ;;  %v9790_v29 = vmul.f32 %v8003_v39, %v9715_v57  ;;  %8016 = vrcp.f32 %v1888_v24  ;;  %v7449_v24 = vld [vmem:[#allocation6 + $0x58] sm:$0xff] }
 0x2d0   : > { %v8007_v41 = vpop.eup %8006  ;;  %v1886_v31 = vadd.f32 1.0, %v8005_v18  ;;  %8018 = vrcp.f32 %v1887_v27  ;;  %v7448_v18 = vld [vmem:[#allocation6 + $0x50] sm:$0xff]  ;;  %v7447_v27 = vld [vmem:[#allocation6 + $0x48] sm:$0xff] }
 0x2d1   : > { %v8009_v17 = vpop.eup %8008  ;;  %2089 = vmatpush.bf16.msra.mxu1 %v2012_v25  ;;  %v2011_v33 = vpack.c.bf16 %v9787_v26, %v9790_v29  ;;  %v9795_v34 = vmul.f32 %v8007_v41, %v9712_v56  ;;  %2342 = vmatpush.bf16.msra.mxu3 %v7452_v12  ;;  %v7436_v25 = vld [vmem:[#allocation4 + $0x50] sm:$0xff] }
 0x2d2   : > { %v8011_v47 = vpop.eup %8010  ;;  %v1885_v53 = vadd.f32 1.0, %v8009_v17  ;;  %8020 = vrcp.f32 %v1886_v31  ;;  %v7446_v17 = vld [vmem:[#allocation6 + $0x40] sm:$0xff] }
 0x2d3   : > { %v8013_v37 = vpop.eup %8012  ;;  %v9798_v38 = vmul.f32 %v8011_v47, %v9726_v2 }
 0x2d4   : > { %v8015_v16 = vpop.eup %8014  ;;  %v9803_v30 = vmul.f32 %v8013_v37, %v9732_v9  ;;  %8022 = vrcp.f32 %v1885_v53 }
 0x2d5   : > { %2090 = vmatpush.bf16.msra.mxu1 %v2011_v33  ;;  %v2010_v57 = vpack.c.bf16 %v9795_v34, %v9798_v38  ;;  %v8017_v43 = vpop.eup %8016  ;;  %v9806_v56 = vmul.f32 %v8015_v16, %v9737_v14  ;;  %2343 = vmatpush.bf16.msra.mxu3 %v7451_v20  ;;  %v7437_v33 = vld [vmem:[#allocation4 + $0x58] sm:$0xff] }
 0x2d6   : > { %v8019_v44 = vpop.eup %8018  ;;  %v9811_v2 = vmul.f32 %v8017_v43, %v9743_v23 }
 0x2d7   : > { %v2009_v45 = vpack.c.bf16 %v9803_v30, %v9806_v56  ;;  %v9814_v48 = vmul.f32 %v8019_v44, %v9749_v28  ;;  %v7428_v28 = vld [vmem:[#allocation4 + $0x10] sm:$0xff] }
 0x2d8   : > { %v8021_v46 = vpop.eup %8020 }
 0x2d9   : > { %2091 = vmatpush.bf16.msra.mxu1 %v2010_v57  ;;  %v2008_v49 = vpack.c.bf16 %v9811_v2, %v9814_v48  ;;  %v9819_v50 = vmul.f32 %v8021_v46, %v9753_v36  ;;  %v7445_v36 = vld [vmem:[#allocation6 + $0x38] sm:$0xff]  ;;  %2344 = vmatpush.bf16.msra.mxu3 %v7450_v19  ;;  %v7460_v46 = vld [vmem:[#allocation6 + $0xb0] sm:$0xff] }
 0x2da   : > { %v8023_v9 = vpop.eup %8022  ;;  %2312 = vmatpush.bf16.msra.mxu2 %v7445_v36  ;;  %v7455_v36 = vld [vmem:[#allocation6 + $0x88] sm:$0xff] }
 0x2db   : > { %v9822_v14 = vmul.f32 %v8023_v9, %v9757_v42  ;;  %v7431_v42 = vld [vmem:[#allocation4 + $0x28] sm:$0xff] }
 0x2dd   : > { %2092 = vmatpush.bf16.msra.mxu1 %v2009_v45  ;;  %v2007_v23 = vpack.c.bf16 %v9819_v50, %v9822_v14  ;;  %2345 = vmatpush.bf16.msra.mxu3 %v7449_v24  ;;  %v7461_v45 = vld [vmem:[#allocation6 + $0xb8] sm:$0xff] }
 0x2de   : > { %2313 = vmatpush.bf16.msra.mxu2 %v7444_v32  ;;  %v7454_v32 = vld [vmem:[#allocation6 + $0x80] sm:$0xff] }
 0x2e1   : > { %2093 = vmatpush.bf16.msra.mxu1 %v2008_v49  ;;  %2346 = vmatpush.bf16.msra.mxu3 %v7448_v18  ;;  %v7459_v49 = vld [vmem:[#allocation6 + $0xa8] sm:$0xff] }
 0x2e2   : > { %2314 = vmatpush.bf16.msra.mxu2 %v7443_v58 }
 0x2e5   : > { %2094 = vmatpush.bf16.msra.mxu1 %v2007_v23  ;;  %2347 = vmatpush.bf16.msra.mxu3 %v7447_v27  ;;  %v7458_v23 = vld [vmem:[#allocation6 + $0xa0] sm:$0xff] }
 0x2e6   : > { %2315 = vmatpush.bf16.msra.mxu2 %v7442_v59 }
 0x2e8   : > { %2095 = vmatmul.bf16.vlgmr.msra.gmra.mxu1 %v7426_v51 }
 0x2e9   : > { %2348 = vmatpush.bf16.msra.mxu3 %v7446_v17 }
 0x2ea   : > { %2316 = vmatpush.bf16.msra.mxu2 %v7441_v61 }
 0x2ee   : > { %2317 = vmatpush.bf16.msra.mxu2 %v7440_v62 }
 0x2f2   : > { %2318 = vmatpush.bf16.msra.mxu2 %v7439_v3 }
 0x2f6   : > { %2319 = vmatpush.bf16.msra.mxu2 %v7438_v4 }
 0x2f8   : > { %2100 = vmatmul.bf16.gmra.mxu1 %v7427_v52 }
 0x2fa   : > { %2370 = vmatpush.bf16.msrb.mxu2 %v7461_v45 }
 0x2fe   : > { %2371 = vmatpush.bf16.msrb.mxu2 %v7460_v46 }
 0x302   : > { %2372 = vmatpush.bf16.msrb.mxu2 %v7459_v49 }
 0x306   : > { %2373 = vmatpush.bf16.msrb.mxu2 %v7458_v23 }
 0x308   : > { %2105 = vmatmul.bf16.gmra.mxu1 %v7428_v28  ;;  %v7457_v28 = vld [vmem:[#allocation6 + $0x98] sm:$0xff] }
 0x30a   : > { %2374 = vmatpush.bf16.msrb.mxu2 %v7457_v28 }
 0x318   : > { %2110 = vmatmul.bf16.gmra.mxu1 %v7429_v54  ;;  %v7456_v54 = vld [vmem:[#allocation6 + $0x90] sm:$0xff] }
 0x319   : > { %2375 = vmatpush.bf16.msrb.mxu2 %v7456_v54  ;;  %v7948_v54 = vld [vmem:[%s10613_s11] ss:$0 sm:$0xff]  ;;  %s7409_s11 = sshll.u32 %s10630_s26, 4 }
 0x31d   : > { %2376 = vmatpush.bf16.msrb.mxu2 %v7455_v36 }
 0x321   : > { %2377 = vmatpush.bf16.msrb.mxu2 %v7454_v32 }
 0x328   : > { %2115 = vmatmul.bf16.gmra.mxu1 %v7430_v55 }
 0x338   : > { %2120 = vmatmul.bf16.gmra.mxu1 %v7431_v42 }
 0x348   : > { %2125 = vmatmul.bf16.gmra.mxu1 %v7432_v1 }
 0x358   : > { %2130 = vmatmul.bf16.gmra.mxu1 %v7433_v5 }
 0x365   : > { %v2096_v8 = vpop.f32.mrf.mxu1 }
 0x368   : > { %2135 = vmatmul.bf16.gmra.mxu1 %v7434_v6 }
 0x36d   : > { %v2098_v10 = vpop.f32.mrf.mxu1 }
 0x36e   : > { %v2156_v40 = vpack.c.bf16 %v2098_v10, %v2096_v8 }
 0x370   : > { %2320 = vmatmul.bf16.vlgmr.msra.gmra.mxu2 %v2156_v40 }
 0x375   : > { %v2101_v15 = vpop.f32.mrf.mxu1 }
 0x378   : > { %2140 = vmatmul.bf16.gmra.mxu1 %v7435_v13 }
 0x37d   : > { %v2103_v21 = vpop.f32.mrf.mxu1 }
 0x37e   : > { %v2159_v39 = vpack.c.bf16 %v2103_v21, %v2101_v15 }
 0x380   : > { %2325 = vmatmul.bf16.gmra.mxu2 %v2159_v39 }
 0x385   : > { %v2106_v41 = vpop.f32.mrf.mxu1 }
 0x388   : > { %2145 = vmatmul.bf16.gmra.mxu1 %v7436_v25 }
 0x38d   : > { %v2108_v47 = vpop.f32.mrf.mxu1 }
 0x38e   : > { %v2162_v31 = vpack.c.bf16 %v2108_v47, %v2106_v41 }
 0x390   : > { %2330 = vmatmul.bf16.gmra.mxu2 %v2162_v31 }
 0x395   : > { %v2111_v37 = vpop.f32.mrf.mxu1 }
 0x398   : > { %2150 = vmatmul.bf16.gmra.mxu1 %v7437_v33 }
 0x39d   : > { %v2113_v53 = vpop.f32.mrf.mxu1 }
 0x39e   : > { %v2165_v16 = vpack.c.bf16 %v2113_v53, %v2111_v37 }
 0x3a0   : > { %2335 = vmatmul.bf16.gmra.mxu2 %v2165_v16 }
 0x3a5   : > { %v2116_v57 = vpop.f32.mrf.mxu1 }
 0x3ad   : > { %v2118_v43 = vpop.f32.mrf.mxu1 }
 0x3ae   : > { %v2157_v44 = vpack.c.bf16 %v2118_v43, %v2116_v57 }
 0x3b0   : > { %2349 = vmatmul.bf16.vlgmr.msra.gmra.mxu3 %v2157_v44 }
 0x3b5   : > { %v2121_v9 = vpop.f32.mrf.mxu1 }
 0x3bd   : > { %v2123_v51 = vpop.f32.mrf.mxu1 }
 0x3be   : > { %v2160_v52 = vpack.c.bf16 %v2123_v51, %v2121_v9 }
 0x3c0   : > { %2354 = vmatmul.bf16.gmra.mxu3 %v2160_v52 }
 0x3c5   : > { %v2126_v55 = vpop.f32.mrf.mxu1 }
 0x3cd   : > { %v2128_v42 = vpop.f32.mrf.mxu1 }
 0x3ce   : > { %v2163_v58 = vpack.c.bf16 %v2128_v42, %v2126_v55 }
 0x3d0   : > { %2359 = vmatmul.bf16.gmra.mxu3 %v2163_v58 }
 0x3d5   : > { %v2131_v59 = vpop.f32.mrf.mxu1 }
 0x3dd   : > { %v2133_v61 = vpop.f32.mrf.mxu1 }
 0x3de   : > { %v2166_v62 = vpack.c.bf16 %v2133_v61, %v2131_v59  ;;  %v7949_v59 = vld [vmem:[%s10614_s18] ss:$0 sm:$0xff]  ;;  %s10449_s18 = scalar_lea.vmem %s10628_s9, %s7409_s11 }
 0x3e0   : > { %2364 = vmatmul.bf16.gmra.mxu3 %v2166_v62 }
 0x3e5   : > { %v2136_v1 = vpop.f32.mrf.mxu1 }
 0x3ed   : > { %v2138_v3 = vpop.f32.mrf.mxu1 }
 0x3ee   : > { %v2158_v4 = vpack.c.bf16 %v2138_v3, %v2136_v1 }
 0x3f0   : > { %2378 = vmatmul.bf16.vlgmr.msrb.gmra.mxu2 %v2158_v4 }
 0x3f3   : > { %v2321_v20 = vpop.f32.mrf.mxu2 }
 0x3f5   : > { %v2141_v5 = vpop.f32.mrf.mxu1 }
 0x3fb   : > { %v2323_v19 = vpop.f32.mrf.mxu2 }
 0x3fd   : > { %v2143_v6 = vpop.f32.mrf.mxu1 }
 0x3fe   : > { %v2161_v8 = vpack.c.bf16 %v2143_v6, %v2141_v5 }
 0x400   : > { %2383 = vmatmul.bf16.gmra.mxu2 %v2161_v8 }
 0x403   : > { %v2326_v24 = vpop.f32.mrf.mxu2 }
 0x405   : > { %v2146_v10 = vpop.f32.mrf.mxu1 }
 0x40b   : > { %v2328_v18 = vpop.f32.mrf.mxu2 }
 0x40d   : > { %v2148_v40 = vpop.f32.mrf.mxu1 }
 0x40e   : > { %v2164_v11 = vpack.c.bf16 %v2148_v40, %v2146_v10 }
 0x410   : > { %2388 = vmatmul.bf16.gmra.mxu2 %v2164_v11 }
 0x413   : > { %v2331_v25 = vpop.f32.mrf.mxu2 }
 0x415   : > { %v2151_v12 = vpop.f32.mrf.mxu1 }
 0x41b   : > { %v2333_v41 = vpop.f32.mrf.mxu2 }
 0x41d   : > { %v2153_v13 = vpop.f32.mrf.mxu1 }
 0x41e   : > { %v2167_v15 = vpack.c.bf16 %v2153_v13, %v2151_v12 }
 0x420   : > { %2393 = vmatmul.bf16.gmra.mxu2 %v2167_v15 }
 0x423   : > { %v2336_v27 = vpop.f32.mrf.mxu2 }
 0x42b   : > { %v2338_v17 = vpop.f32.mrf.mxu2 }
 0x433   : > { %v2350_v21 = vpop.f32.mrf.mxu3 }
 0x434   : > { %v2351_v39 = vadd.f32 %v2350_v21, %v2321_v20 }
 0x43b   : > { %v2352_v47 = vpop.f32.mrf.mxu3 }
 0x43c   : > { %v2353_v62 = vadd.f32 %v2352_v47, %v2323_v19 }
 0x443   : > { %v2355_v37 = vpop.f32.mrf.mxu3 }
 0x444   : > { %v2356_v42 = vadd.f32 %v2355_v37, %v2326_v24 }
 0x44b   : > { %v2357_v16 = vpop.f32.mrf.mxu3 }
 0x44c   : > { %v2358_v28 = vadd.f32 %v2357_v16, %v2328_v18 }
 0x453   : > { %v2360_v43 = vpop.f32.mrf.mxu3 }
 0x454   : > { %v2361_v52 = vadd.f32 %v2360_v43, %v2331_v25 }
 0x45b   : > { %v2362_v45 = vpop.f32.mrf.mxu3 }
 0x45c   : > { %v2363_v9 = vadd.f32 %v2362_v45, %v2333_v41 }
 0x463   : > { %v2365_v23 = vpop.f32.mrf.mxu3 }
 0x464   : > { %v2366_v58 = vadd.f32 %v2365_v23, %v2336_v27 }
 0x46b   : > { %v2367_v40 = vpop.f32.mrf.mxu3 }
 0x46c   : > { %v2368_v21 = vadd.f32 %v2367_v40, %v2338_v17 }
 0x473   : > { %v2379_v31 = vpop.f32.mrf.mxu2 }
 0x474   : > { %v2380_v33 = vadd.f32 %v2379_v31, %v2351_v39 }
 0x476   : > { %v2402_v24 = vmul.f32 %v7948_v54, %v2380_v33 }
 0x47b   : > { %v2381_v53 = vpop.f32.mrf.mxu2 }
 0x47c   : > { %v2382_v8 = vadd.f32 %v2381_v53, %v2353_v62 }
 0x47e   : > { %v2403_v39 = vmul.f32 %v7948_v54, %v2382_v8 }
 0x480   : > { %v9839_v16 = vadd.f32 %v7949_v59, %v2403_v39 }
 0x483   : > { %v2384_v57 = vpop.f32.mrf.mxu2 }
 0x484   : > { %v2385_v1 = vadd.f32 %v2384_v57, %v2356_v42  ;;  %v9841_v57 = vadd.f32 %v7949_v59, %v2402_v24 }
 0x486   : > { %v2404_v11 = vmul.f32 %v7948_v54, %v2385_v1 }
 0x488   : > { %v9835_v25 = vadd.f32 %v7949_v59, %v2404_v11 }
 0x48a   : > { %v2423_v17 = vsub.f32 0.0, %v9835_v25 }
 0x48b   : > { %v2386_v44 = vpop.f32.mrf.mxu2 }
 0x48c   : > { %v2387_v36 = vadd.f32 %v2386_v44, %v2358_v28 }
 0x48e   : > { %v2405_v5 = vmul.f32 %v7948_v54, %v2387_v36 }
 0x490   : > { %v9833_v20 = vadd.f32 %v7949_v59, %v2405_v5 }
 0x492   : > { %v2424_v37 = vsub.f32 0.0, %v9833_v20 }
 0x493   : > { %v2389_v46 = vpop.f32.mrf.mxu2 }
 0x494   : > { %v2390_v55 = vadd.f32 %v2389_v46, %v2361_v52  ;;  %v2435_v44 = vmul.f32 1.442695, %v2424_v37  ;;  %v2422_v46 = vsub.f32 0.0, %v9839_v16 }
 0x496   : > { %v2406_v3 = vmul.f32 %v7948_v54, %v2390_v55  ;;  %v2431_v52 = vmul.f32 1.442695, %v2422_v46  ;;  %v7474_v46 = vld [vmem:[#allocation9 + $0x30] sm:$0xff] }
 0x498   : > { %v9830_v12 = vadd.f32 %v7949_v59, %v2406_v3 }
 0x49a   : > { %v2425_v41 = vsub.f32 0.0, %v9830_v12 }
 0x49b   : > { %v2391_v49 = vpop.f32.mrf.mxu2 }
 0x49c   : > { %v2392_v51 = vadd.f32 %v2391_v49, %v2363_v9  ;;  %v2437_v43 = vmul.f32 1.442695, %v2425_v41  ;;  %v2421_v9 = vsub.f32 0.0, %v9841_v57  ;;  %v2433_v49 = vmul.f32 1.442695, %v2423_v17 }
 0x49e   : > { %v2407_v32 = vmul.f32 %v7948_v54, %v2392_v51 }
 0x4a0   : > { %v9828_v6 = vadd.f32 %v7949_v59, %v2407_v32 }
 0x4a2   : > { %v2426_v15 = vsub.f32 0.0, %v9828_v6 }
 0x4a3   : > { %v2394_v61 = vpop.f32.mrf.mxu2 }
 0x4a4   : > { %v2395_v4 = vadd.f32 %v2394_v61, %v2366_v58  ;;  %v2439_v31 = vmul.f32 1.442695, %v2426_v15 }
 0x4a6   : > { %v2408_v10 = vmul.f32 %v7948_v54, %v2395_v4 }
 0x4a8   : > { %v2419_v13 = vadd.f32 %v7949_v59, %v2408_v10 }
 0x4aa   : > { %v2427_v19 = vsub.f32 0.0, %v2419_v13 }
 0x4ab   : > { %v2396_v18 = vpop.f32.mrf.mxu2 }
 0x4ac   : > { %v2441_v27 = vmul.f32 1.442695, %v2427_v19  ;;  %v2397_v47 = vadd.f32 %v2396_v18, %v2368_v21 }
 0x4ae   : > { %v2409_v53 = vmul.f32 %v7948_v54, %v2397_v47  ;;  %8024 = vpow2.f32 %v2441_v27  ;;  %v2429_v54 = vmul.f32 1.442695, %v2421_v9  ;;  %v7473_v9 = vld [vmem:[#allocation9 + $0x28] sm:$0xff] }
 0x4af   : > { %8026 = vpow2.f32 %v2439_v31 }
 0x4b0   : > { %v2420_v33 = vadd.f32 %v7949_v59, %v2409_v53  ;;  %8028 = vpow2.f32 %v2437_v43 }
 0x4b1   : > { %8030 = vpow2.f32 %v2435_v44  ;;  %v7464_v44 = vld [vmem:[#allocation7 + $0x10] sm:$0xff] }
 0x4b2   : > { %v2428_v45 = vsub.f32 0.0, %v2420_v33 }
 0x4b4   : > { %v2443_v23 = vmul.f32 1.442695, %v2428_v45  ;;  %v8025_v51 = vpop.eup %8024  ;;  %v7475_v45 = vld [vmem:[#allocation9 + $0x38] sm:$0xff] }
 0x4b5   : > { %v8027_v28 = vpop.eup %8026  ;;  %v2451_v55 = vadd.f32 1.0, %v8025_v51  ;;  %2773 = vmatpush.bf16.msra.mxu2 %v7475_v45  ;;  %v7471_v51 = vld [vmem:[#allocation9 + $0x18] sm:$0xff] }
 0x4b6   : > { %8032 = vpow2.f32 %v2443_v23  ;;  %v8029_v36 = vpop.eup %8028  ;;  %v2450_v32 = vadd.f32 1.0, %v8027_v28  ;;  %v7466_v23 = vld [vmem:[#allocation7 + $0x20] sm:$0xff] }
 0x4b7   : > { %8034 = vpow2.f32 %v2433_v49  ;;  %v8031_v42 = vpop.eup %8030  ;;  %v2449_v59 = vadd.f32 1.0, %v8029_v36  ;;  %v7472_v49 = vld [vmem:[#allocation9 + $0x20] sm:$0xff]  ;;  %v7470_v28 = vld [vmem:[#allocation9 + $0x10] sm:$0xff]  ;;  %v7483_v36 = vld [vmem:[#allocation9 + $0x78] sm:$0xff] }
 0x4b8   : > { %8036 = vpow2.f32 %v2431_v52  ;;  %v2448_v1 = vadd.f32 1.0, %v8031_v42  ;;  %v7467_v52 = vld [vmem:[#allocation7 + $0x28] sm:$0xff]  ;;  %v7482_v42 = vld [vmem:[#allocation9 + $0x70] sm:$0xff] }
 0x4b9   : > { %8038 = vpow2.f32 %v2429_v54  ;;  %2774 = vmatpush.bf16.msra.mxu2 %v7474_v46  ;;  %v7469_v54 = vld [vmem:[#allocation9 + $0x8] sm:$0xff] }
 0x4ba   : > { %8040 = vrcp.f32 %v2451_v55  ;;  %v7468_v55 = vld [vmem:[#allocation9] sm:$0xff] }
 0x4bb   : > { %8042 = vrcp.f32 %v2450_v32  ;;  %v7490_v32 = vld [vmem:[#allocation9 + $0xb0] sm:$0xff] }
 0x4bc   : > { %v8033_v58 = vpop.eup %8032 }
 0x4bd   : > { %v2452_v61 = vadd.f32 1.0, %v8033_v58  ;;  %v8035_v62 = vpop.eup %8034  ;;  %2775 = vmatpush.bf16.msra.mxu2 %v7473_v9  ;;  %v7481_v58 = vld [vmem:[#allocation9 + $0x68] sm:$0xff] }
 0x4be   : > { %v8037_v3 = vpop.eup %8036  ;;  %v2447_v4 = vadd.f32 1.0, %v8035_v62  ;;  %v7489_v62 = vld [vmem:[#allocation9 + $0xa8] sm:$0xff] }
 0x4bf   : > { %8044 = vrcp.f32 %v2452_v61  ;;  %v8039_v5 = vpop.eup %8038  ;;  %v2446_v10 = vadd.f32 1.0, %v8037_v3  ;;  %v7479_v61 = vld [vmem:[#allocation9 + $0x58] sm:$0xff] }
 0x4c0   : > { %8046 = vrcp.f32 %v2449_v59  ;;  %v8041_v8 = vpop.eup %8040  ;;  %v2445_v15 = vadd.f32 1.0, %v8039_v5  ;;  %v7480_v59 = vld [vmem:[#allocation9 + $0x60] sm:$0xff] }
 0x4c1   : > { %8048 = vrcp.f32 %v2448_v1  ;;  %v8043_v40 = vpop.eup %8042  ;;  %v9846_v21 = vmul.f32 %v8041_v8, %v2419_v13  ;;  %2776 = vmatpush.bf16.msra.mxu2 %v7472_v49  ;;  %v7478_v1 = vld [vmem:[#allocation9 + $0x50] sm:$0xff]  ;;  %v7476_v5 = vld [vmem:[#allocation9 + $0x40] sm:$0xff] }
 0x4c2   : > { %8050 = vrcp.f32 %v2447_v4  ;;  %v9853_v18 = vmul.f32 %v8043_v40, %v9828_v6  ;;  %v7477_v4 = vld [vmem:[#allocation9 + $0x48] sm:$0xff]  ;;  %v7488_v40 = vld [vmem:[#allocation9 + $0xa0] sm:$0xff] }
 0x4c3   : > { %8052 = vrcp.f32 %v2446_v10 }
 0x4c4   : > { %8054 = vrcp.f32 %v2445_v15 }
 0x4c5   : > { %v8045_v11 = vpop.eup %8044  ;;  %2777 = vmatpush.bf16.msra.mxu2 %v7471_v51 }
 0x4c6   : > { %v9848_v39 = vmul.f32 %v8045_v11, %v2420_v33  ;;  %v8047_v19 = vpop.eup %8046  ;;  %v7462_v33 = vld [vmem:[#allocation7] sm:$0xff] }
 0x4c7   : > { %v8049_v41 = vpop.eup %8048  ;;  %v9856_v27 = vmul.f32 %v8047_v19, %v9830_v12 }
 0x4c8   : > { %v2534_v24 = vpack.c.bf16 %v9848_v39, %v9846_v21  ;;  %v8051_v47 = vpop.eup %8050  ;;  %v9861_v31 = vmul.f32 %v8049_v41, %v9833_v20  ;;  %v7486_v41 = vld [vmem:[#allocation9 + $0x90] sm:$0xff] }
 0x4c9   : > { %v2533_v13 = vpack.c.bf16 %v9853_v18, %v9856_v27  ;;  %v8053_v37 = vpop.eup %8052  ;;  %v9864_v53 = vmul.f32 %v8051_v47, %v9835_v25  ;;  %v7463_v25 = vld [vmem:[#allocation7 + $0x8] sm:$0xff]  ;;  %2778 = vmatpush.bf16.msra.mxu2 %v7470_v28 }
 0x4ca   : > { %2588 = vmatpush.bf16.msrb.mxu3 %v2534_v24  ;;  %v8055_v6 = vpop.eup %8054  ;;  %v9869_v43 = vmul.f32 %v8053_v37, %v9839_v16  ;;  %v7465_v16 = vld [vmem:[#allocation7 + $0x18] sm:$0xff]  ;;  %v7487_v24 = vld [vmem:[#allocation9 + $0x98] sm:$0xff]  ;;  %v7484_v37 = vld [vmem:[#allocation9 + $0x80] sm:$0xff] }
 0x4cb   : > { %v2532_v17 = vpack.c.bf16 %v9861_v31, %v9864_v53  ;;  %v9872_v12 = vmul.f32 %v8055_v6, %v9841_v57  ;;  %v7491_v57 = vld [vmem:[#allocation9 + $0xb8] sm:$0xff] }
 0x4cc   : > { %2811 = vmatpush.bf16.msrb.mxu0 %v7491_v57 }
 0x4cd   : > { %v2531_v20 = vpack.c.bf16 %v9869_v43, %v9872_v12  ;;  %2779 = vmatpush.bf16.msra.mxu2 %v7469_v54 }
 0x4ce   : > { %2589 = vmatpush.bf16.msrb.mxu3 %v2533_v13  ;;  %v7485_v13 = vld [vmem:[#allocation9 + $0x88] sm:$0xff] }
 0x4d0   : > { %2812 = vmatpush.bf16.msrb.mxu0 %v7490_v32 }
 0x4d1   : > { %2780 = vmatpush.bf16.msra.mxu2 %v7468_v55 }
 0x4d2   : > { %2590 = vmatpush.bf16.msrb.mxu3 %v2532_v17 }
 0x4d4   : > { %2813 = vmatpush.bf16.msrb.mxu0 %v7489_v62 }
 0x4d5   : > { %2792 = vmatpush.bf16.msrb.mxu2 %v7483_v36 }
 0x4d6   : > { %2591 = vmatpush.bf16.msrb.mxu3 %v2531_v20 }
 0x4d8   : > { %2814 = vmatpush.bf16.msrb.mxu0 %v7488_v40 }
 0x4d9   : > { %6524 = vmatmul.msk.bf16.vlgmr.msrb.gmra.mxu3 %vm2565_vm0, %v7462_v33  ;;  %2793 = vmatpush.bf16.msrb.mxu2 %v7482_v42 }
 0x4dc   : > { %2815 = vmatpush.bf16.msrb.mxu0 %v7487_v24 }
 0x4dd   : > { %2794 = vmatpush.bf16.msrb.mxu2 %v7481_v58 }
 0x4e0   : > { %2816 = vmatpush.bf16.msrb.mxu0 %v7486_v41 }
 0x4e1   : > { %2795 = vmatpush.bf16.msrb.mxu2 %v7480_v59 }
 0x4e4   : > { %2817 = vmatpush.bf16.msrb.mxu0 %v7485_v13 }
 0x4e5   : > { %2796 = vmatpush.bf16.msrb.mxu2 %v7479_v61  ;;  %v7950_v61 = vld [vmem:[%s10615_s10] ss:$0 sm:$0xff] }
 0x4e8   : > { %2818 = vmatpush.bf16.msrb.mxu0 %v7484_v37 }
 0x4e9   : > { %6525 = vmatmul.msk.bf16.gmra.mxu3 %vm2565_vm0, %v7463_v25  ;;  %2797 = vmatpush.bf16.msrb.mxu2 %v7478_v1 }
 0x4ed   : > { %2798 = vmatpush.bf16.msrb.mxu2 %v7477_v4  ;;  %v7951_v4 = vld [vmem:[%s10616_s21] ss:$0 sm:$0xff] }
 0x4f1   : > { %2799 = vmatpush.bf16.msrb.mxu2 %v7476_v5 }
 0x4f9   : > { %6526 = vmatmul.msk.bf16.gmra.mxu3 %vm2565_vm0, %v7464_v44 }
 0x509   : > { %6527 = vmatmul.msk.bf16.gmra.mxu3 %vm2565_vm0, %v7465_v16 }
 0x519   : > { %6528 = vmatmul.msk.bf16.gmra.mxu3 %vm2565_vm0, %v7466_v23 }
 0x529   : > { %6529 = vmatmul.msk.bf16.gmra.mxu3 %vm2565_vm0, %v7467_v52 }
 0x55c   : > { %v2593_v3 = vpop.f32.mrf.mxu3 }
 0x564   : > { %v2595_v8 = vpop.f32.mrf.mxu3 }
 0x565   : > { %v2623_v10 = vpack.c.bf16 %v2595_v8, %v2593_v3 }
 0x567   : > { %2781 = vmatmul.bf16.vlgmr.msra.gmra.mxu2 %v2623_v10 }
 0x56c   : > { %v2598_v11 = vpop.f32.mrf.mxu3 }
 0x574   : > { %v2600_v15 = vpop.f32.mrf.mxu3 }
 0x575   : > { %v2626_v19 = vpack.c.bf16 %v2600_v15, %v2598_v11 }
 0x577   : > { %2786 = vmatmul.bf16.gmra.mxu2 %v2626_v19 }
 0x57c   : > { %v2603_v47 = vpop.f32.mrf.mxu3 }
 0x584   : > { %v2605_v6 = vpop.f32.mrf.mxu3 }
 0x585   : > { %v2624_v17 = vpack.c.bf16 %v2605_v6, %v2603_v47 }
 0x587   : > { %2800 = vmatmul.bf16.vlgmr.msrb.gmra.mxu2 %v2624_v17 }
 0x58c   : > { %v2608_v20 = vpop.f32.mrf.mxu3 }
 0x594   : > { %v2610_v33 = vpop.f32.mrf.mxu3 }
 0x595   : > { %v2627_v25 = vpack.c.bf16 %v2610_v33, %v2608_v20 }
 0x597   : > { %2805 = vmatmul.bf16.gmra.mxu2 %v2627_v25 }
 0x59c   : > { %v2613_v44 = vpop.f32.mrf.mxu3 }
 0x5a4   : > { %v2615_v16 = vpop.f32.mrf.mxu3 }
 0x5a5   : > { %v2625_v45 = vpack.c.bf16 %v2615_v16, %v2613_v44 }
 0x5a7   : > { %2819 = vmatmul.bf16.vlgmr.msrb.gmra.mxu0 %v2625_v45 }
 0x5ac   : > { %v2618_v57 = vpop.f32.mrf.mxu3 }
 0x5b4   : > { %v2620_v46 = vpop.f32.mrf.mxu3 }
 0x5b5   : > { %v2628_v9 = vpack.c.bf16 %v2620_v46, %v2618_v57 }
 0x5b7   : > { %2824 = vmatmul.bf16.gmra.mxu0 %v2628_v9 }
 0x5ea   : > { %v2782_v49 = vpop.f32.mrf.mxu2 }
 0x5f2   : > { %v2784_v23 = vpop.f32.mrf.mxu2 }
 0x5fa   : > { %v2787_v51 = vpop.f32.mrf.mxu2 }
 0x602   : > { %v2789_v52 = vpop.f32.mrf.mxu2 }
 0x60a   : > { %v2801_v28 = vpop.f32.mrf.mxu2 }
 0x60b   : > { %v2802_v59 = vadd.f32 %v2801_v28, %v2782_v49 }
 0x612   : > { %v2803_v54 = vpop.f32.mrf.mxu2 }
 0x613   : > { %v2804_v36 = vadd.f32 %v2803_v54, %v2784_v23 }
 0x61a   : > { %v2806_v42 = vpop.f32.mrf.mxu2 }
 0x61b   : > { %v2807_v3 = vadd.f32 %v2806_v42, %v2787_v51 }
 0x622   : > { %v2808_v15 = vpop.f32.mrf.mxu2 }
 0x623   : > { %v2809_v47 = vadd.f32 %v2808_v15, %v2789_v52  ;;  %v7499_v15 = vld [vmem:[#allocation12 + $0x20] sm:$0xff] }
 0x624   : > { %v2820_v55 = vpop.f32.mrf.mxu0 }
 0x625   : > { %v2821_v62 = vadd.f32 %v2820_v55, %v2802_v59 }
 0x627   : > { %v2833_v8 = vmul.f32 %v7950_v61, %v2821_v62 }
 0x629   : > { %v2840_v19 = vadd.f32 %v7951_v4, %v2833_v8  ;;  %v7493_v8 = vld [vmem:[#allocation10 + $0x8] sm:$0xff] }
 0x62b   : > { %v2844_v6 = vsub.f32 0.0, %v2840_v19 }
 0x62c   : > { %v2822_v32 = vpop.f32.mrf.mxu0 }
 0x62d   : > { %v2823_v58 = vadd.f32 %v2822_v32, %v2804_v36  ;;  %v2848_v44 = vmul.f32 1.442695, %v2844_v6  ;;  %v7507_v6 = vld [vmem:[#allocation12 + $0x60] sm:$0xff] }
 0x62f   : > { %v2834_v1 = vmul.f32 %v7950_v61, %v2823_v58 }
 0x631   : > { %v2841_v40 = vadd.f32 %v7951_v4, %v2834_v1 }
 0x633   : > { %v2845_v41 = vsub.f32 0.0, %v2841_v40 }
 0x634   : > { %v2825_v5 = vpop.f32.mrf.mxu0 }
 0x635   : > { %v2826_v10 = vadd.f32 %v2825_v5, %v2807_v3  ;;  %v2850_v33 = vmul.f32 1.442695, %v2845_v41  ;;  %v7502_v5 = vld [vmem:[#allocation12 + $0x38] sm:$0xff]  ;;  %v7509_v41 = vld [vmem:[#allocation12 + $0x70] sm:$0xff] }
 0x636   : > { %3122 = vmatpush.bf16.msra.mxu3 %v7502_v5  ;;  %v3687_v5 = vld [vmem:[#allocation22 + $0x8] sm:$0xff] }
 0x637   : > { %v2835_v11 = vmul.f32 %v7950_v61, %v2826_v10  ;;  %v7494_v10 = vld [vmem:[#allocation10 + $0x10] sm:$0xff] }
 0x639   : > { %v2842_v24 = vadd.f32 %v7951_v4, %v2835_v11  ;;  %v7500_v11 = vld [vmem:[#allocation12 + $0x28] sm:$0xff] }
 0x63b   : > { %v2846_v13 = vsub.f32 0.0, %v2842_v24 }
 0x63c   : > { %v2827_v37 = vpop.f32.mrf.mxu0 }
 0x63d   : > { %v2852_v17 = vmul.f32 1.442695, %v2846_v13  ;;  %v2828_v20 = vadd.f32 %v2827_v37, %v2809_v47  ;;  %v7497_v47 = vld [vmem:[#allocation12 + $0x10] sm:$0xff]  ;;  %v7508_v13 = vld [vmem:[#allocation12 + $0x68] sm:$0xff] }
 0x63e   : > { %v7496_v37 = vld [vmem:[#allocation12 + $0x8] sm:$0xff] }
 0x63f   : > { %v2836_v25 = vmul.f32 %v7950_v61, %v2828_v20  ;;  %8056 = vpow2.f32 %v2852_v17  ;;  %v7495_v17 = vld [vmem:[#allocation12] sm:$0xff]  ;;  %v7518_v20 = vld [vmem:[#allocation12 + $0xb8] sm:$0xff] }
 0x640   : > { %8058 = vpow2.f32 %v2850_v33  ;;  %v7506_v33 = vld [vmem:[#allocation12 + $0x58] sm:$0xff] }
 0x641   : > { %v2843_v16 = vadd.f32 %v7951_v4, %v2836_v25  ;;  %8060 = vpow2.f32 %v2848_v44  ;;  %v7492_v4 = vld [vmem:[#allocation10] sm:$0xff]  ;;  %v7517_v25 = vld [vmem:[#allocation12 + $0xb0] sm:$0xff] }
 0x642   : > { %v7505_v44 = vld [vmem:[#allocation12 + $0x50] sm:$0xff] }
 0x643   : > { %v2847_v45 = vsub.f32 0.0, %v2843_v16 }
 0x645   : > { %v2854_v57 = vmul.f32 1.442695, %v2847_v45  ;;  %v8057_v46 = vpop.eup %8056  ;;  %v7504_v45 = vld [vmem:[#allocation12 + $0x48] sm:$0xff] }
 0x646   : > { %v8059_v9 = vpop.eup %8058  ;;  %v2858_v49 = vadd.f32 1.0, %v8057_v46  ;;  %v3250_v46 = vld [vmem:[#allocation15] sm:$0xff] }
 0x647   : > { %8062 = vpow2.f32 %v2854_v57  ;;  %v8061_v23 = vpop.eup %8060  ;;  %v2857_v51 = vadd.f32 1.0, %v8059_v9  ;;  %v9069_v57 = vmov 0   ;;  %v7515_v9 = vld [vmem:[#allocation12 + $0xa0] sm:$0xff] }
 0x648   : > { %v2856_v28 = vadd.f32 1.0, %v8061_v23  ;;  %8064 = vrcp.f32 %v2858_v49  ;;  %7943 = vset.pattern.permute.xlu0 %v9069_v57  ;;  %7944 = vset.pattern.permute.xlu1 %v9069_v57  ;;  %v7503_v49 = vld [vmem:[#allocation12 + $0x40] sm:$0xff]  ;;  %v7514_v23 = vld [vmem:[#allocation12 + $0x98] sm:$0xff] }
 0x649   : > { %8066 = vrcp.f32 %v2857_v51  ;;  %3269 = vperm.xlu0 %7943, %v3250_v46   ;;  %7945 = vset.pattern.permute.xlu2 %v9069_v57  ;;  %v3251_v51 = vld [vmem:[#allocation15 + $0x8] sm:$0xff]  ;;  %v4245_v57 = vld [vmem:[#allocation28 + $0x20] sm:$0xff] }
 0x64a   : > { %v4248_v46 = vld [vmem:[#allocation28 + $0x38] sm:$0xff] }
 0x64d   : > { %v8063_v52 = vpop.eup %8062 }
 0x64e   : > { %v2859_v54 = vadd.f32 1.0, %v8063_v52  ;;  %v8065_v55 = vpop.eup %8064  ;;  %v3252_v52 = vld [vmem:[#allocation16] sm:$0xff] }
 0x64f   : > { %v8067_v36 = vpop.eup %8066  ;;  %v9884_v42 = vmul.f32 %v8065_v55, %v2842_v24  ;;  %v7498_v24 = vld [vmem:[#allocation12 + $0x18] sm:$0xff]  ;;  %3286 = vperm.xlu1 %7944, %v3252_v52   ;;  %v7512_v55 = vld [vmem:[#allocation12 + $0x88] sm:$0xff]  ;;  %v7534_v52 = vld [vmem:[%s10617_s0 + $0x78] sm:$0xff] }
 0x650   : > { %8068 = vrcp.f32 %v2859_v54  ;;  %v9890_v62 = vmul.f32 %v8067_v36, %v2841_v40  ;;  %v7501_v40 = vld [vmem:[#allocation12 + $0x30] sm:$0xff] }
 0x651   : > { %8070 = vrcp.f32 %v2856_v28  ;;  %3123 = vmatpush.bf16.msra.mxu3 %v7501_v40  ;;  %3274 = vperm.xlu0 %7943, %v3251_v51   ;;  %v7513_v28 = vld [vmem:[#allocation12 + $0x90] sm:$0xff]  ;;  %v7525_v51 = vld [vmem:[%s10617_s0 + $0x30] sm:$0xff] }
 0x652   : > { %v3686_v36 = vld [vmem:[#allocation22] sm:$0xff] }
 0x655   : > { %3124 = vmatpush.bf16.msra.mxu3 %v7500_v11  ;;  %v4249_v11 = vld [vmem:[#allocation30] sm:$0xff] }
 0x656   : > { %v8069_v32 = vpop.eup %8068 }
 0x657   : > { %v9886_v58 = vmul.f32 %v8069_v32, %v2843_v16  ;;  %v8071_v59 = vpop.eup %8070  ;;  %v7516_v16 = vld [vmem:[#allocation12 + $0xa8] sm:$0xff]  ;;  %v3253_v32 = vld [vmem:[#allocation16 + $0x8] sm:$0xff] }
 0x658   : > { %v9892_v1 = vmul.f32 %v8071_v59, %v2840_v19  ;;  %v7510_v19 = vld [vmem:[#allocation12 + $0x78] sm:$0xff]  ;;  %3291 = vperm.xlu1 %7944, %v3253_v32   ;;  %v7511_v59 = vld [vmem:[#allocation12 + $0x80] sm:$0xff] }
 0x659   : > { %v2925_v61 = vpack.c.bf16 %v9886_v58, %v9884_v42  ;;  %3125 = vmatpush.bf16.msra.mxu3 %v7499_v15  ;;  %3136 = vmatpush.bf16.msra.mxu0 %v7510_v19  ;;  %v3688_v15 = vld [vmem:[#allocation22 + $0x10] sm:$0xff]  ;;  %v7523_v32 = vld [vmem:[%s10617_s0 + $0x20] sm:$0xff] }
 0x65a   : > { %v2924_v3 = vpack.c.bf16 %v9890_v62, %v9892_v1  ;;  %3714 = vperm.xlu0 %7943, %v3686_v36   ;;  %v7541_v36 = vld [vmem:[#allocation13 + $0x30] sm:$0xff] }
 0x65b   : > { %2957 = vmatpush.bf16.msra.mxu2 %v2925_v61 }
 0x65d   : > { %3126 = vmatpush.bf16.msra.mxu3 %v7498_v24  ;;  %3137 = vmatpush.bf16.msra.mxu0 %v7509_v41  ;;  %v4242_v24 = vld [vmem:[#allocation28 + $0x8] sm:$0xff] }
 0x65f   : > { %2958 = vmatpush.bf16.msra.mxu2 %v2924_v3 }
 0x660   : > { %3719 = vperm.xlu1 %7944, %v3687_v5   ;;  %v7539_v5 = vld [vmem:[#allocation13 + $0x20] sm:$0xff] }
 0x661   : > { %3127 = vmatpush.bf16.msra.mxu3 %v7497_v47  ;;  %3138 = vmatpush.bf16.msra.mxu0 %v7508_v13  ;;  %v4250_v47 = vld [vmem:[#allocation30 + $0x8] sm:$0xff]  ;;  %v7548_v13 = vld [vmem:[#allocation13 + $0x68] sm:$0xff] }
 0x662   : > { %6638 = vmatmul.msk.bf16.vlgmr.msra.gmra.mxu2 %vm2941_vm1, %v7492_v4  ;;  %v3693_v4 = vld [vmem:[#allocation24 + $0x18] sm:$0xff] }
 0x663   : > { %3150 = vmatpush.bf16.msrb.mxu2 %v7518_v20  ;;  %3761 = vperm.xlu0 %7943, %v3693_v4   ;;  %v4251_v20 = vld [vmem:[#allocation30 + $0x10] sm:$0xff]  ;;  %v7531_v4 = vld [vmem:[%s10617_s0 + $0x60] sm:$0xff] }
 0x665   : > { %3128 = vmatpush.bf16.msra.mxu3 %v7496_v37  ;;  %3139 = vmatpush.bf16.msra.mxu0 %v7507_v6  ;;  %v7547_v37 = vld [vmem:[#allocation13 + $0x60] sm:$0xff] }
 0x667   : > { %3151 = vmatpush.bf16.msrb.mxu2 %v7517_v25  ;;  %v4254_v25 = vld [vmem:[#allocation30 + $0x28] sm:$0xff] }
 0x668   : > { %3724 = vperm.xlu1 %7944, %v3688_v15   ;;  %v7538_v15 = vld [vmem:[#allocation13 + $0x18] sm:$0xff] }
 0x669   : > { %3129 = vmatpush.bf16.msra.mxu3 %v7495_v17  ;;  %3140 = vmatpush.bf16.msra.mxu0 %v7506_v33  ;;  %v4243_v17 = vld [vmem:[#allocation28 + $0x10] sm:$0xff] }
 0x66b   : > { %3152 = vmatpush.bf16.msrb.mxu2 %v7516_v16  ;;  %4357 = vperm.xlu0 %7943, %v4249_v11   ;;  %v4244_v16 = vld [vmem:[#allocation28 + $0x18] sm:$0xff]  ;;  %v7530_v11 = vld [vmem:[%s10617_s0 + $0x58] sm:$0xff] }
 0x66d   : > { %3141 = vmatpush.bf16.msra.mxu0 %v7505_v44 }
 0x66f   : > { %3153 = vmatpush.bf16.msrb.mxu2 %v7515_v9  ;;  %v4256_v9 = vld [vmem:[#allocation30 + $0x38] sm:$0xff] }
 0x670   : > { %4362 = vperm.xlu1 %7944, %v4250_v47  }
 0x671   : > { %3142 = vmatpush.bf16.msra.mxu0 %v7504_v45  ;;  %v4255_v45 = vld [vmem:[#allocation30 + $0x30] sm:$0xff] }
 0x672   : > { %6639 = vmatmul.msk.bf16.gmra.mxu2 %vm2941_vm1, %v7493_v8  ;;  %v7550_v8 = vld [vmem:[#allocation13 + $0x78] sm:$0xff] }
 0x673   : > { %3154 = vmatpush.bf16.msrb.mxu2 %v7514_v23  ;;  %3555 = vmatpush.bf16.msrb.mxu1 %v7550_v8  ;;  %v7526_v23 = vld [vmem:[%s10617_s0 + $0x38] sm:$0xff] }
 0x674   : > { %4298 = vperm.xlu0 %7943, %v4242_v24   ;;  %3394 = vmatpush.bf16.msrb.mxu3 %v7526_v23  ;;  %v7520_v24 = vld [vmem:[%s10617_s0 + $0x8] sm:$0xff] }
 0x675   : > { %3143 = vmatpush.bf16.msra.mxu0 %v7503_v49  ;;  %v7546_v49 = vld [vmem:[#allocation13 + $0x58] sm:$0xff] }
 0x677   : > { %3155 = vmatpush.bf16.msrb.mxu2 %v7513_v28  ;;  %v7542_v28 = vld [vmem:[#allocation13 + $0x38] sm:$0xff] }
 0x678   : > { %4367 = vperm.xlu1 %7944, %v4251_v20   ;;  %3395 = vmatpush.bf16.msrb.mxu3 %v7525_v51 }
 0x679   : > { %3541 = vmatpush.bf16.msrb.mxu0 %v7542_v28  ;;  %v7535_v28 = vld [vmem:[#allocation13] sm:$0xff] }
 0x67b   : > { %3156 = vmatpush.bf16.msrb.mxu2 %v7512_v55  ;;  %v7533_v55 = vld [vmem:[%s10617_s0 + $0x70] sm:$0xff] }
 0x67c   : > { %4303 = vperm.xlu0 %7943, %v4243_v17  }
 0x67d   : > { %3542 = vmatpush.bf16.msrb.mxu0 %v7541_v36 }
 0x67f   : > { %3157 = vmatpush.bf16.msrb.mxu2 %v7511_v59  ;;  %v7532_v59 = vld [vmem:[%s10617_s0 + $0x68] sm:$0xff] }
 0x680   : > { %4308 = vperm.xlu1 %7944, %v4244_v16  }
 0x682   : > { %6640 = vmatmul.msk.bf16.gmra.mxu2 %vm2941_vm1, %v7494_v10  ;;  %v7549_v10 = vld [vmem:[#allocation13 + $0x70] sm:$0xff] }
 0x683   : > { %3556 = vmatpush.bf16.msrb.mxu1 %v7549_v10  ;;  %3408 = vmatpush.bf16.msra.mxu2 %v7534_v52  ;;  %v7545_v10 = vld [vmem:[#allocation13 + $0x50] sm:$0xff]  ;;  %v7527_v52 = vld [vmem:[%s10617_s0 + $0x40] sm:$0xff] }
 0x684   : > { %4382 = vperm.xlu0 %7943, %v4254_v25   ;;  %v7519_v25 = vld [vmem:[%s10617_s0] sm:$0xff] }
 0x687   : > { %3557 = vmatpush.bf16.msrb.mxu1 %v7548_v13  ;;  %3409 = vmatpush.bf16.msra.mxu2 %v7533_v55  ;;  %v7952_v13 = vld [vmem:[%s10618_s7] ss:$0 sm:$0xff] }
 0x688   : > { %4313 = vperm.xlu1 %7944, %v4245_v57   ;;  %v7536_v57 = vld [vmem:[#allocation13 + $0x8] sm:$0xff] }
 0x68b   : > { %3558 = vmatpush.bf16.msrb.mxu1 %v7547_v37  ;;  %3410 = vmatpush.bf16.msra.mxu2 %v7532_v59  ;;  %v7529_v37 = vld [vmem:[%s10617_s0 + $0x50] sm:$0xff] }
 0x68c   : > { %4387 = vperm.xlu0 %7943, %v4255_v45   ;;  %v7528_v45 = vld [vmem:[%s10617_s0 + $0x48] sm:$0xff] }
 0x68f   : > { %3559 = vmatpush.bf16.msrb.mxu1 %v7546_v49  ;;  %3411 = vmatpush.bf16.msra.mxu2 %v7531_v4 }
 0x690   : > { %4392 = vperm.xlu1 %7944, %v4256_v9  }
 0x693   : > { %3560 = vmatpush.bf16.msrb.mxu1 %v7545_v10  ;;  %3412 = vmatpush.bf16.msra.mxu2 %v7530_v11 }
 0x694   : > { %4328 = vperm.xlu0 %7943, %v4248_v46  }
 0x697   : > { %3413 = vmatpush.bf16.msra.mxu2 %v7529_v37 }
 0x69b   : > { %3414 = vmatpush.bf16.msra.mxu2 %v7528_v45 }
 0x69f   : > { %3415 = vmatpush.bf16.msra.mxu2 %v7527_v52 }
 0x6e5   : > { %v2960_v54 = vpop.f32.mrf.mxu2 }
 0x6ed   : > { %v2962_v61 = vpop.f32.mrf.mxu2 }
 0x6ee   : > { %v2975_v3 = vpack.c.bf16 %v2962_v61, %v2960_v54  ;;  %v7524_v54 = vld [vmem:[%s10617_s0 + $0x28] sm:$0xff]  ;;  %v7540_v61 = vld [vmem:[#allocation13 + $0x28] sm:$0xff] }
 0x6ef   : > { %3396 = vmatpush.bf16.msrb.mxu3 %v7524_v54  ;;  %3543 = vmatpush.bf16.msrb.mxu0 %v7540_v61 }
 0x6f0   : > { %3130 = vmatmul.bf16.vlgmr.msra.gmra.mxu3 %v2975_v3  ;;  %v7522_v3 = vld [vmem:[%s10617_s0 + $0x18] sm:$0xff] }
 0x6f3   : > { %3397 = vmatpush.bf16.msrb.mxu3 %v7523_v32  ;;  %3544 = vmatpush.bf16.msrb.mxu0 %v7539_v5 }
 0x6f5   : > { %v2965_v40 = vpop.f32.mrf.mxu2 }
 0x6f7   : > { %3398 = vmatpush.bf16.msrb.mxu3 %v7522_v3  ;;  %3545 = vmatpush.bf16.msrb.mxu0 %v7538_v15  ;;  %v3270_v15 = vpop.permute.xlu0 %3269 }
 0x6fd   : > { %v2967_v19 = vpop.f32.mrf.mxu2 }
 0x6fe   : > { %v2976_v41 = vpack.c.bf16 %v2967_v19, %v2965_v40  ;;  %v7521_v40 = vld [vmem:[%s10617_s0 + $0x10] sm:$0xff] }
 0x6ff   : > { %3399 = vmatpush.bf16.msrb.mxu3 %v7521_v40  ;;  %v3262_v40 = vlaneseq }
 0x700   : > { %3144 = vmatmul.bf16.vlgmr.msra.gmra.mxu0 %v2976_v41  ;;  %v7544_v41 = vld [vmem:[#allocation13 + $0x48] sm:$0xff] }
 0x701   : > { %3561 = vmatpush.bf16.msrb.mxu1 %v7544_v41  ;;  %v9917_v41 = vshrl.u32 %v3262_v40, 7 }
 0x703   : > { %3400 = vmatpush.bf16.msrb.mxu3 %v7520_v24  ;;  %vm3264_vm2 = vcmp.lt.s32.totalorder %v9917_v41, 1  ;;  %vm3281_vm3 = vcmp.lt.s32.totalorder %v9917_v41, 7 }
 0x705   : > { %v2970_v6 = vpop.f32.mrf.mxu2 }
 0x707   : > { %3401 = vmatpush.bf16.msrb.mxu3 %v7519_v25  ;;  %v3275_v25 = vpop.permute.xlu0 %3274 }
 0x70d   : > { %v2972_v33 = vpop.f32.mrf.mxu2 }
 0x70e   : > { %v2977_v44 = vpack.c.bf16 %v2972_v33, %v2970_v6  ;;  %v7537_v6 = vld [vmem:[#allocation13 + $0x10] sm:$0xff]  ;;  %v7953_v33 = vld [vmem:[%s10619_s2] ss:$0 sm:$0xff] }
 0x70f   : > { %3546 = vmatpush.bf16.msrb.mxu0 %v7537_v6 }
 0x710   : > { %3158 = vmatmul.bf16.vlgmr.msrb.gmra.mxu2 %v2977_v44  ;;  %v7543_v44 = vld [vmem:[#allocation13 + $0x40] sm:$0xff] }
 0x711   : > { %3562 = vmatpush.bf16.msrb.mxu1 %v7543_v44 }
 0x713   : > { %3547 = vmatpush.bf16.msrb.mxu0 %v7536_v57 }
 0x717   : > { %3548 = vmatpush.bf16.msrb.mxu0 %v7535_v28 }
 0x773   : > { %v3131_v19 = vpop.f32.mrf.mxu3 }
 0x77b   : > { %v3133_v49 = vpop.f32.mrf.mxu3 }
 0x77d   : > { %v3145_v8 = vpop.f32.mrf.mxu0 }
 0x77e   : > { %v3146_v47 = vadd.f32 %v3145_v8, %v3131_v19  ;;  %v3287_v19 = vpop.permute.xlu1 %3286 }
 0x785   : > { %v3147_v46 = vpop.f32.mrf.mxu0 }
 0x786   : > { %v3148_v23 = vadd.f32 %v3147_v46, %v3133_v49  ;;  %v3292_v44 = vpop.permute.xlu1 %3291 }
 0x793   : > { %v3159_v17 = vpop.f32.mrf.mxu2 }
 0x794   : > { %v3160_v20 = vadd.f32 %v3159_v17, %v3146_v47 }
 0x796   : > { %v3167_v16 = vmul.f32 %v7952_v13, %v3160_v20 }
 0x798   : > { %v3172_v9 = vadd.f32 %v7953_v33, %v3167_v16 }
 0x79a   : > { %v3174_v51 = vsub.f32 0.0, %v3172_v9 }
 0x79b   : > { %v3161_v54 = vpop.f32.mrf.mxu2 }
 0x79c   : > { %v3176_v55 = vmul.f32 1.442695, %v3174_v51  ;;  %v3162_v36 = vadd.f32 %v3161_v54, %v3148_v23 }
 0x79e   : > { %8072 = vpow2.f32 %v3176_v55  ;;  %v3168_v32 = vmul.f32 %v7952_v13, %v3162_v36  ;;  %v7954_v55 = vld [vmem:[%s10620_s6] ss:$0 sm:$0xff] }
 0x7a0   : > { %v3173_v59 = vadd.f32 %v7953_v33, %v3168_v32  ;;  %v7955_v32 = vld [vmem:[%s10621_s4] ss:$0 sm:$0xff] }
 0x7a2   : > { %v3175_v61 = vsub.f32 0.0, %v3173_v59 }
 0x7a4   : > { %v8073_v3 = vpop.eup %8072  ;;  %v3178_v4 = vmul.f32 1.442695, %v3175_v61 }
 0x7a5   : > { %v3180_v5 = vadd.f32 1.0, %v8073_v3 }
 0x7a6   : > { %8074 = vpow2.f32 %v3178_v4 }
 0x7a7   : > { %8076 = vrcp.f32 %v3180_v5 }
 0x7ac   : > { %v8075_v8 = vpop.eup %8074 }
 0x7ad   : > { %v3181_v10 = vadd.f32 1.0, %v8075_v8  ;;  %v8077_v11 = vpop.eup %8076 }
 0x7ae   : > { %v3184_v24 = vmul.f32 %v8077_v11, %v3172_v9 }
 0x7af   : > { %8078 = vrcp.f32 %v3181_v10 }
 0x7b0   : > { %v3260_v13 = vrot.slane %v3184_v24, 7  ;;  %v3279_v17 = vrot.slane %v3184_v24, 1 }
 0x7b5   : > { %v8079_v47 = vpop.eup %8078 }
 0x7b6   : > { %v3185_v37 = vmul.f32 %v8079_v47, %v3173_v59 }
 0x7b8   : > { %v3261_v6 = vrot.slane %v3185_v37, 7  ;;  %v3280_v20 = vrot.slane %v3185_v37, 1  ;;  %v3296_v33 = vpack.c.bf16 %v3185_v37, %v3184_v24 }
 0x7ba   : > { %v3282_v16 = vsel %vm3281_vm3, %v3279_v17, %v3280_v20  ;;  %v3283_v45 = vsel %vm3281_vm3, %v3280_v20, %v3279_v17  ;;  %3402 = vmatmul.bf16.vlgmr.msrb.gmra.mxu3 %v3296_v33  ;;  %3563 = vmatmul.bf16.vlgmr.msrb.gmra.mxu1 %v3296_v33  ;;  %v3265_v57 = vsel %vm3264_vm2, %v3260_v13, %v3261_v6 }
 0x7bb   : > { %v3294_v46 = vmul.f32 %v3287_v19, %v3282_v16  ;;  %v3295_v9 = vmul.f32 %v3292_v44, %v3283_v45  ;;  %v3266_v49 = vsel %vm3264_vm2, %v3261_v6, %v3260_v13  ;;  %v3278_v23 = vmul.f32 %v3275_v25, %v3265_v57  ;;  %v3690_v13 = vld [vmem:[#allocation24] sm:$0xff] }
 0x7bc   : > { %v3277_v51 = vmul.f32 %v3270_v15, %v3266_v49  ;;  %3746 = vperm.xlu2 %7945, %v3690_v13   ;;  %v3691_v49 = vld [vmem:[#allocation24 + $0x8] sm:$0xff]  ;;  %v4241_v13 = vld [vmem:[#allocation28] sm:$0xff] }
 0x7bd   : > { %v3444_v52 = vpack.c.bf16 %v3295_v9, %v3294_v46 }
 0x7be   : > { %v3297_v28 = vpack.c.bf16 %v3278_v23, %v3277_v51 }
 0x7bf   : > { %3549 = vmatmul.bf16.vlgmr.msrb.gmra.mxu0 %v3444_v52 }
 0x7c0   : > { %3416 = vmatmul.bf16.vlgmr.msra.gmra.mxu2 %v3297_v28 }
 0x7c4   : > { %3751 = vperm.xlu2 %7945, %v3691_v49   ;;  %v4247_v49 = vld [vmem:[#allocation28 + $0x30] sm:$0xff] }
 0x837   : > { %v3564_v54 = vpop.f32.mrf.mxu1 }
 0x83c   : > { %v3550_v36 = vpop.f32.mrf.mxu0 }
 0x83d   : > { %v3565_v59 = vadd.f32 %v3564_v54, %v3550_v36  ;;  %v3403_v4 = vpop.f32.mrf.mxu3 }
 0x83f   : > { %v3569_v61 = vmul.f32 %v7954_v55, %v3565_v59  ;;  %v3566_v10 = vpop.f32.mrf.mxu1  ;;  %v3692_v59 = vld [vmem:[#allocation24 + $0x10] sm:$0xff] }
 0x840   : > { %3756 = vperm.xlu2 %7945, %v3692_v59   ;;  %v7579_v59 = vld [vmem:[#allocation21 + $0x50] sm:$0xff] }
 0x841   : > { %v3571_v3 = vadd.f32 %v7955_v32, %v3569_v61 }
 0x843   : > { %v3573_v5 = vsub.f32 0.0, %v3571_v3  ;;  %v3417_v8 = vpop.f32.mrf.mxu2 }
 0x844   : > { %v3418_v40 = vadd.f32 %v3417_v8, %v3403_v4  ;;  %v3552_v11 = vpop.f32.mrf.mxu0 }
 0x845   : > { %v3575_v19 = vmul.f32 1.442695, %v3573_v5  ;;  %v3567_v24 = vadd.f32 %v3566_v10, %v3552_v11  ;;  %v3405_v33 = vpop.f32.mrf.mxu3 }
 0x846   : > { %v3425_v15 = vmul.f32 %v7954_v55, %v3418_v40 }
 0x847   : > { %v3570_v47 = vmul.f32 %v7954_v55, %v3567_v24  ;;  %8080 = vpow2.f32 %v3575_v19 }
 0x848   : > { %v3430_v37 = vadd.f32 %v7955_v32, %v3425_v15 }
 0x849   : > { %v3572_v6 = vadd.f32 %v7955_v32, %v3570_v47 }
 0x84a   : > { %v3432_v17 = vsub.f32 0.0, %v3430_v37 }
 0x84b   : > { %v3574_v20 = vsub.f32 0.0, %v3572_v6  ;;  %v3419_v25 = vpop.f32.mrf.mxu2 }
 0x84c   : > { %v3434_v44 = vmul.f32 1.442695, %v3432_v17  ;;  %v3420_v16 = vadd.f32 %v3419_v25, %v3405_v33  ;;  %v7560_v33 = vld [vmem:[#allocation19 + $0x38] sm:$0xff] }
 0x84d   : > { %v3577_v45 = vmul.f32 1.442695, %v3574_v20  ;;  %v8081_v57 = vpop.eup %8080  ;;  %v7551_v20 = vld [vmem:[#allocation18] sm:$0xff]  ;;  %v7584_v25 = vld [vmem:[#allocation21 + $0x78] sm:$0xff]  ;;  %3868 = vmatpush.bf16.msrb.mxu2 %v7560_v33  ;;  %v7562_v33 = vld [vmem:[#allocation19 + $0x48] sm:$0xff] }
 0x84e   : > { %v3426_v46 = vmul.f32 %v7954_v55, %v3420_v16  ;;  %v3579_v23 = vadd.f32 1.0, %v8081_v57  ;;  %4061 = vmatpush.bf16.msra.mxu1 %v7584_v25  ;;  %v4253_v16 = vld [vmem:[#allocation30 + $0x20] sm:$0xff]  ;;  %v7558_v57 = vld [vmem:[#allocation19 + $0x28] sm:$0xff] }
 0x84f   : > { %8082 = vpow2.f32 %v3577_v45  ;;  %v4246_v45 = vld [vmem:[#allocation28 + $0x28] sm:$0xff]  ;;  %v7561_v25 = vld [vmem:[#allocation19 + $0x40] sm:$0xff] }
 0x850   : > { %8084 = vpow2.f32 %v3434_v44  ;;  %v3431_v9 = vadd.f32 %v7955_v32, %v3426_v46  ;;  %v3689_v32 = vld [vmem:[#allocation22 + $0x18] sm:$0xff]  ;;  %v7559_v44 = vld [vmem:[#allocation19 + $0x30] sm:$0xff]  ;;  %v7582_v46 = vld [vmem:[#allocation21 + $0x68] sm:$0xff] }
 0x851   : > { %8086 = vrcp.f32 %v3579_v23  ;;  %3729 = vperm.xlu2 %7945, %v3689_v32   ;;  %3869 = vmatpush.bf16.msrb.mxu2 %v7559_v44  ;;  %v7581_v23 = vld [vmem:[#allocation21 + $0x60] sm:$0xff] }
 0x852   : > { %v3433_v51 = vsub.f32 0.0, %v3431_v9  ;;  %v7573_v32 = vld [vmem:[#allocation21 + $0x20] sm:$0xff] }
 0x854   : > { %v3436_v52 = vmul.f32 1.442695, %v3433_v51  ;;  %v7576_v51 = vld [vmem:[#allocation21 + $0x38] sm:$0xff] }
 0x855   : > { %v8083_v28 = vpop.eup %8082  ;;  %3870 = vmatpush.bf16.msrb.mxu2 %v7558_v57  ;;  %4042 = vmatpush.bf16.msra.mxu0 %v7576_v51 }
 0x856   : > { %v8085_v54 = vpop.eup %8084  ;;  %v3580_v36 = vadd.f32 1.0, %v8083_v28  ;;  %8088 = vpow2.f32 %v3436_v52  ;;  %v7556_v52 = vld [vmem:[#allocation19 + $0x18] sm:$0xff] }
 0x857   : > { %v3438_v61 = vadd.f32 1.0, %v8085_v54  ;;  %v8087_v4 = vpop.eup %8086  ;;  %v7580_v28 = vld [vmem:[#allocation21 + $0x58] sm:$0xff]  ;;  %v7575_v54 = vld [vmem:[#allocation21 + $0x30] sm:$0xff] }
 0x858   : > { %8090 = vrcp.f32 %v3580_v36  ;;  %v3583_v10 = vmul.f32 %v8087_v4, %v3571_v3  ;;  %v7583_v3 = vld [vmem:[#allocation21 + $0x70] sm:$0xff]  ;;  %v7574_v4 = vld [vmem:[#allocation21 + $0x28] sm:$0xff] }
 0x859   : > { %8092 = vrcp.f32 %v3438_v61  ;;  %4293 = vperm.xlu2 %7945, %v4241_v13   ;;  %4062 = vmatpush.bf16.msra.mxu1 %v7583_v3  ;;  %v7555_v36 = vld [vmem:[#allocation19 + $0x10] sm:$0xff]  ;;  %v7568_v61 = vld [vmem:[#allocation19 + $0x78] sm:$0xff]  ;;  %v7570_v13 = vld [vmem:[#allocation21 + $0x8] sm:$0xff] }
 0x85a   : > { %4043 = vmatpush.bf16.msra.mxu0 %v7575_v54 }
 0x85c   : > { %v8089_v5 = vpop.eup %8088 }
 0x85d   : > { %v3439_v55 = vadd.f32 1.0, %v8089_v5  ;;  %4063 = vmatpush.bf16.msra.mxu1 %v7582_v46  ;;  %v7554_v5 = vld [vmem:[#allocation19 + $0x8] sm:$0xff] }
 0x85e   : > { %v8091_v8 = vpop.eup %8090  ;;  %4044 = vmatpush.bf16.msra.mxu0 %v7574_v4 }
 0x85f   : > { %v3584_v40 = vmul.f32 %v8091_v8, %v3572_v6  ;;  %8094 = vrcp.f32 %v3439_v55  ;;  %v8093_v19 = vpop.eup %8092  ;;  %v4252_v6 = vld [vmem:[#allocation30 + $0x18] sm:$0xff]  ;;  %v7578_v55 = vld [vmem:[#allocation21 + $0x48] sm:$0xff]  ;;  %v7567_v8 = vld [vmem:[#allocation19 + $0x70] sm:$0xff] }
 0x860   : > { %v3442_v15 = vmul.f32 %v8093_v19, %v3430_v37  ;;  %v7552_v37 = vld [vmem:[#allocation18 + $0x8] sm:$0xff] }
 0x861   : > { %v3586_v11 = vpack.c.bf16 %v3584_v40, %v3583_v10  ;;  %4372 = vperm.xlu2 %7945, %v4252_v6   ;;  %4064 = vmatpush.bf16.msra.mxu1 %v7581_v23  ;;  %v7553_v10 = vld [vmem:[#allocation19] sm:$0xff]  ;;  %v7572_v19 = vld [vmem:[#allocation21 + $0x18] sm:$0xff] }
 0x862   : > { %4045 = vmatpush.bf16.msra.mxu0 %v7573_v32  ;;  %v7577_v40 = vld [vmem:[#allocation21 + $0x40] sm:$0xff]  ;;  %v3720_v32 = vpop.permute.xlu1 %3719 }
 0x863   : > { %3609 = vmatpush.bf16.msra.mxu3 %v3586_v11  ;;  %v7566_v11 = vld [vmem:[#allocation19 + $0x68] sm:$0xff] }
 0x865   : > { %v8095_v24 = vpop.eup %8094  ;;  %4065 = vmatpush.bf16.msra.mxu1 %v7580_v28 }
 0x866   : > { %v3443_v47 = vmul.f32 %v8095_v24, %v3431_v9  ;;  %v7557_v9 = vld [vmem:[#allocation19 + $0x20] sm:$0xff]  ;;  %4046 = vmatpush.bf16.msra.mxu0 %v7572_v19 }
 0x867   : > { %3871 = vmatpush.bf16.msrb.mxu2 %v7557_v9  ;;  %v7565_v24 = vld [vmem:[#allocation19 + $0x60] sm:$0xff] }
 0x868   : > { %v3585_v17 = vpack.c.bf16 %v3443_v47, %v3442_v15  ;;  %v7571_v15 = vld [vmem:[#allocation21 + $0x10] sm:$0xff]  ;;  %v7564_v47 = vld [vmem:[#allocation19 + $0x58] sm:$0xff] }
 0x869   : > { %4377 = vperm.xlu2 %7945, %v4253_v16   ;;  %4066 = vmatpush.bf16.msra.mxu1 %v7579_v59 }
 0x86a   : > { %3610 = vmatpush.bf16.msra.mxu3 %v3585_v17  ;;  %4047 = vmatpush.bf16.msra.mxu0 %v7571_v15  ;;  %v7563_v17 = vld [vmem:[#allocation19 + $0x50] sm:$0xff] }
 0x86b   : > { %3872 = vmatpush.bf16.msrb.mxu2 %v7556_v52 }
 0x86d   : > { %6873 = vmatmul.msk.bf16.vlgmr.msra.gmra.mxu3 %vm2941_vm1, %v7551_v20  ;;  %4067 = vmatpush.bf16.msra.mxu1 %v7578_v55  ;;  %v7569_v20 = vld [vmem:[#allocation21] sm:$0xff] }
 0x86e   : > { %3887 = vmatpush.bf16.msrb.mxu3 %v7568_v61  ;;  %4048 = vmatpush.bf16.msra.mxu0 %v7570_v13  ;;  %v3715_v61 = vpop.permute.xlu0 %3714 }
 0x86f   : > { %3873 = vmatpush.bf16.msrb.mxu2 %v7555_v36 }
 0x871   : > { %4318 = vperm.xlu2 %7945, %v4246_v45   ;;  %4068 = vmatpush.bf16.msra.mxu1 %v7577_v40 }
 0x872   : > { %3888 = vmatpush.bf16.msrb.mxu3 %v7567_v8  ;;  %4049 = vmatpush.bf16.msra.mxu0 %v7569_v20 }
 0x873   : > { %3874 = vmatpush.bf16.msrb.mxu2 %v7554_v5 }
 0x876   : > { %3889 = vmatpush.bf16.msrb.mxu3 %v7566_v11  ;;  %v3762_v13 = vpop.permute.xlu0 %3761 }
 0x877   : > { %3875 = vmatpush.bf16.msrb.mxu2 %v7553_v10 }
 0x879   : > { %4323 = vperm.xlu2 %7945, %v4247_v49  }
 0x87a   : > { %3890 = vmatpush.bf16.msrb.mxu3 %v7565_v24 }
 0x87d   : > { %6874 = vmatmul.msk.bf16.gmra.mxu3 %vm2941_vm1, %v7552_v37  ;;  %v3747_v37 = vpop.permute.xlu2 %3746 }
 0x87e   : > { %3891 = vmatpush.bf16.msrb.mxu3 %v7564_v47 }
 0x882   : > { %3892 = vmatpush.bf16.msrb.mxu3 %v7563_v17 }
 0x885   : > { %v3752_v52 = vpop.permute.xlu2 %3751 }
 0x886   : > { %3893 = vmatpush.bf16.msrb.mxu3 %v7562_v33 }
 0x88a   : > { %3894 = vmatpush.bf16.msrb.mxu3 %v7561_v25 }
 0x89a   : > { %v3757_v15 = vpop.permute.xlu2 %3756 }
 0x8f0   : > { %v3612_v44 = vpop.f32.mrf.mxu3 }
 0x8f1   : > { %v3613_v6 = vadd.f32 %v3612_v44, %v9892_v1 }
 0x8f3   : > { %v3736_v9 = vrot.slane %v3613_v6, 1  ;;  %v3704_v4 = vrot.slane %v3613_v6, 7 }
 0x8f8   : > { %v3614_v3 = vpop.f32.mrf.mxu3 }
 0x8f9   : > { %v3615_v16 = vadd.f32 %v3614_v3, %v9890_v62  ;;  %v3730_v3 = vpop.permute.xlu2 %3729 }
 0x8fb   : > { %v3768_v45 = vpack.c.bf16 %v3615_v16, %v3613_v6  ;;  %v3737_v57 = vrot.slane %v3615_v16, 1  ;;  %v3705_v62 = vrot.slane %v3615_v16, 7 }
 0x8fd   : > { %3876 = vmatmul.bf16.vlgmr.msrb.gmra.mxu2 %v3768_v45  ;;  %4069 = vmatmul.bf16.vlgmr.msra.gmra.mxu1 %v3768_v45  ;;  %v3742_v23 = vsel %vm3281_vm3, %v3736_v9, %v3737_v57 }
 0x8fe   : > { %v3764_v1 = vmul.f32 %v3747_v37, %v3742_v23  ;;  %v3725_v37 = vpop.permute.xlu1 %3724 }
 0x900   : > { %v3617_v46 = vpop.f32.mrf.mxu3 }
 0x901   : > { %v3618_v49 = vadd.f32 %v3617_v46, %v9884_v42  ;;  %v3710_v42 = vsel %vm3264_vm2, %v3704_v4, %v3705_v62 }
 0x902   : > { %v3733_v11 = vmul.f32 %v3720_v32, %v3710_v42 }
 0x903   : > { %v3738_v51 = vrot.slane %v3618_v49, 1  ;;  %v3706_v33 = vrot.slane %v3618_v49, 7 }
 0x905   : > { %v3741_v28 = vsel %vm3281_vm3, %v3737_v57, %v3738_v51  ;;  %v3709_v6 = vsel %vm3264_vm2, %v3705_v62, %v3706_v33 }
 0x906   : > { %v3765_v54 = vmul.f32 %v3752_v52, %v3741_v28  ;;  %v3734_v45 = vmul.f32 %v3725_v37, %v3709_v6  ;;  %v7956_v52 = vld [vmem:[%s10622_s12] ss:$0 sm:$0xff] }
 0x908   : > { %v3619_v36 = vpop.f32.mrf.mxu3  ;;  %v3944_v59 = vpack.c.bf16 %v3765_v54, %v3764_v1  ;;  %v9955_v54 = vld [vmem:[%s10623_s22] ss:$0 sm:$0xff] }
 0x909   : > { %v3620_v5 = vadd.f32 %v3619_v36, %v9886_v58 }
 0x90a   : > { %4050 = vmatmul.bf16.vlgmr.msra.gmra.mxu0 %v3944_v59 }
 0x90b   : > { %v3707_v55 = vrot.slane %v3620_v5, 7  ;;  %v3770_v8 = vpack.c.bf16 %v3620_v5, %v3618_v49  ;;  %v3739_v40 = vrot.slane %v3620_v5, 1 }
 0x90d   : > { %v3711_v10 = vsel %vm3264_vm2, %v3707_v55, %v3704_v4  ;;  %3881 = vmatmul.bf16.gmra.mxu2 %v3770_v8  ;;  %4074 = vmatmul.bf16.gmra.mxu1 %v3770_v8  ;;  %v3740_v58 = vsel %vm3281_vm3, %v3738_v51, %v3739_v40  ;;  %v3743_v47 = vsel %vm3281_vm3, %v3739_v40, %v3736_v9 }
 0x90e   : > { %v3732_v19 = vmul.f32 %v3715_v61, %v3711_v10  ;;  %v3766_v17 = vmul.f32 %v3757_v15, %v3740_v58  ;;  %v3767_v20 = vmul.f32 %v3762_v13, %v3743_v47  ;;  %v3708_v44 = vsel %vm3264_vm2, %v3706_v33, %v3707_v55 }
 0x90f   : > { %v3735_v16 = vmul.f32 %v3730_v3, %v3708_v44 }
 0x910   : > { %v3769_v24 = vpack.c.bf16 %v3733_v11, %v3732_v19  ;;  %v3945_v25 = vpack.c.bf16 %v3767_v20, %v3766_v17 }
 0x911   : > { %v3771_v57 = vpack.c.bf16 %v3735_v16, %v3734_v45 }
 0x912   : > { %3895 = vmatmul.bf16.vlgmr.msrb.gmra.mxu3 %v3769_v24 }
 0x91a   : > { %4055 = vmatmul.bf16.gmra.mxu0 %v3945_v25 }
 0x922   : > { %3900 = vmatmul.bf16.gmra.mxu3 %v3771_v57 }
 0x97a   : > { %v4070_v46 = vpop.f32.mrf.mxu1 }
 0x980   : > { %v3877_v49 = vpop.f32.mrf.mxu2 }
 0x982   : > { %v4072_v23 = vpop.f32.mrf.mxu1 }
 0x987   : > { %v4051_v9 = vpop.f32.mrf.mxu0 }
 0x988   : > { %v4071_v36 = vadd.f32 %v4070_v46, %v4051_v9  ;;  %v3879_v55 = vpop.f32.mrf.mxu2 }
 0x98a   : > { %v4075_v59 = vpop.f32.mrf.mxu1  ;;  %v4080_v5 = vmul.f32 %v7956_v52, %v4071_v36 }
 0x98c   : > { %v9962_v10 = vadd.f32 %v9955_v54, %v4080_v5 }
 0x98e   : > { %v4088_v13 = vsub.f32 0.0, %v9962_v10 }
 0x98f   : > { %v4053_v51 = vpop.f32.mrf.mxu0 }
 0x990   : > { %v4073_v28 = vadd.f32 %v4072_v23, %v4053_v51  ;;  %v3882_v3 = vpop.f32.mrf.mxu2  ;;  %v4092_v6 = vmul.f32 1.442695, %v4088_v13 }
 0x992   : > { %v4081_v1 = vmul.f32 %v7956_v52, %v4073_v28  ;;  %v4077_v58 = vpop.f32.mrf.mxu1 }
 0x994   : > { %v9958_v62 = vadd.f32 %v9955_v54, %v4081_v1 }
 0x995   : > { %v3896_v61 = vpop.f32.mrf.mxu3 }
 0x996   : > { %v4089_v8 = vsub.f32 0.0, %v9958_v62  ;;  %v3897_v25 = vadd.f32 %v3896_v61, %v3877_v49 }
 0x997   : > { %v4056_v4 = vpop.f32.mrf.mxu0 }
 0x998   : > { %v4076_v42 = vadd.f32 %v4075_v59, %v4056_v4  ;;  %v4094_v19 = vmul.f32 1.442695, %v4089_v8  ;;  %v3909_v57 = vmul.f32 %v7956_v52, %v3897_v25 }
 0x99a   : > { %v4082_v32 = vmul.f32 %v7956_v52, %v4076_v42  ;;  %8096 = vpow2.f32 %v4094_v19  ;;  %v3916_v36 = vadd.f32 %v9955_v54, %v3909_v57 }
 0x99c   : > { %v9965_v40 = vadd.f32 %v9955_v54, %v4082_v32 }
 0x99d   : > { %v3898_v11 = vpop.f32.mrf.mxu3 }
 0x99e   : > { %v4090_v24 = vsub.f32 0.0, %v9965_v40  ;;  %v3899_v15 = vadd.f32 %v3898_v11, %v3879_v55  ;;  %v3884_v55 = vpop.f32.mrf.mxu2  ;;  %v3920_v11 = vsub.f32 0.0, %v3916_v36 }
 0x99f   : > { %v4058_v47 = vpop.f32.mrf.mxu0 }
 0x9a0   : > { %v4096_v17 = vmul.f32 1.442695, %v4090_v24  ;;  %v3910_v20 = vmul.f32 %v7956_v52, %v3899_v15  ;;  %v4078_v33 = vadd.f32 %v4077_v58, %v4058_v47  ;;  %v8097_v23 = vpop.eup %8096 }
 0x9a1   : > { %v4101_v61 = vadd.f32 1.0, %v8097_v23 }
 0x9a2   : > { %v4083_v44 = vmul.f32 %v7956_v52, %v4078_v33  ;;  %8098 = vpow2.f32 %v4096_v17  ;;  %v9970_v16 = vadd.f32 %v9955_v54, %v3910_v20  ;;  %v3924_v17 = vmul.f32 1.442695, %v3920_v11 }
 0x9a3   : > { %8100 = vpow2.f32 %v4092_v6 }
 0x9a4   : > { %v4087_v37 = vadd.f32 %v9955_v54, %v4083_v44  ;;  %v3921_v51 = vsub.f32 0.0, %v9970_v16 }
 0x9a5   : > { %v3901_v45 = vpop.f32.mrf.mxu3 }
 0x9a6   : > { %v4091_v46 = vsub.f32 0.0, %v4087_v37  ;;  %v3902_v9 = vadd.f32 %v3901_v45, %v3882_v3  ;;  %v3926_v4 = vmul.f32 1.442695, %v3921_v51 }
 0x9a8   : > { %v4098_v28 = vmul.f32 1.442695, %v4091_v46  ;;  %v3911_v1 = vmul.f32 %v7956_v52, %v3902_v9  ;;  %v8099_v49 = vpop.eup %8098 }
 0x9a9   : > { %v4102_v42 = vadd.f32 1.0, %v8099_v49  ;;  %v8101_v32 = vpop.eup %8100 }
 0x9aa   : > { %8102 = vpow2.f32 %v4098_v28  ;;  %v3918_v59 = vadd.f32 %v9955_v54, %v3911_v1  ;;  %v4100_v47 = vadd.f32 1.0, %v8101_v32 }
 0x9ab   : > { %8104 = vrcp.f32 %v4101_v61 }
 0x9ac   : > { %v3922_v5 = vsub.f32 0.0, %v3918_v59  ;;  %8106 = vpow2.f32 %v3926_v4 }
 0x9ad   : > { %v3903_v8 = vpop.f32.mrf.mxu3  ;;  %8108 = vrcp.f32 %v4102_v42 }
 0x9ae   : > { %v3928_v19 = vmul.f32 1.442695, %v3922_v5  ;;  %v3904_v24 = vadd.f32 %v3903_v8, %v3884_v55 }
 0x9b0   : > { %v8103_v15 = vpop.eup %8102  ;;  %v3912_v58 = vmul.f32 %v7956_v52, %v3904_v24  ;;  %8110 = vpow2.f32 %v3928_v19 }
 0x9b1   : > { %v4103_v13 = vadd.f32 1.0, %v8103_v15  ;;  %v8105_v25 = vpop.eup %8104  ;;  %v7585_v15 = vld [vmem:[%s10624_s1] sm:$0xff] }
 0x9b2   : > { %v3919_v20 = vadd.f32 %v9955_v54, %v3912_v58  ;;  %v8107_v44 = vpop.eup %8106  ;;  %v4109_v54 = vmul.f32 %v8105_v25, %v9958_v62  ;;  %v7586_v58 = vld [vmem:[%s10624_s1 + $0x8] sm:$0xff]  ;;  %v7593_v25 = vld [vmem:[#allocation25 + $0x20] sm:$0xff] }
 0x9b3   : > { %8112 = vrcp.f32 %v4103_v13  ;;  %v8109_v6 = vpop.eup %8108  ;;  %v3933_v28 = vadd.f32 1.0, %v8107_v44  ;;  %v7620_v13 = vld [vmem:[#allocation27 + $0x78] sm:$0xff]  ;;  %v7617_v44 = vld [vmem:[#allocation27 + $0x60] sm:$0xff] }
 0x9b4   : > { %v3923_v33 = vsub.f32 0.0, %v3919_v20  ;;  %8114 = vrcp.f32 %v4100_v47  ;;  %v4110_v52 = vmul.f32 %v8109_v6, %v9965_v40  ;;  %v7596_v47 = vld [vmem:[#allocation25 + $0x38] sm:$0xff] }
 0x9b5   : > { %8116 = vpow2.f32 %v3924_v17  ;;  %4507 = vmatpush.bf16.msra.mxu3 %v7596_v47  ;;  %v7619_v17 = vld [vmem:[#allocation27 + $0x70] sm:$0xff]  ;;  %v7592_v6 = vld [vmem:[#allocation25 + $0x18] sm:$0xff] }
 0x9b6   : > { %v3930_v3 = vmul.f32 1.442695, %v3923_v33  ;;  %v8111_v45 = vpop.eup %8110  ;;  %v7618_v33 = vld [vmem:[#allocation27 + $0x68] sm:$0xff] }
 0x9b7   : > { %v3934_v23 = vadd.f32 1.0, %v8111_v45  ;;  %v7616_v45 = vld [vmem:[#allocation27 + $0x58] sm:$0xff] }
 0x9b8   : > { %8118 = vpow2.f32 %v3930_v3  ;;  %v7587_v3 = vld [vmem:[%s10624_s1 + $0x10] sm:$0xff] }
 0x9b9   : > { %v8113_v57 = vpop.eup %8112  ;;  %8120 = vrcp.f32 %v3934_v23  ;;  %v7590_v23 = vld [vmem:[#allocation25 + $0x8] sm:$0xff] }
 0x9ba   : > { %v4111_v46 = vmul.f32 %v8113_v57, %v4087_v37  ;;  %v8115_v9 = vpop.eup %8114  ;;  %8122 = vrcp.f32 %v3933_v28  ;;  %v7588_v57 = vld [vmem:[%s10624_s1 + $0x18] sm:$0xff] }
 0x9bb   : > { %v8117_v51 = vpop.eup %8116  ;;  %v4108_v61 = vmul.f32 %v8115_v9, %v9962_v10  ;;  %v7610_v9 = vld [vmem:[#allocation27 + $0x28] sm:$0xff]  ;;  %v7609_v28 = vld [vmem:[#allocation27 + $0x20] sm:$0xff] }
 0x9bc   : > { %v4115_v1 = vpack.c.bf16 %v4111_v46, %v4110_v52  ;;  %v3932_v4 = vadd.f32 1.0, %v8117_v51  ;;  %v7591_v52 = vld [vmem:[#allocation25 + $0x10] sm:$0xff]  ;;  %v7614_v51 = vld [vmem:[#allocation27 + $0x48] sm:$0xff] }
 0x9bd   : > { %v4114_v42 = vpack.c.bf16 %v4109_v54, %v4108_v61  ;;  %v7615_v46 = vld [vmem:[#allocation27 + $0x50] sm:$0xff]  ;;  %v7613_v54 = vld [vmem:[#allocation27 + $0x40] sm:$0xff] }
 0x9be   : > { %v8119_v49 = vpop.eup %8118  ;;  %4152 = vmatpush.bf16.msra.mxu2 %v4115_v1  ;;  %v7589_v1 = vld [vmem:[#allocation25] sm:$0xff]  ;;  %v7607_v61 = vld [vmem:[#allocation27 + $0x10] sm:$0xff] }
 0x9bf   : > { %v3935_v5 = vadd.f32 1.0, %v8119_v49  ;;  %v8121_v40 = vpop.eup %8120  ;;  %v7608_v49 = vld [vmem:[#allocation27 + $0x18] sm:$0xff] }
 0x9c0   : > { %v8123_v37 = vpop.eup %8122  ;;  %v3942_v8 = vmul.f32 %v8121_v40, %v3918_v59  ;;  %v7595_v59 = vld [vmem:[#allocation25 + $0x30] sm:$0xff]  ;;  %v7604_v40 = vld [vmem:[#allocation25 + $0x78] sm:$0xff] }
 0x9c1   : > { %8124 = vrcp.f32 %v3935_v5  ;;  %v3941_v19 = vmul.f32 %v8123_v37, %v9970_v16  ;;  %v7611_v16 = vld [vmem:[#allocation27 + $0x30] sm:$0xff]  ;;  %4508 = vmatpush.bf16.msra.mxu3 %v7595_v59  ;;  %v7605_v5 = vld [vmem:[#allocation27] sm:$0xff]  ;;  %4536 = vmatpush.bf16.msrb.mxu0 %v7604_v40  ;;  %v4358_v59 = vpop.permute.xlu0 %4357 }
 0x9c2   : > { %4153 = vmatpush.bf16.msra.mxu2 %v4114_v42  ;;  %8126 = vrcp.f32 %v3932_v4  ;;  %v7606_v4 = vld [vmem:[#allocation27 + $0x8] sm:$0xff]  ;;  %v7603_v37 = vld [vmem:[#allocation25 + $0x70] sm:$0xff] }
 0x9c5   : > { %4537 = vmatpush.bf16.msrb.mxu0 %v7603_v37 }
 0x9c7   : > { %v8125_v55 = vpop.eup %8124 }
 0x9c8   : > { %v3943_v32 = vmul.f32 %v8125_v55, %v3919_v20  ;;  %v8127_v62 = vpop.eup %8126  ;;  %v7612_v20 = vld [vmem:[#allocation27 + $0x38] sm:$0xff] }
 0x9c9   : > { %v3940_v10 = vmul.f32 %v8127_v62, %v3916_v36  ;;  %4735 = vmatpush.bf16.msrb.mxu1 %v7612_v20  ;;  %v7594_v36 = vld [vmem:[#allocation25 + $0x28] sm:$0xff] }
 0x9ca   : > { %v4113_v11 = vpack.c.bf16 %v3943_v32, %v3942_v8  ;;  %4509 = vmatpush.bf16.msra.mxu3 %v7594_v36  ;;  %v7602_v62 = vld [vmem:[#allocation25 + $0x68] sm:$0xff] }
 0x9cb   : > { %v4112_v24 = vpack.c.bf16 %v3941_v19, %v3940_v10  ;;  %4538 = vmatpush.bf16.msrb.mxu0 %v7602_v62  ;;  %v7601_v19 = vld [vmem:[#allocation25 + $0x60] sm:$0xff] }
 0x9cc   : > { %4154 = vmatpush.bf16.msra.mxu2 %v4113_v11 }
 0x9cd   : > { %4736 = vmatpush.bf16.msrb.mxu1 %v7611_v16 }
 0x9ce   : > { %4510 = vmatpush.bf16.msra.mxu3 %v7593_v25 }
 0x9cf   : > { %4539 = vmatpush.bf16.msrb.mxu0 %v7601_v19 }
 0x9d0   : > { %4155 = vmatpush.bf16.msra.mxu2 %v4112_v24 }
 0x9d1   : > { %4737 = vmatpush.bf16.msrb.mxu1 %v7610_v9 }
 0x9d2   : > { %4511 = vmatpush.bf16.msra.mxu3 %v7592_v6 }
 0x9d3   : > { %7019 = vmatmul.msk.bf16.vlgmr.msra.gmra.mxu2 %vm2565_vm0, %v7585_v15 }
 0x9d4   : > { %4764 = vmatpush.bf16.msrb.mxu2 %v7620_v13  ;;  %v7599_v13 = vld [vmem:[#allocation25 + $0x50] sm:$0xff] }
 0x9d5   : > { %4738 = vmatpush.bf16.msrb.mxu1 %v7609_v28 }
 0x9d6   : > { %4512 = vmatpush.bf16.msra.mxu3 %v7591_v52 }
 0x9d8   : > { %4765 = vmatpush.bf16.msrb.mxu2 %v7619_v17  ;;  %v4363_v17 = vpop.permute.xlu1 %4362 }
 0x9d9   : > { %4739 = vmatpush.bf16.msrb.mxu1 %v7608_v49 }
 0x9da   : > { %4513 = vmatpush.bf16.msra.mxu3 %v7590_v23 }
 0x9dc   : > { %4766 = vmatpush.bf16.msrb.mxu2 %v7618_v33 }
 0x9dd   : > { %4740 = vmatpush.bf16.msrb.mxu1 %v7607_v61 }
 0x9de   : > { %4514 = vmatpush.bf16.msra.mxu3 %v7589_v1 }
 0x9e0   : > { %4767 = vmatpush.bf16.msrb.mxu2 %v7617_v44  ;;  %v7598_v44 = vld [vmem:[#allocation25 + $0x48] sm:$0xff] }
 0x9e1   : > { %4741 = vmatpush.bf16.msrb.mxu1 %v7606_v4 }
 0x9e3   : > { %7020 = vmatmul.msk.bf16.gmra.mxu2 %vm2565_vm0, %v7586_v58  ;;  %v7600_v58 = vld [vmem:[#allocation25 + $0x58] sm:$0xff] }
 0x9e4   : > { %4768 = vmatpush.bf16.msrb.mxu2 %v7616_v45  ;;  %4540 = vmatpush.bf16.msrb.mxu0 %v7600_v58  ;;  %v7597_v45 = vld [vmem:[#allocation25 + $0x40] sm:$0xff] }
 0x9e5   : > { %4742 = vmatpush.bf16.msrb.mxu1 %v7605_v5 }
 0x9e8   : > { %4769 = vmatpush.bf16.msrb.mxu2 %v7615_v46  ;;  %4541 = vmatpush.bf16.msrb.mxu0 %v7599_v13  ;;  %v4299_v46 = vpop.permute.xlu0 %4298 }
 0x9ec   : > { %4770 = vmatpush.bf16.msrb.mxu2 %v7614_v51  ;;  %4542 = vmatpush.bf16.msrb.mxu0 %v7598_v44  ;;  %v4368_v51 = vpop.permute.xlu1 %4367 }
 0x9f0   : > { %4771 = vmatpush.bf16.msrb.mxu2 %v7613_v54  ;;  %4543 = vmatpush.bf16.msrb.mxu0 %v7597_v45 }
 0x9f3   : > { %7021 = vmatmul.msk.bf16.gmra.mxu2 %vm2565_vm0, %v7587_v3  ;;  %v4294_v3 = vpop.permute.xlu2 %4293 }
 0x9f4   : > { %v4309_v40 = vpop.permute.xlu1 %4308 }
 0x9fb   : > { %v4373_v28 = vpop.permute.xlu2 %4372 }
 0xa03   : > { %7022 = vmatmul.msk.bf16.gmra.mxu2 %vm2565_vm0, %v7588_v57 }
 0xa56   : > { %v4157_v42 = vpop.f32.mrf.mxu2 }
 0xa57   : > { %v9990_v8 = vadd.f32 %v4157_v42, %v9872_v12 }
 0xa59   : > { %v4339_v15 = vrot.slane %v9990_v8, 1 }
 0xa5e   : > { %v4159_v55 = vpop.f32.mrf.mxu2 }
 0xa5f   : > { %v9993_v32 = vadd.f32 %v4159_v55, %v9869_v43 }
 0xa61   : > { %v4403_v11 = vpack.c.bf16 %v9993_v32, %v9990_v8  ;;  %v4340_v10 = vrot.slane %v9993_v32, 1 }
 0xa63   : > { %4515 = vmatmul.bf16.vlgmr.msra.gmra.mxu3 %v4403_v11  ;;  %4772 = vmatmul.bf16.vlgmr.msrb.gmra.mxu2 %v4403_v11  ;;  %v4353_v43 = vsel %vm3281_vm3, %v4339_v15, %v4340_v10 }
 0xa64   : > { %v4395_v16 = vmul.f32 %v4358_v59, %v4353_v43 }
 0xa66   : > { %v4162_v24 = vpop.f32.mrf.mxu2 }
 0xa67   : > { %v10000_v12 = vadd.f32 %v4162_v24, %v9864_v53 }
 0xa69   : > { %v4341_v47 = vrot.slane %v10000_v12, 1 }
 0xa6b   : > { %v4352_v20 = vsel %vm3281_vm3, %v4340_v10, %v4341_v47 }
 0xa6c   : > { %v4396_v36 = vmul.f32 %v4363_v17, %v4352_v20  ;;  %v4314_v17 = vpop.permute.xlu1 %4313  ;;  %v4275_v20 = vrot.slane %v9990_v8, 7 }
 0xa6e   : > { %v4164_v33 = vpop.f32.mrf.mxu2  ;;  %v4635_v53 = vpack.c.bf16 %v4396_v36, %v4395_v16 }
 0xa6f   : > { %v10010_v25 = vadd.f32 %v4164_v33, %v9861_v31 }
 0xa70   : > { %4743 = vmatmul.bf16.vlgmr.msrb.gmra.mxu1 %v4635_v53 }
 0xa71   : > { %v4405_v6 = vpack.c.bf16 %v10010_v25, %v10000_v12  ;;  %v4342_v57 = vrot.slane %v10010_v25, 1 }
 0xa73   : > { %4520 = vmatmul.bf16.gmra.mxu3 %v4405_v6  ;;  %4777 = vmatmul.bf16.gmra.mxu2 %v4405_v6  ;;  %v4351_v23 = vsel %vm3281_vm3, %v4341_v47, %v4342_v57  ;;  %v4276_v47 = vrot.slane %v9993_v32, 7 }
 0xa74   : > { %v4397_v54 = vmul.f32 %v4368_v51, %v4351_v23 }
 0xa75   : > { %v4289_v16 = vsel %vm3264_vm2, %v4275_v20, %v4276_v47 }
 0xa76   : > { %v4167_v52 = vpop.f32.mrf.mxu2  ;;  %v4332_v32 = vmul.f32 %v4299_v46, %v4289_v16 }
 0xa77   : > { %v10016_v9 = vadd.f32 %v4167_v52, %v9856_v27  ;;  %v4304_v27 = vpop.permute.xlu0 %4303 }
 0xa79   : > { %v4343_v31 = vrot.slane %v10016_v9, 1 }
 0xa7b   : > { %v4350_v1 = vsel %vm3281_vm3, %v4342_v57, %v4343_v31 }
 0xa7c   : > { %v4398_v49 = vmul.f32 %v4373_v28, %v4350_v1  ;;  %v4278_v28 = vrot.slane %v10010_v25, 7  ;;  %v4277_v1 = vrot.slane %v10000_v12, 7 }
 0xa7e   : > { %v4169_v61 = vpop.f32.mrf.mxu2  ;;  %v4636_v4 = vpack.c.bf16 %v4398_v49, %v4397_v54  ;;  %v4288_v8 = vsel %vm3264_vm2, %v4276_v47, %v4277_v1 }
 0xa7f   : > { %v10024_v5 = vadd.f32 %v4169_v61, %v9853_v18  ;;  %v4383_v10 = vpop.permute.xlu0 %4382  ;;  %v4378_v18 = vpop.permute.xlu2 %4377  ;;  %v4333_v49 = vmul.f32 %v4304_v27, %v4288_v8 }
 0xa80   : > { %4748 = vmatmul.bf16.gmra.mxu1 %v4636_v4  ;;  %v4279_v4 = vrot.slane %v10016_v9, 7 }
 0xa81   : > { %v4407_v42 = vpack.c.bf16 %v10024_v5, %v10016_v9  ;;  %v4344_v37 = vrot.slane %v10024_v5, 1  ;;  %v4280_v61 = vrot.slane %v10024_v5, 7 }
 0xa83   : > { %4525 = vmatmul.bf16.gmra.mxu3 %v4407_v42  ;;  %4782 = vmatmul.bf16.gmra.mxu2 %v4407_v42  ;;  %v4349_v19 = vsel %vm3281_vm3, %v4343_v31, %v4344_v37  ;;  %v4393_v31 = vpop.permute.xlu1 %4392  ;;  %v4285_v25 = vsel %vm3264_vm2, %v4279_v4, %v4280_v61  ;;  %v4286_v42 = vsel %vm3264_vm2, %v4278_v28, %v4279_v4 }
 0xa84   : > { %v4399_v58 = vmul.f32 %v4378_v18, %v4349_v19 }
 0xa86   : > { %v4172_v55 = vpop.f32.mrf.mxu2 }
 0xa87   : > { %v4173_v62 = vadd.f32 %v4172_v55, %v9846_v21  ;;  %v4388_v52 = vpop.permute.xlu0 %4387  ;;  %v4319_v12 = vpop.permute.xlu2 %4318  ;;  %v4335_v55 = vmul.f32 %v4314_v17, %v4286_v42 }
 0xa89   : > { %v4345_v11 = vrot.slane %v4173_v62, 1  ;;  %v4281_v19 = vrot.slane %v4173_v62, 7 }
 0xa8b   : > { %v4348_v24 = vsel %vm3281_vm3, %v4344_v37, %v4345_v11  ;;  %v4336_v37 = vmul.f32 %v4319_v12, %v4285_v25  ;;  %v4284_v5 = vsel %vm3264_vm2, %v4280_v61, %v4281_v19 }
 0xa8c   : > { %v4400_v43 = vmul.f32 %v4383_v10, %v4348_v24 }
 0xa8e   : > { %v4174_v13 = vpop.f32.mrf.mxu2  ;;  %v4637_v59 = vpack.c.bf16 %v4400_v43, %v4399_v58 }
 0xa8f   : > { %v4175_v21 = vadd.f32 %v4174_v13, %v9848_v39  ;;  %v4324_v10 = vpop.permute.xlu2 %4323 }
 0xa90   : > { %4753 = vmatmul.bf16.gmra.mxu1 %v4637_v59  ;;  %v4337_v18 = vmul.f32 %v4324_v10, %v4284_v5 }
 0xa91   : > { %v4282_v36 = vrot.slane %v4175_v21, 7  ;;  %v4409_v33 = vpack.c.bf16 %v4175_v21, %v4173_v62  ;;  %v4346_v44 = vrot.slane %v4175_v21, 1 }
 0xa93   : > { %v4290_v53 = vsel %vm3264_vm2, %v4282_v36, %v4275_v20  ;;  %4530 = vmatmul.bf16.gmra.mxu3 %v4409_v33  ;;  %4787 = vmatmul.bf16.gmra.mxu2 %v4409_v33  ;;  %v4347_v57 = vsel %vm3281_vm3, %v4345_v11, %v4346_v44  ;;  %v4354_v39 = vsel %vm3281_vm3, %v4346_v44, %v4339_v15 }
 0xa94   : > { %v4331_v6 = vmul.f32 %v4294_v3, %v4290_v53  ;;  %v4401_v23 = vmul.f32 %v4388_v52, %v4347_v57  ;;  %v4402_v51 = vmul.f32 %v4393_v31, %v4354_v39  ;;  %v4287_v3 = vsel %vm3264_vm2, %v4277_v1, %v4278_v28  ;;  %v10070_v52 = vld [vmem:[%s10625_s16] ss:$0 sm:$0xff] }
 0xa95   : > { %v4334_v54 = vmul.f32 %v4309_v40, %v4287_v3  ;;  %v4408_v11 = vpack.c.bf16 %v4336_v37, %v4335_v55  ;;  %v4283_v27 = vsel %vm3264_vm2, %v4281_v19, %v4282_v36  ;;  %v4329_v40 = vpop.permute.xlu0 %4328  ;;  %v10076_v3 = vld [vmem:[%s10626_s23] ss:$0 sm:$0xff] }
 0xa96   : > { %v4404_v45 = vpack.c.bf16 %v4332_v32, %v4331_v6  ;;  %v4638_v46 = vpack.c.bf16 %v4402_v51, %v4401_v23  ;;  %v4338_v9 = vmul.f32 %v4329_v40, %v4283_v27 }
 0xa97   : > { %v4406_v15 = vpack.c.bf16 %v4334_v54, %v4333_v49 }
 0xa98   : > { %4544 = vmatmul.bf16.vlgmr.msrb.gmra.mxu0 %v4404_v45  ;;  %v4410_v24 = vpack.c.bf16 %v4338_v9, %v4337_v18 }
 0xaa0   : > { %4758 = vmatmul.bf16.gmra.mxu1 %v4638_v46 }
 0xaa8   : > { %4549 = vmatmul.bf16.gmra.mxu0 %v4406_v15 }
 0xab8   : > { %4554 = vmatmul.bf16.gmra.mxu0 %v4408_v11 }
 0xac8   : > { %4559 = vmatmul.bf16.gmra.mxu0 %v4410_v24 }
 0xae6   : > { %v4773_v58 = vpop.f32.mrf.mxu2  ;;  %v4516_v16 = vpop.f32.mrf.mxu3 }
 0xaed   : > { %v4744_v43 = vpop.f32.mrf.mxu1 }
 0xaee   : > { %v4774_v47 = vadd.f32 %v4773_v58, %v4744_v43  ;;  %v4775_v13 = vpop.f32.mrf.mxu2  ;;  %v10063_v41 = vpop.f32.mrf.mxu3 }
 0xaf0   : > { %v4793_v18 = vmul.f32 %v10070_v52, %v4774_v47 }
 0xaf5   : > { %v4746_v59 = vpop.f32.mrf.mxu1 }
 0xaf6   : > { %v4778_v17 = vpop.f32.mrf.mxu2  ;;  %v10067_v57 = vpop.f32.mrf.mxu3  ;;  %v4776_v4 = vadd.f32 %v4775_v13, %v4746_v59 }
 0xaf8   : > { %v4794_v9 = vmul.f32 %v10070_v52, %v4776_v4 }
 0xafd   : > { %v4749_v62 = vpop.f32.mrf.mxu1 }
 0xafe   : > { %v4780_v20 = vpop.f32.mrf.mxu2  ;;  %v4779_v8 = vadd.f32 %v4778_v17, %v4749_v62  ;;  %v10088_v42 = vpop.f32.mrf.mxu3  ;;  %v10109_v62 = vadd.f32 %v10076_v3, %v4794_v9 }
 0xb00   : > { %v4795_v12 = vmul.f32 %v10070_v52, %v4779_v8 }
 0xb02   : > { %v10103_v24 = vadd.f32 %v10076_v3, %v4795_v12 }
 0xb04   : > { %v4811_v47 = vsub.f32 0.0, %v10103_v24 }
 0xb05   : > { %v4751_v21 = vpop.f32.mrf.mxu1 }
 0xb06   : > { %v4783_v36 = vpop.f32.mrf.mxu2  ;;  %v4781_v23 = vadd.f32 %v4780_v20, %v4751_v21  ;;  %v10113_v21 = vadd.f32 %v10076_v3, %v4793_v18 }
 0xb08   : > { %v4796_v15 = vmul.f32 %v10070_v52, %v4781_v23 }
 0xb0a   : > { %v10095_v19 = vadd.f32 %v10076_v3, %v4796_v15 }
 0xb0c   : > { %v4812_v59 = vsub.f32 0.0, %v10095_v19 }
 0xb0d   : > { %v4754_v33 = vpop.f32.mrf.mxu1 }
 0xb0e   : > { %v4785_v53 = vpop.f32.mrf.mxu2  ;;  %v4784_v31 = vadd.f32 %v4783_v36, %v4754_v33  ;;  %v4823_v33 = vmul.f32 1.442695, %v4812_v59 }
 0xb10   : > { %v4797_v54 = vmul.f32 %v10070_v52, %v4784_v31  ;;  %v4821_v31 = vmul.f32 1.442695, %v4811_v47 }
 0xb12   : > { %v10091_v37 = vadd.f32 %v10076_v3, %v4797_v54 }
 0xb14   : > { %v4813_v58 = vsub.f32 0.0, %v10091_v37 }
 0xb15   : > { %v4545_v44 = vpop.f32.mrf.mxu0  ;;  %v4756_v32 = vpop.f32.mrf.mxu1 }
 0xb16   : > { %v10065_v6 = vadd.f32 %v4545_v44, %v4516_v16  ;;  %v4786_v45 = vadd.f32 %v4785_v53, %v4756_v32  ;;  %v4788_v39 = vpop.f32.mrf.mxu2  ;;  %v4825_v16 = vmul.f32 1.442695, %v4813_v58  ;;  %v4810_v44 = vsub.f32 0.0, %v10109_v62 }
 0xb18   : > { %v4798_v51 = vmul.f32 %v10070_v52, %v4786_v45  ;;  %v4809_v45 = vsub.f32 0.0, %v10113_v21 }
 0xb1a   : > { %v10082_v61 = vadd.f32 %v10076_v3, %v4798_v51  ;;  %v4819_v51 = vmul.f32 1.442695, %v4810_v44 }
 0xb1c   : > { %v4814_v27 = vsub.f32 0.0, %v10082_v61 }
 0xb1d   : > { %v10073_v28 = vpop.f32.mrf.mxu0  ;;  %v4759_v1 = vpop.f32.mrf.mxu1 }
 0xb1e   : > { %v4789_v46 = vadd.f32 %v4788_v39, %v4759_v1  ;;  %v4790_v11 = vpop.f32.mrf.mxu2  ;;  %v4827_v17 = vmul.f32 1.442695, %v4814_v27  ;;  %v4526_v39 = vpop.f32.mrf.mxu3 }
 0xb20   : > { %v4799_v49 = vmul.f32 %v10070_v52, %v4789_v46  ;;  %v4817_v46 = vmul.f32 1.442695, %v4809_v45 }
 0xb22   : > { %v10085_v25 = vadd.f32 %v10076_v3, %v4799_v49 }
 0xb24   : > { %v4815_v55 = vsub.f32 0.0, %v10085_v25 }
 0xb25   : > { %v10098_v40 = vpop.f32.mrf.mxu0  ;;  %v4761_v5 = vpop.f32.mrf.mxu1 }
 0xb26   : > { %v4791_v10 = vadd.f32 %v4790_v11, %v4761_v5  ;;  %v4829_v43 = vmul.f32 1.442695, %v4815_v55  ;;  %v4528_v11 = vpop.f32.mrf.mxu3 }
 0xb28   : > { %v4800_v13 = vmul.f32 %v10070_v52, %v4791_v10  ;;  %8128 = vpow2.f32 %v4829_v43 }
 0xb29   : > { %8130 = vpow2.f32 %v4827_v17 }
 0xb2a   : > { %v4808_v20 = vadd.f32 %v10076_v3, %v4800_v13  ;;  %8132 = vpow2.f32 %v4825_v16 }
 0xb2b   : > { %8134 = vpow2.f32 %v4823_v33 }
 0xb2c   : > { %v4816_v36 = vsub.f32 0.0, %v4808_v20 }
 0xb2d   : > { %v4552_v53 = vpop.f32.mrf.mxu0 }
 0xb2e   : > { %v4831_v32 = vmul.f32 1.442695, %v4816_v36  ;;  %v8129_v23 = vpop.eup %8128 }
 0xb2f   : > { %v8131_v1 = vpop.eup %8130  ;;  %v4839_v8 = vadd.f32 1.0, %v8129_v23  ;;  %v4553_v23 = vadd.f32 %v4552_v53, %v10088_v42 }
 0xb30   : > { %8136 = vpow2.f32 %v4831_v32  ;;  %v8133_v49 = vpop.eup %8132  ;;  %v4838_v15 = vadd.f32 1.0, %v8131_v1 }
 0xb31   : > { %8138 = vpow2.f32 %v4821_v31  ;;  %v8135_v4 = vpop.eup %8134  ;;  %v4837_v55 = vadd.f32 1.0, %v8133_v49  ;;  %v4531_v31 = vpop.f32.mrf.mxu3  ;;  %v4571_v42 = vmul.f32 %v10070_v52, %v4553_v23 }
 0xb32   : > { %8140 = vpow2.f32 %v4819_v51  ;;  %v4836_v9 = vadd.f32 1.0, %v8135_v4 }
 0xb33   : > { %8142 = vpow2.f32 %v4817_v46 }
 0xb34   : > { %8144 = vrcp.f32 %v4839_v8 }
 0xb35   : > { %v4555_v54 = vpop.f32.mrf.mxu0  ;;  %8146 = vrcp.f32 %v4838_v15  ;;  %v4551_v15 = vadd.f32 %v10098_v40, %v10067_v57 }
 0xb36   : > { %v8137_v12 = vpop.eup %8136  ;;  %v4556_v32 = vadd.f32 %v4555_v54, %v4526_v39 }
 0xb37   : > { %v4840_v27 = vadd.f32 1.0, %v8137_v12  ;;  %v8139_v5 = vpop.eup %8138 }
 0xb38   : > { %v8141_v10 = vpop.eup %8140  ;;  %v4835_v58 = vadd.f32 1.0, %v8139_v5 }
 0xb39   : > { %8148 = vrcp.f32 %v4840_v27  ;;  %v8143_v18 = vpop.eup %8142  ;;  %v4834_v59 = vadd.f32 1.0, %v8141_v10 }
 0xb3a   : > { %8150 = vrcp.f32 %v4837_v55  ;;  %v8145_v13 = vpop.eup %8144  ;;  %v4833_v16 = vadd.f32 1.0, %v8143_v18 }
 0xb3b   : > { %8152 = vrcp.f32 %v4836_v9  ;;  %v8147_v47 = vpop.eup %8146  ;;  %v4855_v33 = vmul.f32 %v8145_v13, %v10085_v25  ;;  %v4572_v25 = vmul.f32 %v10070_v52, %v4556_v32 }
 0xb3c   : > { %8154 = vrcp.f32 %v4835_v58  ;;  %v4854_v46 = vmul.f32 %v8147_v47, %v10082_v61  ;;  %v4548_v61 = vadd.f32 %v10073_v28, %v10063_v41  ;;  %v10143_v41 = vadd.f32 %v10076_v3, %v4571_v42 }
 0xb3d   : > { %v4557_v43 = vpop.f32.mrf.mxu0  ;;  %8156 = vrcp.f32 %v4834_v59  ;;  %v4568_v58 = vmul.f32 %v10070_v52, %v10065_v6 }
 0xb3e   : > { %v4558_v17 = vadd.f32 %v4557_v43, %v4528_v11  ;;  %8158 = vrcp.f32 %v4833_v16  ;;  %v4570_v11 = vmul.f32 %v10070_v52, %v4551_v15  ;;  %v4533_v43 = vpop.f32.mrf.mxu3 }
 0xb3f   : > { %v8149_v36 = vpop.eup %8148  ;;  %v10162_v32 = vadd.f32 %v10076_v3, %v4568_v58 }
 0xb40   : > { %v4856_v44 = vmul.f32 %v8149_v36, %v4808_v20  ;;  %v8151_v45 = vpop.eup %8150  ;;  %v4573_v51 = vmul.f32 %v10070_v52, %v4558_v17  ;;  %v4590_v36 = vsub.f32 0.0, %v10143_v41 }
 0xb41   : > { %v8153_v8 = vpop.eup %8152  ;;  %v4853_v39 = vmul.f32 %v8151_v45, %v10091_v37  ;;  %v10136_v37 = vadd.f32 %v10076_v3, %v4572_v25 }
 0xb42   : > { %v4864_v1 = vpack.c.bf16 %v4856_v44, %v4855_v33  ;;  %v8155_v54 = vpop.eup %8154  ;;  %v10128_v53 = vadd.f32 %v10076_v3, %v4573_v51  ;;  %v4852_v57 = vmul.f32 %v8153_v8, %v10095_v19  ;;  %v4569_v19 = vmul.f32 %v10070_v52, %v4548_v61 }
 0xb43   : > { %v4863_v12 = vpack.c.bf16 %v4854_v46, %v4853_v39  ;;  %v8157_v40 = vpop.eup %8156  ;;  %v4851_v5 = vmul.f32 %v8155_v54, %v10103_v24  ;;  %v10153_v24 = vadd.f32 %v10076_v3, %v4570_v11  ;;  %v4591_v17 = vsub.f32 0.0, %v10136_v37 }
 0xb44   : > { %4913 = vmatpush.bf16.msrb.mxu3 %v4864_v1  ;;  %v8159_v55 = vpop.eup %8158  ;;  %v4592_v28 = vsub.f32 0.0, %v10128_v53  ;;  %v4850_v18 = vmul.f32 %v8157_v40, %v10109_v62  ;;  %v10158_v62 = vadd.f32 %v10076_v3, %v4569_v19  ;;  %v4601_v23 = vmul.f32 1.442695, %v4590_v36 }
 0xb45   : > { %v4560_v49 = vpop.f32.mrf.mxu0  ;;  %v4862_v10 = vpack.c.bf16 %v4852_v57, %v4851_v5  ;;  %v4849_v59 = vmul.f32 %v8159_v55, %v10113_v21  ;;  %v4589_v21 = vsub.f32 0.0, %v10153_v24  ;;  %v4603_v45 = vmul.f32 1.442695, %v4591_v17 }
 0xb46   : > { %v4561_v20 = vadd.f32 %v4560_v49, %v4531_v31  ;;  %v4605_v33 = vmul.f32 1.442695, %v4592_v28  ;;  %v4588_v51 = vsub.f32 0.0, %v10158_v62  ;;  %v4587_v46 = vsub.f32 0.0, %v10162_v32 }
 0xb47   : > { %v4861_v44 = vpack.c.bf16 %v4850_v18, %v4849_v59  ;;  %v4599_v8 = vmul.f32 1.442695, %v4589_v21 }
 0xb48   : > { %v4574_v4 = vmul.f32 %v10070_v52, %v4561_v20  ;;  %4914 = vmatpush.bf16.msrb.mxu3 %v4863_v12  ;;  %v4597_v15 = vmul.f32 1.442695, %v4588_v51  ;;  %v4595_v20 = vmul.f32 1.442695, %v4587_v46  ;;  %v7621_v51 = vld [vmem:[#allocation31] sm:$0xff] }
 0xb49   : > { %v7625_v46 = vld [vmem:[#allocation31 + $0x20] sm:$0xff] }
 0xb4a   : > { %v10139_v27 = vadd.f32 %v10076_v3, %v4574_v4 }
 0xb4c   : > { %v4593_v9 = vsub.f32 0.0, %v10139_v27  ;;  %4915 = vmatpush.bf16.msrb.mxu3 %v4862_v10 }
 0xb4d   : > { %v4562_v13 = vpop.f32.mrf.mxu0 }
 0xb4e   : > { %v4607_v47 = vmul.f32 1.442695, %v4593_v9  ;;  %v4563_v16 = vadd.f32 %v4562_v13, %v4533_v43 }
 0xb50   : > { %v4575_v6 = vmul.f32 %v10070_v52, %v4563_v16  ;;  %8160 = vpow2.f32 %v4607_v47  ;;  %4916 = vmatpush.bf16.msrb.mxu3 %v4861_v44 }
 0xb51   : > { %8162 = vpow2.f32 %v4605_v33 }
 0xb52   : > { %v4586_v31 = vadd.f32 %v10076_v3, %v4575_v6  ;;  %8164 = vpow2.f32 %v4603_v45 }
 0xb53   : > { %8166 = vpow2.f32 %v4601_v23 }
 0xb54   : > { %v4594_v1 = vsub.f32 0.0, %v4586_v31 }
 0xb56   : > { %v4609_v52 = vmul.f32 1.442695, %v4594_v1  ;;  %v8161_v49 = vpop.eup %8160  ;;  %v7623_v1 = vld [vmem:[#allocation31 + $0x10] sm:$0xff] }
 0xb57   : > { %v8163_v25 = vpop.eup %8162  ;;  %v4617_v39 = vadd.f32 1.0, %v8161_v49 }
 0xb58   : > { %8168 = vpow2.f32 %v4609_v52  ;;  %v8165_v3 = vpop.eup %8164  ;;  %v4616_v54 = vadd.f32 1.0, %v8163_v25  ;;  %v7644_v52 = vld [vmem:[#allocation33 + $0x74] sm:$0xf0]  ;;  %v7642_v25 = vld [vmem:[#allocation33 + $0x64] sm:$0xf0] }
 0xb59   : > { %8170 = vpow2.f32 %v4599_v8  ;;  %v8167_v42 = vpop.eup %8166  ;;  %v4615_v4 = vadd.f32 1.0, %v8165_v3  ;;  %v7241_v8 = vld [vmem:[#allocation33 + $0x70] sm:$0xf]  ;;  %v7235_v3 = vld [vmem:[#allocation33 + $0x68] sm:$0xf0] }
 0xb5a   : > { %8172 = vpow2.f32 %v4597_v15  ;;  %v4614_v40 = vadd.f32 1.0, %v8167_v42  ;;  %v7242_v49 = vor.u32 %v7644_v52, %v7241_v8  ;;  %v7243_v15 = vld [vmem:[#allocation33 + $0x78] sm:$0xf0]  ;;  %v7187_v8 = vld [vmem:[#allocation33 + $0x8] sm:$0xf0] }
 0xb5b   : > { %8174 = vpow2.f32 %v4595_v20 }
 0xb5c   : > { %8176 = vrcp.f32 %v4617_v39  ;;  %v7641_v39 = vld [vmem:[#allocation33 + $0x64] sm:$0xf]  ;;  %5068 = vmatpush.bf16.msra.mxu0 %v7242_v49 }
 0xb5d   : > { %8178 = vrcp.f32 %v4616_v54  ;;  %v7238_v42 = vor.u32 %v7641_v39, %v7235_v3 }
 0xb5e   : > { %v8169_v61 = vpop.eup %8168 }
 0xb5f   : > { %v4618_v12 = vadd.f32 1.0, %v8169_v61  ;;  %v8171_v57 = vpop.eup %8170  ;;  %v7225_v61 = vld [vmem:[#allocation33 + $0x50] sm:$0xf] }
 0xb60   : > { %v8173_v55 = vpop.eup %8172  ;;  %v4613_v11 = vadd.f32 1.0, %v8171_v57  ;;  %v7227_v57 = vld [vmem:[#allocation33 + $0x58] sm:$0xf0] }
 0xb61   : > { %8180 = vrcp.f32 %v4618_v12  ;;  %v8175_v5 = vpop.eup %8174  ;;  %v4612_v19 = vadd.f32 1.0, %v8173_v55  ;;  %v7639_v12 = vld [vmem:[#allocation33 + $0x54] sm:$0xf] }
 0xb62   : > { %8182 = vrcp.f32 %v4615_v4  ;;  %v8177_v28 = vpop.eup %8176  ;;  %v4611_v18 = vadd.f32 1.0, %v8175_v5  ;;  %v7640_v4 = vld [vmem:[#allocation33 + $0x54] sm:$0xf0]  ;;  %v7230_v55 = vor.u32 %v7639_v12, %v7227_v57  ;;  %v7638_v5 = vld [vmem:[#allocation33 + $0x44] sm:$0xf0] }
 0xb63   : > { %8184 = vrcp.f32 %v4614_v40  ;;  %v8179_v9 = vpop.eup %8178  ;;  %v4633_v58 = vmul.f32 %v8177_v28, %v10139_v27  ;;  %v7226_v40 = vor.u32 %v7640_v4, %v7225_v61  ;;  %v7637_v28 = vld [vmem:[#allocation33 + $0x44] sm:$0xf] }
 0xb64   : > { %8186 = vrcp.f32 %v4613_v11  ;;  %v4632_v17 = vmul.f32 %v8179_v9, %v10128_v53  ;;  %v7217_v11 = vld [vmem:[#allocation33 + $0x40] sm:$0xf] }
 0xb65   : > { %8188 = vrcp.f32 %v4612_v19  ;;  %v7219_v19 = vld [vmem:[#allocation33 + $0x48] sm:$0xf0]  ;;  %v7218_v9 = vor.u32 %v7638_v5, %v7217_v11  ;;  %v7369_v5 = vld [vmem:[%s9278_s27 + $0xf0] sm:$0xf] }
 0xb66   : > { %8190 = vrcp.f32 %v4611_v18  ;;  %v7222_v18 = vor.u32 %v7637_v28, %v7219_v19  ;;  %v7659_v28 = vld [vmem:[%s9278_s27 + $0x74] sm:$0xf]  ;;  %v7307_v19 = vld [vmem:[%s9278_s27 + $0x78] sm:$0xf0] }
 0xb67   : > { %v8181_v10 = vpop.eup %8180 }
 0xb68   : > { %v4634_v43 = vmul.f32 %v8181_v10, %v4586_v31  ;;  %v8183_v13 = vpop.eup %8182  ;;  %v7627_v10 = vld [vmem:[#allocation31 + $0x30] sm:$0xff] }
 0xb69   : > { %v8185_v47 = vpop.eup %8184  ;;  %v4631_v16 = vmul.f32 %v8183_v13, %v10136_v37  ;;  %v7622_v37 = vld [vmem:[#allocation31 + $0x8] sm:$0xff]  ;;  %v7635_v13 = vld [vmem:[#allocation33 + $0x34] sm:$0xf] }
 0xb6a   : > { %v4860_v59 = vpack.c.bf16 %v4634_v43, %v4633_v58  ;;  %v8187_v36 = vpop.eup %8186  ;;  %v4630_v6 = vmul.f32 %v8185_v47, %v10143_v41  ;;  %v7624_v41 = vld [vmem:[#allocation31 + $0x18] sm:$0xff]  ;;  %v7209_v58 = vld [vmem:[#allocation33 + $0x30] sm:$0xf] }
 0xb6b   : > { %v4859_v33 = vpack.c.bf16 %v4632_v17, %v4631_v16  ;;  %v8189_v44 = vpop.eup %8188  ;;  %v4629_v21 = vmul.f32 %v8187_v36, %v10153_v24  ;;  %v7626_v24 = vld [vmem:[#allocation31 + $0x28] sm:$0xff]  ;;  %v7636_v43 = vld [vmem:[#allocation33 + $0x34] sm:$0xf0]  ;;  %v7201_v16 = vld [vmem:[#allocation33 + $0x20] sm:$0xf] }
 0xb6c   : > { %4917 = vmatpush.bf16.msrb.mxu3 %v4860_v59  ;;  %v8191_v27 = vpop.eup %8190  ;;  %v4628_v31 = vmul.f32 %v8189_v44, %v10158_v62  ;;  %v7643_v62 = vld [vmem:[#allocation33 + $0x74] sm:$0xf]  ;;  %v7211_v59 = vld [vmem:[#allocation33 + $0x38] sm:$0xf0]  ;;  %v7210_v17 = vor.u32 %v7636_v43, %v7209_v58  ;;  %v7634_v36 = vld [vmem:[#allocation33 + $0x24] sm:$0xf0] }
 0xb6d   : > { %v4858_v45 = vpack.c.bf16 %v4630_v6, %v4629_v21  ;;  %v4627_v53 = vmul.f32 %v8191_v27, %v10162_v32  ;;  %v7233_v32 = vld [vmem:[#allocation33 + $0x60] sm:$0xf]  ;;  %v7246_v20 = vor.u32 %v7643_v62, %v7243_v15  ;;  %v7214_v47 = vor.u32 %v7635_v13, %v7211_v59  ;;  %v7203_v44 = vld [vmem:[#allocation33 + $0x28] sm:$0xf0]  ;;  %v7193_v21 = vld [vmem:[#allocation33 + $0x10] sm:$0xf] }
 0xb6e   : > { %v7234_v54 = vor.u32 %v7642_v25, %v7233_v32  ;;  %v7202_v6 = vor.u32 %v7634_v36, %v7201_v16  ;;  %v7632_v27 = vld [vmem:[#allocation33 + $0x14] sm:$0xf0]  ;;  %v7675_v58 = vld [vmem:[%s9278_s27 + $0xf4] sm:$0xf]  ;;  %v7371_v43 = vld [vmem:[%s9278_s27 + $0xf8] sm:$0xf0] }
 0xb6f   : > { %v4857_v23 = vpack.c.bf16 %v4628_v31, %v4627_v53  ;;  %5117 = vmatpush.bf16.msra.mxu1 %v7246_v20  ;;  %v7631_v31 = vld [vmem:[#allocation33 + $0x14] sm:$0xf]  ;;  %v7195_v53 = vld [vmem:[#allocation33 + $0x18] sm:$0xf0]  ;;  %v7374_v13 = vor.u32 %v7675_v58, %v7371_v43  ;;  %v7657_v16 = vld [vmem:[%s9278_s27 + $0x64] sm:$0xf] }
 0xb70   : > { %4918 = vmatpush.bf16.msrb.mxu3 %v4859_v33  ;;  %5069 = vmatpush.bf16.msra.mxu0 %v7234_v54  ;;  %v7633_v33 = vld [vmem:[#allocation33 + $0x24] sm:$0xf] }
 0xb73   : > { %5118 = vmatpush.bf16.msra.mxu1 %v7238_v42 }
 0xb74   : > { %4919 = vmatpush.bf16.msrb.mxu3 %v4858_v45  ;;  %5070 = vmatpush.bf16.msra.mxu0 %v7226_v40  ;;  %v7206_v45 = vor.u32 %v7633_v33, %v7203_v44 }
 0xb77   : > { %5119 = vmatpush.bf16.msra.mxu1 %v7230_v55 }
 0xb78   : > { %4920 = vmatpush.bf16.msrb.mxu3 %v4857_v23  ;;  %5071 = vmatpush.bf16.msra.mxu0 %v7218_v9  ;;  %v7194_v23 = vor.u32 %v7632_v27, %v7193_v21  ;;  %v7310_v9 = vor.u32 %v7659_v28, %v7307_v19  ;;  %v7673_v27 = vld [vmem:[%s9278_s27 + $0xe4] sm:$0xf]  ;;  %v7652_v19 = vld [vmem:[%s9278_s27 + $0x34] sm:$0xf0] }
 0xb7b   : > { %4921 = vmatmul.bf16.vlgmr.msrb.gmra.mxu3 %v7621_v51  ;;  %5120 = vmatpush.bf16.msra.mxu1 %v7222_v18  ;;  %v7198_v51 = vor.u32 %v7631_v31, %v7195_v53  ;;  %v7353_v53 = vld [vmem:[%s9278_s27 + $0xd0] sm:$0xf] }
 0xb7c   : > { %5072 = vmatpush.bf16.msra.mxu0 %v7210_v17  ;;  %v7361_v17 = vld [vmem:[%s9278_s27 + $0xe0] sm:$0xf] }
 0xb7f   : > { %5121 = vmatpush.bf16.msra.mxu1 %v7214_v47  ;;  %v7674_v47 = vld [vmem:[%s9278_s27 + $0xe4] sm:$0xf0] }
 0xb80   : > { %5073 = vmatpush.bf16.msra.mxu0 %v7202_v6  ;;  %v7362_v36 = vor.u32 %v7674_v47, %v7361_v17  ;;  %v4978_v17 = vld [vmem:[%s10627_s8] sm:$0x3] }
 0xb81   : > { %v4979_v47 = vld [vmem:[%s9273_s17] sm:$0x3] }
 0xb83   : > { %5122 = vmatpush.bf16.msra.mxu1 %v7206_v45  ;;  %v7363_v45 = vld [vmem:[%s9278_s27 + $0xe8] sm:$0xf0] }
 0xb84   : > { %5074 = vmatpush.bf16.msra.mxu0 %v7194_v23  ;;  %v7366_v31 = vor.u32 %v7673_v27, %v7363_v45  ;;  %v7672_v23 = vld [vmem:[%s9278_s27 + $0xd4] sm:$0xf0]  ;;  %v10239_v27 = vperm.slane %v4978_v17, 0 }
 0xb87   : > { %5123 = vmatpush.bf16.msra.mxu1 %v7198_v51  ;;  %v7655_v51 = vld [vmem:[%s9278_s27 + $0x54] sm:$0xf] }
 0xb8b   : > { %4926 = vmatmul.bf16.gmra.mxu3 %v7622_v37  ;;  %v7628_v37 = vld [vmem:[#allocation31 + $0x38] sm:$0xff] }
 0xb9b   : > { %4931 = vmatmul.bf16.gmra.mxu3 %v7623_v1  ;;  %v7185_v1 = vld [vmem:[#allocation33] sm:$0xf] }
 0xbab   : > { %4936 = vmatmul.bf16.gmra.mxu3 %v7624_v41  ;;  %v7630_v41 = vld [vmem:[#allocation33 + $0x4] sm:$0xf0] }
 0xbbb   : > { %4941 = vmatmul.bf16.gmra.mxu3 %v7625_v46  ;;  %v7629_v46 = vld [vmem:[#allocation33 + $0x4] sm:$0xf] }
 0xbbc   : > { %v7190_v52 = vor.u32 %v7629_v46, %v7187_v8  ;;  %v7355_v46 = vld [vmem:[%s9278_s27 + $0xd8] sm:$0xf0] }
 0xbbe   : > { %5124 = vmatpush.bf16.msra.mxu1 %v7190_v52 }
 0xbc2   : > { %5793 = vmatpush.bf16.msrb.mxu1 %v7374_v13  ;;  %v7667_v13 = vld [vmem:[%s9278_s27 + $0xb4] sm:$0xf] }
 0xbc6   : > { %5794 = vmatpush.bf16.msrb.mxu1 %v7366_v31 }
 0xbcb   : > { %4946 = vmatmul.bf16.gmra.mxu3 %v7626_v24  ;;  %v7186_v24 = vor.u32 %v7630_v41, %v7185_v1  ;;  %v7291_v1 = vld [vmem:[%s9278_s27 + $0x58] sm:$0xf0]  ;;  %v7671_v41 = vld [vmem:[%s9278_s27 + $0xd4] sm:$0xf] }
 0xbcd   : > { %5075 = vmatpush.bf16.msra.mxu0 %v7186_v24  ;;  %v7294_v24 = vor.u32 %v7655_v51, %v7291_v1  ;;  %v10243_v51 = vperm.slane %v4979_v47, 0  ;;  %v10247_v1 = vperm.slane %v4979_v47, 1 }
 0xbd1   : > { %5744 = vmatpush.bf16.msrb.mxu0 %v7310_v9  ;;  %v7337_v9 = vld [vmem:[%s9278_s27 + $0xb0] sm:$0xf] }
 0xbdb   : > { %4951 = vmatmul.bf16.gmra.mxu3 %v7627_v10 }
 0xbeb   : > { %4956 = vmatmul.bf16.gmra.mxu3 %v7628_v37  ;;  %v7354_v37 = vor.u32 %v7672_v23, %v7353_v53  ;;  %v7665_v53 = vld [vmem:[%s9278_s27 + $0xa4] sm:$0xf]  ;;  %v7331_v23 = vld [vmem:[%s9278_s27 + $0xa8] sm:$0xf0] }
 0xbfe   : > { %v4922_v62 = vpop.f32.mrf.mxu3 }
 0xbff   : > { %v4923_v15 = vadd.f32 %v4922_v62, %v9822_v14 }
 0xc06   : > { %v4924_v49 = vpop.f32.mrf.mxu3 }
 0xc07   : > { %v4925_v32 = vadd.f32 %v4924_v49, %v9819_v50 }
 0xc09   : > { %v4980_v25 = vpack.c.bf16 %v4925_v32, %v4923_v15  ;;  %v7305_v15 = vld [vmem:[%s9278_s27 + $0x70] sm:$0xf]  ;;  %v7660_v32 = vld [vmem:[%s9278_s27 + $0x74] sm:$0xf0] }
 0xc0b   : > { %5076 = vmatmul.bf16.vlgmr.msra.gmra.mxu0 %v4980_v25  ;;  %5125 = vmatmul.bf16.vlgmr.msra.gmra.mxu1 %v4980_v25 }
 0xc0e   : > { %v4927_v20 = vpop.f32.mrf.mxu3 }
 0xc0f   : > { %v4928_v3 = vadd.f32 %v4927_v20, %v9814_v48  ;;  %v7306_v20 = vor.u32 %v7660_v32, %v7305_v15 }
 0xc11   : > { %5646 = vmatpush.bf16.msra.mxu2 %v7306_v20  ;;  %v7663_v20 = vld [vmem:[%s9278_s27 + $0x94] sm:$0xf] }
 0xc16   : > { %v4929_v39 = vpop.f32.mrf.mxu3 }
 0xc17   : > { %v4930_v54 = vadd.f32 %v4929_v39, %v9811_v2  ;;  %v7297_v39 = vld [vmem:[%s9278_s27 + $0x60] sm:$0xf] }
 0xc19   : > { %v4981_v42 = vpack.c.bf16 %v4930_v54, %v4928_v3  ;;  %v7658_v3 = vld [vmem:[%s9278_s27 + $0x64] sm:$0xf0] }
 0xc1a   : > { %v7298_v54 = vor.u32 %v7658_v3, %v7297_v39  ;;  %v7323_v39 = vld [vmem:[%s9278_s27 + $0x98] sm:$0xf0] }
 0xc1b   : > { %5081 = vmatmul.bf16.gmra.mxu0 %v4981_v42  ;;  %5130 = vmatmul.bf16.gmra.mxu1 %v4981_v42  ;;  %v7656_v42 = vld [vmem:[%s9278_s27 + $0x54] sm:$0xf0] }
 0xc1c   : > { %5647 = vmatpush.bf16.msra.mxu2 %v7298_v54 }
 0xc1e   : > { %v4932_v61 = vpop.f32.mrf.mxu3 }
 0xc1f   : > { %v4933_v14 = vadd.f32 %v4932_v61, %v9806_v56  ;;  %v7676_v56 = vld [vmem:[%s9278_s27 + $0xf4] sm:$0xf0] }
 0xc26   : > { %v4934_v4 = vpop.f32.mrf.mxu3 }
 0xc27   : > { %v4935_v50 = vadd.f32 %v4934_v4, %v9803_v30  ;;  %v7370_v30 = vor.u32 %v7676_v56, %v7369_v5  ;;  %v7281_v5 = vld [vmem:[%s9278_s27 + $0x40] sm:$0xf]  ;;  %v7654_v56 = vld [vmem:[%s9278_s27 + $0x44] sm:$0xf0] }
 0xc28   : > { %v7282_v28 = vor.u32 %v7654_v56, %v7281_v5 }
 0xc29   : > { %v4982_v12 = vpack.c.bf16 %v4935_v50, %v4933_v14  ;;  %5695 = vmatpush.bf16.msra.mxu3 %v7370_v30  ;;  %v7273_v30 = vld [vmem:[%s9278_s27 + $0x30] sm:$0xf] }
 0xc2b   : > { %5086 = vmatmul.bf16.gmra.mxu0 %v4982_v12  ;;  %5135 = vmatmul.bf16.gmra.mxu1 %v4982_v12  ;;  %v7345_v12 = vld [vmem:[%s9278_s27 + $0xc0] sm:$0xf] }
 0xc2d   : > { %5696 = vmatpush.bf16.msra.mxu3 %v7362_v36  ;;  %v7265_v36 = vld [vmem:[%s9278_s27 + $0x20] sm:$0xf] }
 0xc2e   : > { %v4937_v57 = vpop.f32.mrf.mxu3 }
 0xc2f   : > { %v4938_v2 = vadd.f32 %v4937_v57, %v9798_v38  ;;  %v7670_v57 = vld [vmem:[%s9278_s27 + $0xc4] sm:$0xf0] }
 0xc31   : > { %5697 = vmatpush.bf16.msra.mxu3 %v7354_v37  ;;  %v10245_v37 = vperm.slane %v4978_v17, 1 }
 0xc36   : > { %v4939_v48 = vpop.f32.mrf.mxu3 }
 0xc37   : > { %v4940_v40 = vadd.f32 %v4939_v48, %v9795_v34  ;;  %v7653_v48 = vld [vmem:[%s9278_s27 + $0x44] sm:$0xf] }
 0xc39   : > { %v4983_v55 = vpack.c.bf16 %v4940_v40, %v4938_v2  ;;  %v7346_v2 = vor.u32 %v7670_v57, %v7345_v12  ;;  %v7283_v40 = vld [vmem:[%s9278_s27 + $0x48] sm:$0xf0]  ;;  %v7662_v12 = vld [vmem:[%s9278_s27 + $0x84] sm:$0xf0]  ;;  %v7645_v57 = vld [vmem:[%s9278_s27 + $0x4] sm:$0xf] }
 0xc3b   : > { %5091 = vmatmul.bf16.gmra.mxu0 %v4983_v55  ;;  %5140 = vmatmul.bf16.gmra.mxu1 %v4983_v55  ;;  %v7669_v55 = vld [vmem:[%s9278_s27 + $0xc4] sm:$0xf] }
 0xc3c   : > { %5698 = vmatpush.bf16.msra.mxu3 %v7346_v2 }
 0xc3e   : > { %v4942_v11 = vpop.f32.mrf.mxu3 }
 0xc3f   : > { %v4943_v34 = vadd.f32 %v4942_v11, %v9790_v29  ;;  %v7299_v29 = vld [vmem:[%s9278_s27 + $0x68] sm:$0xf0] }
 0xc40   : > { %v7302_v33 = vor.u32 %v7657_v16, %v7299_v29  ;;  %v7650_v29 = vld [vmem:[%s9278_s27 + $0x24] sm:$0xf0] }
 0xc42   : > { %5745 = vmatpush.bf16.msrb.mxu0 %v7302_v33  ;;  %v7329_v33 = vld [vmem:[%s9278_s27 + $0xa0] sm:$0xf] }
 0xc46   : > { %v4944_v38 = vpop.f32.mrf.mxu3  ;;  %5746 = vmatpush.bf16.msrb.mxu0 %v7294_v24  ;;  %v7648_v24 = vld [vmem:[%s9278_s27 + $0x14] sm:$0xf0] }
 0xc47   : > { %v4945_v10 = vadd.f32 %v4944_v38, %v9787_v26  ;;  %v7274_v38 = vor.u32 %v7652_v19, %v7273_v30 }
 0xc49   : > { %v4984_v18 = vpack.c.bf16 %v4945_v10, %v4943_v34  ;;  %v7668_v34 = vld [vmem:[%s9278_s27 + $0xb4] sm:$0xf0]  ;;  %v7651_v10 = vld [vmem:[%s9278_s27 + $0x34] sm:$0xf] }
 0xc4a   : > { %v7338_v58 = vor.u32 %v7668_v34, %v7337_v9 }
 0xc4b   : > { %5096 = vmatmul.bf16.gmra.mxu0 %v4984_v18  ;;  %5145 = vmatmul.bf16.gmra.mxu1 %v4984_v18  ;;  %v7275_v18 = vld [vmem:[%s9278_s27 + $0x38] sm:$0xf0] }
 0xc4c   : > { %v7278_v43 = vor.u32 %v7651_v10, %v7275_v18  ;;  %5699 = vmatpush.bf16.msra.mxu3 %v7338_v58 }
 0xc4e   : > { %v4947_v59 = vpop.f32.mrf.mxu3 }
 0xc4f   : > { %v4948_v6 = vadd.f32 %v4947_v59, %v9782_v22  ;;  %v7358_v22 = vor.u32 %v7671_v41, %v7355_v46  ;;  %v7339_v59 = vld [vmem:[%s9278_s27 + $0xb8] sm:$0xf0]  ;;  %v7334_v41 = vor.u32 %v7665_v53, %v7331_v23  ;;  %v7257_v46 = vld [vmem:[%s9278_s27 + $0x10] sm:$0xf] }
 0xc50   : > { %v7342_v16 = vor.u32 %v7667_v13, %v7339_v59 }
 0xc51   : > { %5795 = vmatpush.bf16.msrb.mxu1 %v7358_v22  ;;  %v7321_v22 = vld [vmem:[%s9278_s27 + $0x90] sm:$0xf] }
 0xc56   : > { %v4949_v26 = vpop.f32.mrf.mxu3 }
 0xc57   : > { %v4950_v44 = vadd.f32 %v4949_v26, %v9779_v35  ;;  %v7266_v26 = vor.u32 %v7650_v29, %v7265_v36 }
 0xc59   : > { %v4985_v21 = vpack.c.bf16 %v4950_v44, %v4948_v6  ;;  %v7666_v6 = vld [vmem:[%s9278_s27 + $0xa4] sm:$0xf0]  ;;  %v7649_v44 = vld [vmem:[%s9278_s27 + $0x24] sm:$0xf] }
 0xc5a   : > { %v7330_v45 = vor.u32 %v7666_v6, %v7329_v33 }
 0xc5b   : > { %5101 = vmatmul.bf16.gmra.mxu0 %v4985_v21  ;;  %5150 = vmatmul.bf16.gmra.mxu1 %v4985_v21  ;;  %v7267_v21 = vld [vmem:[%s9278_s27 + $0x28] sm:$0xf0] }
 0xc5c   : > { %v7270_v31 = vor.u32 %v7649_v44, %v7267_v21  ;;  %5700 = vmatpush.bf16.msra.mxu3 %v7330_v45 }
 0xc5e   : > { %v4952_v35 = vpop.f32.mrf.mxu3 }
 0xc5f   : > { %v4953_v52 = vadd.f32 %v4952_v35, %v9774_v60  ;;  %v7258_v35 = vor.u32 %v7648_v24, %v7257_v46 }
 0xc66   : > { %v4954_v8 = vpop.f32.mrf.mxu3 }
 0xc67   : > { %v4955_v62 = vadd.f32 %v4954_v8, %v9771_v7  ;;  %v7289_v7 = vld [vmem:[%s9278_s27 + $0x50] sm:$0xf]  ;;  %v7664_v8 = vld [vmem:[%s9278_s27 + $0x94] sm:$0xf0] }
 0xc68   : > { %v7290_v14 = vor.u32 %v7656_v42, %v7289_v7  ;;  %v7322_v32 = vor.u32 %v7664_v8, %v7321_v22  ;;  %v7249_v7 = vld [vmem:[%s9278_s27] sm:$0xf]  ;;  %v7646_v42 = vld [vmem:[%s9278_s27 + $0x4] sm:$0xf0] }
 0xc69   : > { %v4986_v49 = vpack.c.bf16 %v4955_v62, %v4953_v52  ;;  %v7647_v52 = vld [vmem:[%s9278_s27 + $0x14] sm:$0xf]  ;;  %v7259_v62 = vld [vmem:[%s9278_s27 + $0x18] sm:$0xf0] }
 0xc6a   : > { %5648 = vmatpush.bf16.msra.mxu2 %v7290_v14  ;;  %5701 = vmatpush.bf16.msra.mxu3 %v7322_v32 }
 0xc6b   : > { %5106 = vmatmul.bf16.gmra.mxu0 %v4986_v49  ;;  %5155 = vmatmul.bf16.gmra.mxu1 %v4986_v49 }
 0xc6e   : > { %v4957_v25 = vpop.f32.mrf.mxu3  ;;  %5649 = vmatpush.bf16.msra.mxu2 %v7282_v28 }
 0xc6f   : > { %v4958_v61 = vadd.f32 %v4957_v25, %v9763_v63  ;;  %v7347_v63 = vld [vmem:[%s9278_s27 + $0xc8] sm:$0xf0]  ;;  %v7262_v25 = vor.u32 %v7647_v52, %v7259_v62 }
 0xc70   : > { %v7350_v11 = vor.u32 %v7669_v55, %v7347_v63  ;;  %v7661_v55 = vld [vmem:[%s9278_s27 + $0x84] sm:$0xf]  ;;  %v7315_v63 = vld [vmem:[%s9278_s27 + $0x88] sm:$0xf0] }
 0xc71   : > { %v7318_v5 = vor.u32 %v7661_v55, %v7315_v63 }
 0xc72   : > { %5796 = vmatpush.bf16.msrb.mxu1 %v7350_v11  ;;  %5650 = vmatpush.bf16.msra.mxu2 %v7274_v38 }
 0xc76   : > { %v4959_v60 = vpop.f32.mrf.mxu3  ;;  %5797 = vmatpush.bf16.msrb.mxu1 %v7342_v16  ;;  %5651 = vmatpush.bf16.msra.mxu2 %v7266_v26 }
 0xc77   : > { %v4960_v4 = vadd.f32 %v4959_v60, %v9766_v0  ;;  %v7286_v0 = vor.u32 %v7653_v48, %v7283_v40  ;;  %v7326_v60 = vor.u32 %v7663_v20, %v7323_v39  ;;  %v7251_v48 = vld [vmem:[%s9278_s27 + $0x8] sm:$0xf0] }
 0xc78   : > { %v7254_v40 = vor.u32 %v7645_v57, %v7251_v48 }
 0xc79   : > { %v4987_v50 = vpack.c.bf16 %v4960_v4, %v4958_v61  ;;  %5747 = vmatpush.bf16.msrb.mxu0 %v7286_v0  ;;  %v7313_v61 = vld [vmem:[%s9278_s27 + $0x80] sm:$0xf] }
 0xc7a   : > { %5798 = vmatpush.bf16.msrb.mxu1 %v7334_v41  ;;  %5652 = vmatpush.bf16.msra.mxu2 %v7258_v35  ;;  %v7314_v2 = vor.u32 %v7662_v12, %v7313_v61 }
 0xc7b   : > { %5111 = vmatmul.bf16.gmra.mxu0 %v4987_v50  ;;  %5160 = vmatmul.bf16.gmra.mxu1 %v4987_v50  ;;  %v7250_v50 = vor.u32 %v7646_v42, %v7249_v7 }
 0xc7c   : > { %5702 = vmatpush.bf16.msra.mxu3 %v7314_v2 }
 0xc7d   : > { %5748 = vmatpush.bf16.msrb.mxu0 %v7278_v43 }
 0xc7e   : > { %5799 = vmatpush.bf16.msrb.mxu1 %v7326_v60  ;;  %5653 = vmatpush.bf16.msra.mxu2 %v7250_v50 }
 0xc81   : > { %5749 = vmatpush.bf16.msrb.mxu0 %v7270_v31 }
 0xc82   : > { %5800 = vmatpush.bf16.msrb.mxu1 %v7318_v5 }
 0xc85   : > { %5750 = vmatpush.bf16.msrb.mxu0 %v7262_v25 }
 0xc88   : > { %v5077_v49 = vpop.f32.mrf.mxu0  ;;  %v5126_v15 = vpop.f32.mrf.mxu1 }
 0xc89   : > { %v5171_v3 = vmul.f32 %v10239_v27, %v5077_v49  ;;  %v5172_v54 = vmul.f32 %v10245_v37, %v5126_v15  ;;  %5751 = vmatpush.bf16.msrb.mxu0 %v7254_v40 }
 0xc8b   : > { %v10263_v4 = vadd.f32 %v10243_v51, %v5171_v3  ;;  %v10266_v14 = vadd.f32 %v10247_v1, %v5172_v54 }
 0xc8d   : > { %v5240_v0 = vsub.f32 0.0, %v10263_v4  ;;  %v5241_v11 = vsub.f32 0.0, %v10266_v14 }
 0xc8f   : > { %v5272_v56 = vmul.f32 1.442695, %v5240_v0  ;;  %v5274_v28 = vmul.f32 1.442695, %v5241_v11 }
 0xc90   : > { %v5079_v30 = vpop.f32.mrf.mxu0  ;;  %v5128_v19 = vpop.f32.mrf.mxu1 }
 0xc91   : > { %v5173_v9 = vmul.f32 %v10239_v27, %v5079_v30  ;;  %v5174_v38 = vmul.f32 %v10245_v37, %v5128_v19  ;;  %8192 = vpow2.f32 %v5272_v56 }
 0xc92   : > { %8194 = vpow2.f32 %v5274_v28 }
 0xc93   : > { %v5210_v34 = vadd.f32 %v10243_v51, %v5173_v9  ;;  %v5211_v10 = vadd.f32 %v10247_v1, %v5174_v38 }
 0xc95   : > { %v5242_v18 = vsub.f32 0.0, %v5210_v34  ;;  %v5243_v58 = vsub.f32 0.0, %v5211_v10 }
 0xc97   : > { %v5276_v43 = vmul.f32 1.442695, %v5242_v18  ;;  %v8193_v13 = vpop.eup %8192  ;;  %v5278_v59 = vmul.f32 1.442695, %v5243_v58 }
 0xc98   : > { %v5082_v17 = vpop.f32.mrf.mxu0  ;;  %v5131_v47 = vpop.f32.mrf.mxu1  ;;  %v5336_v33 = vadd.f32 1.0, %v8193_v13 }
 0xc99   : > { %v8195_v16 = vpop.eup %8194  ;;  %8196 = vpow2.f32 %v5276_v43  ;;  %v5175_v36 = vmul.f32 %v10239_v27, %v5082_v17  ;;  %v5176_v29 = vmul.f32 %v10245_v37, %v5131_v47 }
 0xc9a   : > { %v5337_v44 = vadd.f32 1.0, %v8195_v16  ;;  %8198 = vpow2.f32 %v5278_v59 }
 0xc9b   : > { %v10282_v26 = vadd.f32 %v10243_v51, %v5175_v36  ;;  %v10285_v6 = vadd.f32 %v10247_v1, %v5176_v29  ;;  %8200 = vrcp.f32 %v5336_v33 }
 0xc9c   : > { %8202 = vrcp.f32 %v5337_v44 }
 0xc9d   : > { %v5244_v21 = vsub.f32 0.0, %v10282_v26  ;;  %v5245_v45 = vsub.f32 0.0, %v10285_v6 }
 0xc9f   : > { %v8197_v31 = vpop.eup %8196  ;;  %v5280_v53 = vmul.f32 1.442695, %v5244_v21  ;;  %v5282_v23 = vmul.f32 1.442695, %v5245_v45 }
 0xca0   : > { %v5338_v41 = vadd.f32 1.0, %v8197_v31  ;;  %v5084_v46 = vpop.f32.mrf.mxu0  ;;  %v5133_v24 = vpop.f32.mrf.mxu1 }
 0xca1   : > { %8204 = vpow2.f32 %v5280_v53  ;;  %v5177_v22 = vmul.f32 %v10239_v27, %v5084_v46  ;;  %v5178_v35 = vmul.f32 %v10245_v37, %v5133_v24  ;;  %v8199_v8 = vpop.eup %8198 }
 0xca2   : > { %8206 = vrcp.f32 %v5338_v41  ;;  %v5339_v52 = vadd.f32 1.0, %v8199_v8  ;;  %v8201_v15 = vpop.eup %8200 }
 0xca3   : > { %8208 = vpow2.f32 %v5282_v23  ;;  %v10292_v62 = vadd.f32 %v10243_v51, %v5177_v22  ;;  %v10295_v49 = vadd.f32 %v10247_v1, %v5178_v35  ;;  %v8203_v20 = vpop.eup %8202  ;;  %v5400_v7 = vmul.f32 %v8201_v15, %v10263_v4 }
 0xca4   : > { %8210 = vrcp.f32 %v5339_v52  ;;  %v5401_v4 = vmul.f32 %v8203_v20, %v10266_v14 }
 0xca5   : > { %v5246_v32 = vsub.f32 0.0, %v10292_v62  ;;  %v5247_v25 = vsub.f32 0.0, %v10295_v49 }
 0xca7   : > { %v8205_v39 = vpop.eup %8204  ;;  %v5284_v3 = vmul.f32 1.442695, %v5246_v32  ;;  %v5286_v54 = vmul.f32 1.442695, %v5247_v25 }
 0xca8   : > { %v8207_v60 = vpop.eup %8206  ;;  %v5087_v42 = vpop.f32.mrf.mxu0  ;;  %v5340_v2 = vadd.f32 1.0, %v8205_v39 }
 0xca9   : > { %v5136_v61 = vpop.f32.mrf.mxu1  ;;  %v8209_v50 = vpop.eup %8208  ;;  %v5402_v12 = vmul.f32 %v8207_v60, %v5210_v34  ;;  %8212 = vpow2.f32 %v5284_v3  ;;  %v5179_v57 = vmul.f32 %v10239_v27, %v5087_v42 }
 0xcaa   : > { %v5180_v48 = vmul.f32 %v10245_v37, %v5136_v61  ;;  %v8211_v40 = vpop.eup %8210  ;;  %8214 = vpow2.f32 %v5286_v54  ;;  %v5341_v5 = vadd.f32 1.0, %v8209_v50 }
 0xcab   : > { %v5465_v55 = vpack.c.bf16 %v5402_v12, %v5400_v7  ;;  %v10303_v63 = vadd.f32 %v10243_v51, %v5179_v57  ;;  %v5403_v11 = vmul.f32 %v8211_v40, %v5211_v10  ;;  %8216 = vrcp.f32 %v5340_v2 }
 0xcac   : > { %v10306_v0 = vadd.f32 %v10247_v1, %v5180_v48  ;;  %8218 = vrcp.f32 %v5341_v5 }
 0xcad   : > { %v5248_v56 = vsub.f32 0.0, %v10303_v63  ;;  %5654 = vmatmul.bf16.vlgmr.msra.gmra.mxu2 %v5465_v55  ;;  %5752 = vmatmul.bf16.vlgmr.msrb.gmra.mxu0 %v5465_v55  ;;  %v5466_v30 = vpack.c.bf16 %v5403_v11, %v5401_v4 }
 0xcae   : > { %v5249_v28 = vsub.f32 0.0, %v10306_v0 }
 0xcaf   : > { %v8213_v19 = vpop.eup %8212  ;;  %v5288_v9 = vmul.f32 1.442695, %v5248_v56  ;;  %5703 = vmatmul.bf16.vlgmr.msra.gmra.mxu3 %v5466_v30  ;;  %5801 = vmatmul.bf16.vlgmr.msrb.gmra.mxu1 %v5466_v30 }
 0xcb0   : > { %v5290_v38 = vmul.f32 1.442695, %v5249_v28  ;;  %v5342_v34 = vadd.f32 1.0, %v8213_v19  ;;  %v5089_v18 = vpop.f32.mrf.mxu0  ;;  %v8215_v14 = vpop.eup %8214 }
 0xcb1   : > { %v5138_v58 = vpop.f32.mrf.mxu1  ;;  %8220 = vpow2.f32 %v5288_v9  ;;  %v5181_v10 = vmul.f32 %v10239_v27, %v5089_v18  ;;  %v5343_v13 = vadd.f32 1.0, %v8215_v14  ;;  %v8217_v47 = vpop.eup %8216 }
 0xcb2   : > { %v5182_v43 = vmul.f32 %v10245_v37, %v5138_v58  ;;  %8222 = vrcp.f32 %v5342_v34  ;;  %v8219_v29 = vpop.eup %8218  ;;  %v5404_v35 = vmul.f32 %v8217_v47, %v10282_v26 }
 0xcb3   : > { %8224 = vpow2.f32 %v5290_v38  ;;  %v10314_v59 = vadd.f32 %v10243_v51, %v5181_v10  ;;  %v5405_v8 = vmul.f32 %v8219_v29, %v10285_v6 }
 0xcb4   : > { %v10317_v17 = vadd.f32 %v10247_v1, %v5182_v43  ;;  %8226 = vrcp.f32 %v5343_v13 }
 0xcb5   : > { %v5250_v16 = vsub.f32 0.0, %v10314_v59 }
 0xcb6   : > { %v5251_v36 = vsub.f32 0.0, %v10317_v17 }
 0xcb7   : > { %v8221_v33 = vpop.eup %8220  ;;  %v5292_v44 = vmul.f32 1.442695, %v5250_v16 }
 0xcb8   : > { %v5294_v21 = vmul.f32 1.442695, %v5251_v36  ;;  %v8223_v45 = vpop.eup %8222  ;;  %v5092_v31 = vpop.f32.mrf.mxu0  ;;  %v5344_v52 = vadd.f32 1.0, %v8221_v33 }
 0xcb9   : > { %v5141_v53 = vpop.f32.mrf.mxu1  ;;  %v8225_v23 = vpop.eup %8224  ;;  %v5406_v41 = vmul.f32 %v8223_v45, %v10292_v62  ;;  %8228 = vpow2.f32 %v5292_v44  ;;  %v5183_v46 = vmul.f32 %v10239_v27, %v5092_v31 }
 0xcba   : > { %v5184_v24 = vmul.f32 %v10245_v37, %v5141_v53  ;;  %v8227_v22 = vpop.eup %8226  ;;  %8230 = vpow2.f32 %v5294_v21  ;;  %v5345_v62 = vadd.f32 1.0, %v8225_v23 }
 0xcbb   : > { %v5407_v15 = vmul.f32 %v8227_v22, %v10295_v49  ;;  %v10328_v32 = vadd.f32 %v10243_v51, %v5183_v46  ;;  %v5467_v20 = vpack.c.bf16 %v5406_v41, %v5404_v35  ;;  %8232 = vrcp.f32 %v5344_v52 }
 0xcbc   : > { %v10331_v25 = vadd.f32 %v10247_v1, %v5184_v24  ;;  %8234 = vrcp.f32 %v5345_v62 }
 0xcbd   : > { %v5252_v39 = vsub.f32 0.0, %v10328_v32  ;;  %v5468_v54 = vpack.c.bf16 %v5407_v15, %v5405_v8  ;;  %5659 = vmatmul.bf16.gmra.mxu2 %v5467_v20  ;;  %5757 = vmatmul.bf16.gmra.mxu0 %v5467_v20 }
 0xcbe   : > { %v5253_v3 = vsub.f32 0.0, %v10331_v25 }
 0xcbf   : > { %v8229_v26 = vpop.eup %8228  ;;  %v5296_v6 = vmul.f32 1.442695, %v5252_v39  ;;  %5708 = vmatmul.bf16.gmra.mxu3 %v5468_v54  ;;  %5806 = vmatmul.bf16.gmra.mxu1 %v5468_v54 }
 0xcc0   : > { %v5298_v49 = vmul.f32 1.442695, %v5253_v3  ;;  %v5346_v60 = vadd.f32 1.0, %v8229_v26  ;;  %v5094_v7 = vpop.f32.mrf.mxu0  ;;  %v8231_v61 = vpop.eup %8230 }
 0xcc1   : > { %v5143_v42 = vpop.f32.mrf.mxu1  ;;  %8236 = vpow2.f32 %v5296_v6  ;;  %v5185_v50 = vmul.f32 %v10239_v27, %v5094_v7  ;;  %v5347_v57 = vadd.f32 1.0, %v8231_v61  ;;  %v8233_v40 = vpop.eup %8232 }
 0xcc2   : > { %v5186_v12 = vmul.f32 %v10245_v37, %v5143_v42  ;;  %8238 = vrcp.f32 %v5346_v60  ;;  %v8235_v11 = vpop.eup %8234  ;;  %v5408_v10 = vmul.f32 %v8233_v40, %v10303_v63 }
 0xcc3   : > { %8240 = vpow2.f32 %v5298_v49  ;;  %v10338_v48 = vadd.f32 %v10243_v51, %v5185_v50  ;;  %v5409_v43 = vmul.f32 %v8235_v11, %v10306_v0 }
 0xcc4   : > { %v10341_v2 = vadd.f32 %v10247_v1, %v5186_v12  ;;  %8242 = vrcp.f32 %v5347_v57 }
 0xcc5   : > { %v5254_v55 = vsub.f32 0.0, %v10338_v48 }
 0xcc6   : > { %v5255_v4 = vsub.f32 0.0, %v10341_v2 }
 0xcc7   : > { %v8237_v5 = vpop.eup %8236  ;;  %v5300_v56 = vmul.f32 1.442695, %v5254_v55 }
 0xcc8   : > { %v5302_v28 = vmul.f32 1.442695, %v5255_v4  ;;  %v8239_v30 = vpop.eup %8238  ;;  %v5097_v19 = vpop.f32.mrf.mxu0  ;;  %v5348_v13 = vadd.f32 1.0, %v8237_v5 }
 0xcc9   : > { %v5146_v9 = vpop.f32.mrf.mxu1  ;;  %v8241_v38 = vpop.eup %8240  ;;  %v5410_v34 = vmul.f32 %v8239_v30, %v10314_v59  ;;  %8244 = vpow2.f32 %v5300_v56  ;;  %v5187_v18 = vmul.f32 %v10239_v27, %v5097_v19 }
 0xcca   : > { %v5188_v58 = vmul.f32 %v10245_v37, %v5146_v9  ;;  %v8243_v14 = vpop.eup %8242  ;;  %8246 = vpow2.f32 %v5302_v28  ;;  %v5349_v59 = vadd.f32 1.0, %v8241_v38 }
 0xccb   : > { %v5411_v47 = vmul.f32 %v8243_v14, %v10317_v17  ;;  %v10352_v16 = vadd.f32 %v10243_v51, %v5187_v18  ;;  %v5469_v29 = vpack.c.bf16 %v5410_v34, %v5408_v10  ;;  %8248 = vrcp.f32 %v5348_v13 }
 0xccc   : > { %v10355_v36 = vadd.f32 %v10247_v1, %v5188_v58  ;;  %8250 = vrcp.f32 %v5349_v59 }
 0xccd   : > { %v5256_v33 = vsub.f32 0.0, %v10352_v16  ;;  %v5470_v21 = vpack.c.bf16 %v5411_v47, %v5409_v43  ;;  %5664 = vmatmul.bf16.gmra.mxu2 %v5469_v29  ;;  %5762 = vmatmul.bf16.gmra.mxu0 %v5469_v29 }
 0xcce   : > { %v5257_v44 = vsub.f32 0.0, %v10355_v36 }
 0xccf   : > { %v8245_v63 = vpop.eup %8244  ;;  %v5304_v0 = vmul.f32 1.442695, %v5256_v33  ;;  %5713 = vmatmul.bf16.gmra.mxu3 %v5470_v21  ;;  %5811 = vmatmul.bf16.gmra.mxu1 %v5470_v21 }
 0xcd0   : > { %v5306_v17 = vmul.f32 1.442695, %v5257_v44  ;;  %v5350_v45 = vadd.f32 1.0, %v8245_v63  ;;  %v5099_v31 = vpop.f32.mrf.mxu0  ;;  %v8247_v23 = vpop.eup %8246 }
 0xcd1   : > { %v5148_v53 = vpop.f32.mrf.mxu1  ;;  %8252 = vpow2.f32 %v5304_v0  ;;  %v5189_v41 = vmul.f32 %v10239_v27, %v5099_v31  ;;  %v5351_v24 = vadd.f32 1.0, %v8247_v23  ;;  %v8249_v8 = vpop.eup %8248 }
 0xcd2   : > { %v5190_v46 = vmul.f32 %v10245_v37, %v5148_v53  ;;  %8254 = vrcp.f32 %v5350_v45  ;;  %v8251_v62 = vpop.eup %8250  ;;  %v5412_v50 = vmul.f32 %v8249_v8, %v10328_v32 }
 0xcd3   : > { %8256 = vpow2.f32 %v5306_v17  ;;  %v10362_v22 = vadd.f32 %v10243_v51, %v5189_v41  ;;  %v5413_v12 = vmul.f32 %v8251_v62, %v10331_v25 }
 0xcd4   : > { %v10365_v35 = vadd.f32 %v10247_v1, %v5190_v46  ;;  %8258 = vrcp.f32 %v5351_v24 }
 0xcd5   : > { %v5258_v52 = vsub.f32 0.0, %v10362_v22 }
 0xcd6   : > { %v5259_v15 = vsub.f32 0.0, %v10365_v35 }
 0xcd7   : > { %v8253_v20 = vpop.eup %8252  ;;  %v5308_v39 = vmul.f32 1.442695, %v5258_v52 }
 0xcd8   : > { %v5310_v3 = vmul.f32 1.442695, %v5259_v15  ;;  %v8255_v54 = vpop.eup %8254  ;;  %v5102_v26 = vpop.f32.mrf.mxu0  ;;  %v5352_v57 = vadd.f32 1.0, %v8253_v20 }
 0xcd9   : > { %v5151_v6 = vpop.f32.mrf.mxu1  ;;  %v8257_v49 = vpop.eup %8256  ;;  %v5414_v60 = vmul.f32 %v8255_v54, %v10338_v48  ;;  %8260 = vpow2.f32 %v5308_v39  ;;  %v5191_v7 = vmul.f32 %v10239_v27, %v5102_v26 }
 0xcda   : > { %v5192_v42 = vmul.f32 %v10245_v37, %v5151_v6  ;;  %v8259_v61 = vpop.eup %8258  ;;  %8262 = vpow2.f32 %v5310_v3  ;;  %v5353_v48 = vadd.f32 1.0, %v8257_v49 }
 0xcdb   : > { %v5415_v40 = vmul.f32 %v8259_v61, %v10341_v2  ;;  %v10376_v55 = vadd.f32 %v10243_v51, %v5191_v7  ;;  %v5471_v11 = vpack.c.bf16 %v5414_v60, %v5412_v50  ;;  %8264 = vrcp.f32 %v5352_v57 }
 0xcdc   : > { %v10379_v4 = vadd.f32 %v10247_v1, %v5192_v42  ;;  %8266 = vrcp.f32 %v5353_v48 }
 0xcdd   : > { %v5260_v5 = vsub.f32 0.0, %v10376_v55  ;;  %v5472_v28 = vpack.c.bf16 %v5415_v40, %v5413_v12  ;;  %5669 = vmatmul.bf16.gmra.mxu2 %v5471_v11  ;;  %5767 = vmatmul.bf16.gmra.mxu0 %v5471_v11 }
 0xcde   : > { %v5261_v56 = vsub.f32 0.0, %v10379_v4 }
 0xcdf   : > { %v8261_v32 = vpop.eup %8260  ;;  %v5312_v25 = vmul.f32 1.442695, %v5260_v5  ;;  %5718 = vmatmul.bf16.gmra.mxu3 %v5472_v28  ;;  %5816 = vmatmul.bf16.gmra.mxu1 %v5472_v28 }
 0xce0   : > { %v5314_v2 = vmul.f32 1.442695, %v5261_v56  ;;  %v5354_v30 = vadd.f32 1.0, %v8261_v32  ;;  %v5104_v19 = vpop.f32.mrf.mxu0  ;;  %v8263_v38 = vpop.eup %8262 }
 0xce1   : > { %v5153_v9 = vpop.f32.mrf.mxu1  ;;  %8268 = vpow2.f32 %v5312_v25  ;;  %v5193_v34 = vmul.f32 %v10239_v27, %v5104_v19  ;;  %v5355_v58 = vadd.f32 1.0, %v8263_v38  ;;  %v8265_v43 = vpop.eup %8264 }
 0xce2   : > { %v5194_v18 = vmul.f32 %v10245_v37, %v5153_v9  ;;  %8270 = vrcp.f32 %v5354_v30  ;;  %v8267_v59 = vpop.eup %8266  ;;  %v5416_v41 = vmul.f32 %v8265_v43, %v10352_v16 }
 0xce3   : > { %8272 = vpow2.f32 %v5314_v2  ;;  %v10386_v14 = vadd.f32 %v10243_v51, %v5193_v34  ;;  %v5417_v46 = vmul.f32 %v8267_v59, %v10355_v36 }
 0xce4   : > { %v10389_v10 = vadd.f32 %v10247_v1, %v5194_v18  ;;  %8274 = vrcp.f32 %v5355_v58 }
 0xce5   : > { %v5262_v13 = vsub.f32 0.0, %v10386_v14 }
 0xce6   : > { %v5263_v47 = vsub.f32 0.0, %v10389_v10 }
 0xce7   : > { %v8269_v29 = vpop.eup %8268  ;;  %v5316_v33 = vmul.f32 1.442695, %v5262_v13 }
 0xce8   : > { %v5318_v44 = vmul.f32 1.442695, %v5263_v47  ;;  %v8271_v21 = vpop.eup %8270  ;;  %v5107_v63 = vpop.f32.mrf.mxu0  ;;  %v5356_v24 = vadd.f32 1.0, %v8269_v29 }
 0xce9   : > { %v5156_v0 = vpop.f32.mrf.mxu1  ;;  %v8273_v17 = vpop.eup %8272  ;;  %v5418_v45 = vmul.f32 %v8271_v21, %v10362_v22  ;;  %8276 = vpow2.f32 %v5316_v33  ;;  %v5195_v31 = vmul.f32 %v10239_v27, %v5107_v63 }
 0xcea   : > { %v5196_v53 = vmul.f32 %v10245_v37, %v5156_v0  ;;  %v8275_v23 = vpop.eup %8274  ;;  %8278 = vpow2.f32 %v5318_v44  ;;  %v5357_v22 = vadd.f32 1.0, %v8273_v17 }
 0xceb   : > { %v5419_v8 = vmul.f32 %v8275_v23, %v10365_v35  ;;  %v10400_v52 = vadd.f32 %v10243_v51, %v5195_v31  ;;  %v5473_v62 = vpack.c.bf16 %v5418_v45, %v5416_v41  ;;  %8280 = vrcp.f32 %v5356_v24 }
 0xcec   : > { %v10403_v15 = vadd.f32 %v10247_v1, %v5196_v53  ;;  %8282 = vrcp.f32 %v5357_v22 }
 0xced   : > { %v5264_v20 = vsub.f32 0.0, %v10400_v52  ;;  %v5474_v3 = vpack.c.bf16 %v5419_v8, %v5417_v46  ;;  %5674 = vmatmul.bf16.gmra.mxu2 %v5473_v62  ;;  %5772 = vmatmul.bf16.gmra.mxu0 %v5473_v62 }
 0xcee   : > { %v5265_v39 = vsub.f32 0.0, %v10403_v15 }
 0xcef   : > { %v8277_v16 = vpop.eup %8276  ;;  %v5320_v36 = vmul.f32 1.442695, %v5264_v20  ;;  %5723 = vmatmul.bf16.gmra.mxu3 %v5474_v3  ;;  %5821 = vmatmul.bf16.gmra.mxu1 %v5474_v3 }
 0xcf0   : > { %v5322_v35 = vmul.f32 1.442695, %v5265_v39  ;;  %v5358_v54 = vadd.f32 1.0, %v8277_v16  ;;  %v5109_v26 = vpop.f32.mrf.mxu0  ;;  %v8279_v49 = vpop.eup %8278 }
 0xcf1   : > { %v5158_v6 = vpop.f32.mrf.mxu1  ;;  %8284 = vpow2.f32 %v5320_v36  ;;  %v5197_v60 = vmul.f32 %v10239_v27, %v5109_v26  ;;  %v5359_v42 = vadd.f32 1.0, %v8279_v49  ;;  %v8281_v12 = vpop.eup %8280 }
 0xcf2   : > { %v5198_v7 = vmul.f32 %v10245_v37, %v5158_v6  ;;  %8286 = vrcp.f32 %v5358_v54  ;;  %v8283_v48 = vpop.eup %8282  ;;  %v5420_v34 = vmul.f32 %v8281_v12, %v10376_v55 }
 0xcf3   : > { %8288 = vpow2.f32 %v5322_v35  ;;  %v10410_v61 = vadd.f32 %v10243_v51, %v5197_v60  ;;  %v5421_v18 = vmul.f32 %v8283_v48, %v10379_v4 }
 0xcf4   : > { %v10413_v50 = vadd.f32 %v10247_v1, %v5198_v7  ;;  %8290 = vrcp.f32 %v5359_v42 }
 0xcf5   : > { %v5266_v57 = vsub.f32 0.0, %v10410_v61 }
 0xcf6   : > { %v5267_v40 = vsub.f32 0.0, %v10413_v50 }
 0xcf7   : > { %v8285_v11 = vpop.eup %8284  ;;  %v5324_v5 = vmul.f32 1.442695, %v5266_v57 }
 0xcf8   : > { %v5326_v56 = vmul.f32 1.442695, %v5267_v40  ;;  %v8287_v28 = vpop.eup %8286  ;;  %v5112_v32 = vpop.f32.mrf.mxu0  ;;  %v5360_v58 = vadd.f32 1.0, %v8285_v11 }
 0xcf9   : > { %v5161_v25 = vpop.f32.mrf.mxu1  ;;  %v8289_v2 = vpop.eup %8288  ;;  %v5422_v30 = vmul.f32 %v8287_v28, %v10386_v14  ;;  %8292 = vpow2.f32 %v5324_v5  ;;  %v5199_v19 = vmul.f32 %v10239_v27, %v5112_v32 }
 0xcfa   : > { %v5200_v9 = vmul.f32 %v10245_v37, %v5161_v25  ;;  %v8291_v38 = vpop.eup %8290  ;;  %8294 = vpow2.f32 %v5326_v56  ;;  %v5361_v14 = vadd.f32 1.0, %v8289_v2  ;;  %v5464_v56 = vld [vmem:[%s9283_s5] sm:$0x3] }
 0xcfb   : > { %v5423_v43 = vmul.f32 %v8291_v38, %v10389_v10  ;;  %v10424_v13 = vadd.f32 %v10243_v51, %v5199_v19  ;;  %v5475_v59 = vpack.c.bf16 %v5422_v30, %v5420_v34  ;;  %8296 = vrcp.f32 %v5360_v58 }
 0xcfc   : > { %v10427_v47 = vadd.f32 %v10247_v1, %v5200_v9  ;;  %8298 = vrcp.f32 %v5361_v14  ;;  %v10442_v28 = vperm.slane %v5464_v56, 1  ;;  %v10446_v30 = vperm.slane %v5464_v56, 0 }
 0xcfd   : > { %v5268_v29 = vsub.f32 0.0, %v10424_v13  ;;  %v5476_v44 = vpack.c.bf16 %v5423_v43, %v5421_v18  ;;  %5679 = vmatmul.bf16.gmra.mxu2 %v5475_v59  ;;  %5777 = vmatmul.bf16.gmra.mxu0 %v5475_v59 }
 0xcfe   : > { %v5269_v33 = vsub.f32 0.0, %v10427_v47 }
 0xcff   : > { %v8293_v55 = vpop.eup %8292  ;;  %v5328_v4 = vmul.f32 1.442695, %v5268_v29  ;;  %5728 = vmatmul.bf16.gmra.mxu3 %v5476_v44  ;;  %5826 = vmatmul.bf16.gmra.mxu1 %v5476_v44 }
 0xd00   : > { %v5330_v10 = vmul.f32 1.442695, %v5269_v33  ;;  %v5362_v21 = vadd.f32 1.0, %v8293_v55  ;;  %v5114_v63 = vpop.f32.mrf.mxu0  ;;  %v8295_v17 = vpop.eup %8294 }
 0xd01   : > { %v5163_v0 = vpop.f32.mrf.mxu1  ;;  %8300 = vpow2.f32 %v5328_v4  ;;  %v5201_v45 = vmul.f32 %v10239_v27, %v5114_v63  ;;  %v5363_v53 = vadd.f32 1.0, %v8295_v17  ;;  %v8297_v46 = vpop.eup %8296 }
 0xd02   : > { %v5202_v31 = vmul.f32 %v10245_v37, %v5163_v0  ;;  %8302 = vrcp.f32 %v5362_v21  ;;  %v8299_v22 = vpop.eup %8298  ;;  %v5424_v27 = vmul.f32 %v8297_v46, %v10400_v52 }
 0xd03   : > { %8304 = vpow2.f32 %v5330_v10  ;;  %v5238_v23 = vadd.f32 %v10243_v51, %v5201_v45  ;;  %v5425_v51 = vmul.f32 %v8299_v22, %v10403_v15 }
 0xd04   : > { %v5239_v41 = vadd.f32 %v10247_v1, %v5202_v31  ;;  %8306 = vrcp.f32 %v5363_v53 }
 0xd05   : > { %v5270_v24 = vsub.f32 0.0, %v5238_v23 }
 0xd06   : > { %v5271_v8 = vsub.f32 0.0, %v5239_v41 }
 0xd07   : > { %v8301_v62 = vpop.eup %8300  ;;  %v5332_v20 = vmul.f32 1.442695, %v5270_v24 }
 0xd08   : > { %v5334_v39 = vmul.f32 1.442695, %v5271_v8  ;;  %v8303_v3 = vpop.eup %8302  ;;  %v5364_v54 = vadd.f32 1.0, %v8301_v62 }
 0xd09   : > { %v8305_v16 = vpop.eup %8304  ;;  %v5426_v37 = vmul.f32 %v8303_v3, %v10410_v61  ;;  %8308 = vpow2.f32 %v5332_v20 }
 0xd0a   : > { %v8307_v36 = vpop.eup %8306  ;;  %8310 = vpow2.f32 %v5334_v39  ;;  %v5365_v26 = vadd.f32 1.0, %v8305_v16 }
 0xd0b   : > { %v5427_v1 = vmul.f32 %v8307_v36, %v10413_v50  ;;  %v5477_v35 = vpack.c.bf16 %v5426_v37, %v5424_v27  ;;  %8312 = vrcp.f32 %v5364_v54 }
 0xd0c   : > { %8314 = vrcp.f32 %v5365_v26 }
 0xd0d   : > { %v5478_v6 = vpack.c.bf16 %v5427_v1, %v5425_v51  ;;  %5684 = vmatmul.bf16.gmra.mxu2 %v5477_v35  ;;  %5782 = vmatmul.bf16.gmra.mxu0 %v5477_v35 }
 0xd0f   : > { %v8309_v49 = vpop.eup %8308  ;;  %5733 = vmatmul.bf16.gmra.mxu3 %v5478_v6  ;;  %5831 = vmatmul.bf16.gmra.mxu1 %v5478_v6 }
 0xd10   : > { %v5366_v60 = vadd.f32 1.0, %v8309_v49  ;;  %v8311_v52 = vpop.eup %8310 }
 0xd11   : > { %v5367_v7 = vadd.f32 1.0, %v8311_v52  ;;  %v8313_v15 = vpop.eup %8312 }
 0xd12   : > { %8316 = vrcp.f32 %v5366_v60  ;;  %v8315_v42 = vpop.eup %8314  ;;  %v5428_v50 = vmul.f32 %v8313_v15, %v10424_v13 }
 0xd13   : > { %8318 = vrcp.f32 %v5367_v7  ;;  %v5429_v40 = vmul.f32 %v8315_v42, %v10427_v47 }
 0xd18   : > { %v8317_v61 = vpop.eup %8316 }
 0xd19   : > { %v5430_v12 = vmul.f32 %v8317_v61, %v5238_v23  ;;  %v8319_v57 = vpop.eup %8318 }
 0xd1a   : > { %v5431_v48 = vmul.f32 %v8319_v57, %v5239_v41 }
 0xd1b   : > { %v5479_v11 = vpack.c.bf16 %v5430_v12, %v5428_v50 }
 0xd1c   : > { %v5480_v5 = vpack.c.bf16 %v5431_v48, %v5429_v40 }
 0xd1d   : > { %5689 = vmatmul.bf16.gmra.mxu2 %v5479_v11  ;;  %5787 = vmatmul.bf16.gmra.mxu0 %v5479_v11 }
 0xd1f   : > { %5738 = vmatmul.bf16.gmra.mxu3 %v5480_v5  ;;  %5836 = vmatmul.bf16.gmra.mxu1 %v5480_v5 }
 0xd2a   : > { %v5753_v32 = vpop.f32.mrf.mxu0 }
 0xd2b   : > { %v5754_v25 = vadd.f32 %v5753_v32, %v10442_v28 }
 0xd2c   : > { %v5802_v2 = vpop.f32.mrf.mxu1 }
 0xd2d   : > { %v5803_v19 = vadd.f32 %v5802_v2, %v5754_v25 }
 0xd2f   : > { %v7376_v9 = vclamps-f32 %v5803_v19, 1.0 }
 0xd30   : > { %v5655_v38 = vpop.f32.mrf.mxu2 }
 0xd31   : > { %v5656_v34 = vadd.f32 %v5655_v38, %v10446_v30  ;;  %5907 = vst [vmem:[%s10449_s18 + $0x8] sm:$0xff] %v7376_v9 }
 0xd32   : > { %v5755_v18 = vpop.f32.mrf.mxu0  ;;  %v5704_v58 = vpop.f32.mrf.mxu3 }
 0xd33   : > { %v5756_v43 = vadd.f32 %v5755_v18, %v10442_v28  ;;  %v5705_v13 = vadd.f32 %v5704_v58, %v5656_v34 }
 0xd34   : > { %v5804_v47 = vpop.f32.mrf.mxu1 }
 0xd35   : > { %v7375_v14 = vclamps-f32 %v5705_v13, 1.0  ;;  %v5805_v59 = vadd.f32 %v5804_v47, %v5756_v43 }
 0xd37   : > { %5906 = vst [vmem:[%s10449_s18] sm:$0xff] %v7375_v14  ;;  %v7378_v29 = vclamps-f32 %v5805_v59, 1.0 }
 0xd38   : > { %v5657_v33 = vpop.f32.mrf.mxu2 }
 0xd39   : > { %v5658_v44 = vadd.f32 %v5657_v33, %v10446_v30  ;;  %5909 = vst [vmem:[%s10449_s18 + $0x18] sm:$0xff] %v7378_v29 }
 0xd3a   : > { %v5706_v55 = vpop.f32.mrf.mxu3  ;;  %v5758_v4 = vpop.f32.mrf.mxu0 }
 0xd3b   : > { %v5707_v10 = vadd.f32 %v5706_v55, %v5658_v44  ;;  %v5759_v21 = vadd.f32 %v5758_v4, %v10442_v28 }
 0xd3c   : > { %v5807_v63 = vpop.f32.mrf.mxu1 }
 0xd3d   : > { %v7377_v0 = vclamps-f32 %v5707_v10, 1.0  ;;  %v5808_v17 = vadd.f32 %v5807_v63, %v5759_v21 }
 0xd3f   : > { %5908 = vst [vmem:[%s10449_s18 + $0x10] sm:$0xff] %v7377_v0  ;;  %v7380_v45 = vclamps-f32 %v5808_v17, 1.0 }
 0xd40   : > { %v5660_v31 = vpop.f32.mrf.mxu2 }
 0xd41   : > { %5911 = vst [vmem:[%s10449_s18 + $0x28] sm:$0xff] %v7380_v45  ;;  %v5661_v53 = vadd.f32 %v5660_v31, %v10446_v30 }
 0xd42   : > { %v5709_v23 = vpop.f32.mrf.mxu3  ;;  %v5760_v41 = vpop.f32.mrf.mxu0 }
 0xd43   : > { %v5710_v46 = vadd.f32 %v5709_v23, %v5661_v53  ;;  %v5761_v24 = vadd.f32 %v5760_v41, %v10442_v28 }
 0xd44   : > { %v5809_v8 = vpop.f32.mrf.mxu1 }
 0xd45   : > { %v7379_v22 = vclamps-f32 %v5710_v46, 1.0  ;;  %v5810_v62 = vadd.f32 %v5809_v8, %v5761_v24 }
 0xd47   : > { %5910 = vst [vmem:[%s10449_s18 + $0x20] sm:$0xff] %v7379_v22  ;;  %v7382_v20 = vclamps-f32 %v5810_v62, 1.0 }
 0xd48   : > { %v5662_v39 = vpop.f32.mrf.mxu2 }
 0xd49   : > { %5913 = vst [vmem:[%s10449_s18 + $0x38] sm:$0xff] %v7382_v20  ;;  %v5663_v3 = vadd.f32 %v5662_v39, %v10446_v30 }
 0xd4a   : > { %v5711_v16 = vpop.f32.mrf.mxu3  ;;  %v5763_v27 = vpop.f32.mrf.mxu0 }
 0xd4b   : > { %v5712_v37 = vadd.f32 %v5711_v16, %v5663_v3  ;;  %v5764_v36 = vadd.f32 %v5763_v27, %v10442_v28 }
 0xd4c   : > { %v5812_v51 = vpop.f32.mrf.mxu1 }
 0xd4d   : > { %v7381_v1 = vclamps-f32 %v5712_v37, 1.0  ;;  %v5813_v35 = vadd.f32 %v5812_v51, %v5764_v36 }
 0xd4f   : > { %5912 = vst [vmem:[%s10449_s18 + $0x30] sm:$0xff] %v7381_v1  ;;  %v7384_v54 = vclamps-f32 %v5813_v35, 1.0 }
 0xd50   : > { %v5665_v26 = vpop.f32.mrf.mxu2 }
 0xd51   : > { %5915 = vst [vmem:[%s10449_s18 + $0x48] sm:$0xff] %v7384_v54  ;;  %v5666_v6 = vadd.f32 %v5665_v26, %v10446_v30 }
 0xd52   : > { %v5714_v49 = vpop.f32.mrf.mxu3  ;;  %v5765_v60 = vpop.f32.mrf.mxu0 }
 0xd53   : > { %v5715_v52 = vadd.f32 %v5714_v49, %v5666_v6  ;;  %v5766_v7 = vadd.f32 %v5765_v60, %v10442_v28 }
 0xd54   : > { %v5814_v15 = vpop.f32.mrf.mxu1 }
 0xd55   : > { %v7383_v42 = vclamps-f32 %v5715_v52, 1.0  ;;  %v5815_v61 = vadd.f32 %v5814_v15, %v5766_v7 }
 0xd57   : > { %5914 = vst [vmem:[%s10449_s18 + $0x40] sm:$0xff] %v7383_v42  ;;  %v7386_v50 = vclamps-f32 %v5815_v61, 1.0 }
 0xd58   : > { %v5667_v12 = vpop.f32.mrf.mxu2 }
 0xd59   : > { %5917 = vst [vmem:[%s10449_s18 + $0x58] sm:$0xff] %v7386_v50  ;;  %v5668_v57 = vadd.f32 %v5667_v12, %v10446_v30 }
 0xd5a   : > { %v5716_v40 = vpop.f32.mrf.mxu3  ;;  %v5768_v48 = vpop.f32.mrf.mxu0 }
 0xd5b   : > { %v5717_v11 = vadd.f32 %v5716_v40, %v5668_v57  ;;  %v5769_v5 = vadd.f32 %v5768_v48, %v10442_v28 }
 0xd5c   : > { %v5817_v56 = vpop.f32.mrf.mxu1 }
 0xd5d   : > { %v7385_v32 = vclamps-f32 %v5717_v11, 1.0  ;;  %v5818_v25 = vadd.f32 %v5817_v56, %v5769_v5 }
 0xd5f   : > { %5916 = vst [vmem:[%s10449_s18 + $0x50] sm:$0xff] %v7385_v32  ;;  %v7388_v2 = vclamps-f32 %v5818_v25, 1.0 }
 0xd60   : > { %v5670_v19 = vpop.f32.mrf.mxu2 }
 0xd61   : > { %5919 = vst [vmem:[%s10449_s18 + $0x68] sm:$0xff] %v7388_v2  ;;  %v5671_v9 = vadd.f32 %v5670_v19, %v10446_v30 }
 0xd62   : > { %v5719_v38 = vpop.f32.mrf.mxu3  ;;  %v5770_v34 = vpop.f32.mrf.mxu0 }
 0xd63   : > { %v5720_v18 = vadd.f32 %v5719_v38, %v5671_v9  ;;  %v5771_v58 = vadd.f32 %v5770_v34, %v10442_v28 }
 0xd64   : > { %v5819_v43 = vpop.f32.mrf.mxu1 }
 0xd65   : > { %v7387_v13 = vclamps-f32 %v5720_v18, 1.0  ;;  %v5820_v47 = vadd.f32 %v5819_v43, %v5771_v58 }
 0xd67   : > { %5918 = vst [vmem:[%s10449_s18 + $0x60] sm:$0xff] %v7387_v13  ;;  %v7390_v14 = vclamps-f32 %v5820_v47, 1.0 }
 0xd68   : > { %v5672_v59 = vpop.f32.mrf.mxu2 }
 0xd69   : > { %5921 = vst [vmem:[%s10449_s18 + $0x78] sm:$0xff] %v7390_v14  ;;  %v5673_v29 = vadd.f32 %v5672_v59, %v10446_v30 }
 0xd6a   : > { %v5721_v33 = vpop.f32.mrf.mxu3  ;;  %v5773_v44 = vpop.f32.mrf.mxu0 }
 0xd6b   : > { %v5722_v55 = vadd.f32 %v5721_v33, %v5673_v29  ;;  %v5774_v4 = vadd.f32 %v5773_v44, %v10442_v28 }
 0xd6c   : > { %v5822_v10 = vpop.f32.mrf.mxu1 }
 0xd6d   : > { %v7389_v21 = vclamps-f32 %v5722_v55, 1.0  ;;  %v5823_v63 = vadd.f32 %v5822_v10, %v5774_v4 }
 0xd6f   : > { %5920 = vst [vmem:[%s10449_s18 + $0x70] sm:$0xff] %v7389_v21  ;;  %v7392_v0 = vclamps-f32 %v5823_v63, 1.0 }
 0xd70   : > { %v5675_v17 = vpop.f32.mrf.mxu2 }
 0xd71   : > { %5923 = vst [vmem:[%s10449_s18 + $0x88] sm:$0xff] %v7392_v0  ;;  %v5676_v45 = vadd.f32 %v5675_v17, %v10446_v30 }
 0xd72   : > { %v5724_v31 = vpop.f32.mrf.mxu3  ;;  %v5775_v53 = vpop.f32.mrf.mxu0 }
 0xd73   : > { %v5725_v23 = vadd.f32 %v5724_v31, %v5676_v45  ;;  %v5776_v41 = vadd.f32 %v5775_v53, %v10442_v28 }
 0xd74   : > { %v5824_v46 = vpop.f32.mrf.mxu1 }
 0xd75   : > { %v7391_v24 = vclamps-f32 %v5725_v23, 1.0  ;;  %v5825_v8 = vadd.f32 %v5824_v46, %v5776_v41 }
 0xd77   : > { %5922 = vst [vmem:[%s10449_s18 + $0x80] sm:$0xff] %v7391_v24  ;;  %v7394_v22 = vclamps-f32 %v5825_v8, 1.0 }
 0xd78   : > { %v5677_v62 = vpop.f32.mrf.mxu2 }
 0xd79   : > { %5925 = vst [vmem:[%s10449_s18 + $0x98] sm:$0xff] %v7394_v22  ;;  %v5678_v20 = vadd.f32 %v5677_v62, %v10446_v30 }
 0xd7a   : > { %v5726_v39 = vpop.f32.mrf.mxu3  ;;  %v5778_v3 = vpop.f32.mrf.mxu0 }
 0xd7b   : > { %v5727_v16 = vadd.f32 %v5726_v39, %v5678_v20  ;;  %v5779_v27 = vadd.f32 %v5778_v3, %v10442_v28 }
 0xd7c   : > { %v5827_v37 = vpop.f32.mrf.mxu1 }
 0xd7d   : > { %v7393_v36 = vclamps-f32 %v5727_v16, 1.0  ;;  %v5828_v51 = vadd.f32 %v5827_v37, %v5779_v27 }
 0xd7f   : > { %5924 = vst [vmem:[%s10449_s18 + $0x90] sm:$0xff] %v7393_v36  ;;  %v7396_v1 = vclamps-f32 %v5828_v51, 1.0 }
 0xd80   : > { %v5680_v35 = vpop.f32.mrf.mxu2 }
 0xd81   : > { %5927 = vst [vmem:[%s10449_s18 + $0xa8] sm:$0xff] %v7396_v1  ;;  %v5681_v54 = vadd.f32 %v5680_v35, %v10446_v30 }
 0xd82   : > { %v5729_v26 = vpop.f32.mrf.mxu3  ;;  %v5780_v6 = vpop.f32.mrf.mxu0 }
 0xd83   : > { %v5730_v49 = vadd.f32 %v5729_v26, %v5681_v54  ;;  %v5781_v60 = vadd.f32 %v5780_v6, %v10442_v28 }
 0xd84   : > { %v5829_v52 = vpop.f32.mrf.mxu1 }
 0xd85   : > { %v7395_v7 = vclamps-f32 %v5730_v49, 1.0  ;;  %v5830_v15 = vadd.f32 %v5829_v52, %v5781_v60 }
 0xd87   : > { %5926 = vst [vmem:[%s10449_s18 + $0xa0] sm:$0xff] %v7395_v7  ;;  %v7398_v42 = vclamps-f32 %v5830_v15, 1.0 }
 0xd88   : > { %v5682_v61 = vpop.f32.mrf.mxu2 }
 0xd89   : > { %5929 = vst [vmem:[%s10449_s18 + $0xb8] sm:$0xff] %v7398_v42  ;;  %v5683_v50 = vadd.f32 %v5682_v61, %v10446_v30 }
 0xd8a   : > { %v5731_v12 = vpop.f32.mrf.mxu3  ;;  %v5783_v57 = vpop.f32.mrf.mxu0 }
 0xd8b   : > { %v5732_v40 = vadd.f32 %v5731_v12, %v5683_v50  ;;  %v5784_v48 = vadd.f32 %v5783_v57, %v10442_v28 }
 0xd8c   : > { %v5832_v11 = vpop.f32.mrf.mxu1 }
 0xd8d   : > { %v7397_v5 = vclamps-f32 %v5732_v40, 1.0  ;;  %v5833_v56 = vadd.f32 %v5832_v11, %v5784_v48 }
 0xd8f   : > { %5928 = vst [vmem:[%s10449_s18 + $0xb0] sm:$0xff] %v7397_v5  ;;  %v7400_v32 = vclamps-f32 %v5833_v56, 1.0 }
 0xd90   : > { %v5685_v25 = vpop.f32.mrf.mxu2 }
 0xd91   : > { %5931 = vst [vmem:[%s10449_s18 + $0xc8] sm:$0xff] %v7400_v32  ;;  %v5686_v2 = vadd.f32 %v5685_v25, %v10446_v30 }
 0xd92   : > { %v5734_v19 = vpop.f32.mrf.mxu3  ;;  %v5785_v9 = vpop.f32.mrf.mxu0 }
 0xd93   : > { %v5735_v38 = vadd.f32 %v5734_v19, %v5686_v2  ;;  %v5786_v34 = vadd.f32 %v5785_v9, %v10442_v28 }
 0xd94   : > { %v5834_v18 = vpop.f32.mrf.mxu1 }
 0xd95   : > { %v7399_v58 = vclamps-f32 %v5735_v38, 1.0  ;;  %v5835_v43 = vadd.f32 %v5834_v18, %v5786_v34 }
 0xd97   : > { %5930 = vst [vmem:[%s10449_s18 + $0xc0] sm:$0xff] %v7399_v58  ;;  %v7402_v13 = vclamps-f32 %v5835_v43, 1.0 }
 0xd98   : > { %v5687_v47 = vpop.f32.mrf.mxu2 }
 0xd99   : > { %5933 = vst [vmem:[%s10449_s18 + $0xd8] sm:$0xff] %v7402_v13  ;;  %v5688_v14 = vadd.f32 %v5687_v47, %v10446_v30 }
 0xd9a   : > { %v5736_v59 = vpop.f32.mrf.mxu3  ;;  %v5788_v29 = vpop.f32.mrf.mxu0 }
 0xd9b   : > { %v5737_v33 = vadd.f32 %v5736_v59, %v5688_v14  ;;  %v5789_v44 = vadd.f32 %v5788_v29, %v10442_v28 }
 0xd9c   : > { %v5837_v55 = vpop.f32.mrf.mxu1 }
 0xd9d   : > { %v7401_v4 = vclamps-f32 %v5737_v33, 1.0  ;;  %v5838_v10 = vadd.f32 %v5837_v55, %v5789_v44 }
 0xd9f   : > { %5932 = vst [vmem:[%s10449_s18 + $0xd0] sm:$0xff] %v7401_v4  ;;  %v7404_v21 = vclamps-f32 %v5838_v10, 1.0 }
 0xda0   : > { %v5690_v63 = vpop.f32.mrf.mxu2 }
 0xda1   : > { %5935 = vst [vmem:[%s10449_s18 + $0xe8] sm:$0xff] %v7404_v21  ;;  %v5691_v0 = vadd.f32 %v5690_v63, %v10446_v30 }
 0xda2   : > { %v5739_v17 = vpop.f32.mrf.mxu3  ;;  %v5790_v45 = vpop.f32.mrf.mxu0 }
 0xda3   : > { %v5740_v31 = vadd.f32 %v5739_v17, %v5691_v0  ;;  %v5791_v53 = vadd.f32 %v5790_v45, %v10442_v28 }
 0xda4   : > { %v5839_v23 = vpop.f32.mrf.mxu1 }
 0xda5   : > { %v7403_v41 = vclamps-f32 %v5740_v31, 1.0  ;;  %v5840_v46 = vadd.f32 %v5839_v23, %v5791_v53 }
 0xda7   : > { %5934 = vst [vmem:[%s10449_s18 + $0xe0] sm:$0xff] %v7403_v41  ;;  %v7406_v24 = vclamps-f32 %v5840_v46, 1.0 }
 0xda8   : > { %v5692_v8 = vpop.f32.mrf.mxu2 }
 0xda9   : > { %5937 = vst [vmem:[%s10449_s18 + $0xf8] sm:$0xff] %v7406_v24  ;;  %v5693_v22 = vadd.f32 %v5692_v8, %v10446_v30 }
 0xdaa   : > { %v5741_v62 = vpop.f32.mrf.mxu3 }
 0xdab   : > { %v5742_v20 = vadd.f32 %v5741_v62, %v5693_v22 }
 0xdad   : > { %v7405_v39 = vclamps-f32 %v5742_v20, 1.0 }
 0xdaf   : > { %5936 = vst [vmem:[%s10449_s18 + $0xf0] sm:$0xff] %v7405_v39 }
 0xdb0 PF: > { %s106_s15 = sadd.s32 1, %s9000_s15  }
 0xdb1   : > { %p103_p2 = scmp.ge.s32.totalorder %s106_s15, 4  }
 0xdb3   :  { %105 = sbr.rel (!%p103_p2) target bundleno = 91 (0x5b), region = 345 }
 0xdb8   :  { %5962 = vsyncpa [#allocation3], 1 }
 0xdb9   :  { %5964 = vsyncpa [#allocation3 + $0x1], 1 }
 0xdba   :  { %5965 = vsyncpa [#allocation5], 1 }
 0xdbb   :  { %5966 = vsyncpa [#allocation8], 1 }
 0xdbc   :  { %5967 = vsyncpa [#allocation11], 1 }
 0xdbd   :  { %5968 = vsyncpa [#allocation14], 1 }
 0xdbe   :  { %5969 = vsyncpa [#allocation17], 1 }
 0xdbf   :  { %5970 = vsyncpa [#allocation20], 1 }
 0xdc0   :  { %5971 = vsyncpa [#allocation23], 1 }
 0xdc1   :  { %5972 = vsyncpa [#allocation26], 1 }
 0xdc2   :  { %5973 = vsyncpa [#allocation29], 1 }
 0xdc3   :  { %5974 = vsyncpa [#allocation32], 1 }

</bundles_post_ra>
